<compile_context>
chip_gen: v7x
topology: tpu7x:2x2x1
jax: 0.10.0
libtpu: 0.0.40
codegen_flags: <defaults>
</compile_context>

<pallas_src>
import functools

import jax
import jax.numpy as jnp
from jax import lax
from jax.experimental import pallas as pl
from jax.experimental.pallas import tpu as pltpu


# bf16 matmul operands feed the MXU natively on v6e/v7x; accumulation
# (preferred_element_type) and the softmax stay in float32.
# Set to jnp.float32 for bit-tight numerics (debugging on v5e etc.).
MATMUL_DTYPE = jnp.bfloat16


# ----------------------------- Pallas kernel -----------------------------

def _mh_self_attention(x, wq_ref, wk_ref, wv_ref, wp_ref, n_heads, out_dim,
                       score_bias=None, qb_ref=None, kb_ref=None, vb_ref=None):
    """Multi-head self-attention over one (N, C) token block.

    wq/wk/wv_ref[h]: (C, head_dim) projection of head h (softmax scale already
    folded into wq / qb at param-prep time).  wp_ref[h]: (head_dim, out_dim)
    row-slice of the output projection, so  sum_h o_h @ wp[h]  ==
    concat_h(o_h) @ W_proj  -- the head concat is fused into the projection
    accumulation (no lane slicing, no concatenate, only plain 2-D MXU dots).
    score_bias: optional additive (N, N) f32 bias (window mask for hifi).
    Returns the f32 (N, out_dim) accumulator (projection bias NOT added).
    """
    n = x.shape[0]
    dt = x.dtype
    acc = jnp.zeros((n, out_dim), jnp.float32)
    for h in range(n_heads):
        q = jnp.dot(x, wq_ref[h], preferred_element_type=jnp.float32)   # (N, d)
        k = jnp.dot(x, wk_ref[h], preferred_element_type=jnp.float32)
        v = jnp.dot(x, wv_ref[h], preferred_element_type=jnp.float32)
        if qb_ref is not None:
            q = q + qb_ref[h]
            k = k + kb_ref[h]
            v = v + vb_ref[h]
        # s[i, j] = q_i . k_j  (contract head_dim directly, no materialized k.T)
        s = lax.dot_general(q.astype(dt), k.astype(dt),
                            (((1,), (1,)), ((), ())),
                            preferred_element_type=jnp.float32)          # (N, N)
        if score_bias is not None:
            s = s + score_bias
        m = jnp.max(s, axis=-1, keepdims=True)
        e = jnp.exp(s - m)
        # EUP approximate reciprocal instead of a VALU divide.
        p = e * pl.reciprocal(jnp.sum(e, axis=-1, keepdims=True), approx=True)
        o = jnp.dot(p.astype(dt), v.astype(dt),
                    preferred_element_type=jnp.float32)                  # (N, d)
        acc = acc + jnp.dot(o.astype(dt), wp_ref[h],
                            preferred_element_type=jnp.float32)          # (N, out)
    return acc


def hilo_kernel(hbias_ref, x_ref, pos_ref,
                hq_ref, hk_ref, hv_ref, hp_ref, hpb_ref,
                lq_ref, lk_ref, lv_ref, lp_ref, lpb_ref,
                tq_ref, tqb_ref, tk_ref, tkb_ref, tv_ref, tvb_ref,
                to_ref, tob_ref, o_ref, *,
                num_heads, h_heads, l_heads, h_dim, l_dim, dim, matmul_dtype):
    # One batch element per grid step; all intermediates stay in VMEM.
    x = (x_ref[0] + pos_ref[0]).astype(matmul_dtype)         # fused pos-add, (N, C)

    # hifi: window-local attention written as window-block-diagonal-masked
    # attention over the whole token grid -> one full-N qkv/proj matmul per batch
    # element instead of one (ws*ws, C) matmul per 2x2 window.
    # TODO(synk): for large H*W, tile this back to (1, ws, ws, C) BlockSpec window
    # blocks (or flash-style query tiles) so the masked-score cost stays
    # O(N * window) and per-step VMEM stays bounded on v7x (64 MiB).
    hifi = _mh_self_attention(x, hq_ref, hk_ref, hv_ref, hp_ref, h_heads, h_dim,
                              score_bias=hbias_ref[...]) + hpb_ref[...]

    # lofi: global attention of the low-frequency heads over all N tokens.
    lofi = _mh_self_attention(x, lq_ref, lk_ref, lv_ref, lp_ref, l_heads,
                              l_dim) + lpb_ref[...]

    # hifi/lofi concat fused in VMEM: channels [0, h_dim) | [h_dim, dim).
    xcat = jnp.concatenate([hifi, lofi], axis=-1).astype(matmul_dtype)   # (N, C)

    # temporal nn.MultiheadAttention (in_proj -> MHA -> out_proj), with biases.
    y = _mh_self_attention(xcat, tq_ref, tk_ref, tv_ref, to_ref, num_heads, dim,
                           qb_ref=tqb_ref, kb_ref=tkb_ref,
                           vb_ref=tvb_ref) + tob_ref[...]
    o_ref[0] = y.astype(o_ref.dtype)


# ----------------------------- parameter prep (one-time, outside kernel) ---------

def _window_bias(H, W, ws):
    """(N, N) additive f32 bias: 0 inside the same ws x ws window, -1e30 outside."""
    hg = jnp.arange(H) // ws
    wg = jnp.arange(W) // ws
    win = (hg[:, None] * (W // ws) + wg[None, :]).reshape(-1)        # (N,)
    same = win[:, None] == win[None, :]
    return jnp.where(same, 0.0, -1e30).astype(jnp.float32)


def prepare_kernel_params(p, *, dim, num_heads, h_heads, l_heads, head_dim, scale,
                          window_size, H, W, matmul_dtype=MATMUL_DTYPE):
    """Re-pack torch-style params into per-head-stacked, scale-folded, bf16 weights."""
    d = head_dim
    h_dim, l_dim = h_heads * d, l_heads * d
    wd = matmul_dtype

    def stack_in(w, n):    # (dim, n*d) -> (n, dim, d), head-major columns
        return jnp.transpose(w.reshape(dim, n, d), (1, 0, 2)).astype(wd)

    def stack_out(w, n):   # (n*d, out) -> (n, d, out), head-major rows
        return w.reshape(n, d, w.shape[1]).astype(wd)

    kp = {}
    # hifi (window attention): split fused qkv, fold softmax scale into q.
    hq, hk, hv = (p["h_qkv_w"][:, i * h_dim:(i + 1) * h_dim] for i in range(3))
    kp["h_q_w"] = stack_in(hq * scale, h_heads)
    kp["h_k_w"] = stack_in(hk, h_heads)
    kp["h_v_w"] = stack_in(hv, h_heads)
    kp["h_p_w"] = stack_out(p["h_proj_w"], h_heads)
    kp["h_p_b"] = p["h_proj_b"].astype(jnp.float32)
    # lofi (global attention)
    kp["l_q_w"] = stack_in(p["l_q_w"] * scale, l_heads)
    kp["l_k_w"] = stack_in(p["l_kv_w"][:, :l_dim], l_heads)
    kp["l_v_w"] = stack_in(p["l_kv_w"][:, l_dim:], l_heads)
    kp["l_p_w"] = stack_out(p["l_proj_w"], l_heads)
    kp["l_p_b"] = p["l_proj_b"].astype(jnp.float32)
    # temporal nn.MultiheadAttention: split packed in_proj, fold scale into q w+b.
    tq, tk, tv = (p["in_proj_w"][:, i * dim:(i + 1) * dim] for i in range(3))
    tqb, tkb, tvb = (p["in_proj_b"][0, i * dim:(i + 1) * dim] for i in range(3))
    kp["t_q_w"] = stack_in(tq * scale, num_heads)
    kp["t_k_w"] = stack_in(tk, num_heads)
    kp["t_v_w"] = stack_in(tv, num_heads)
    kp["t_q_b"] = (tqb * scale).reshape(num_heads, 1, d).astype(jnp.float32)
    kp["t_k_b"] = tkb.reshape(num_heads, 1, d).astype(jnp.float32)
    kp["t_v_b"] = tvb.reshape(num_heads, 1, d).astype(jnp.float32)
    kp["t_o_w"] = stack_out(p["out_proj_w"], num_heads)
    kp["t_o_b"] = p["out_proj_b"].astype(jnp.float32)
    # positional embedding slice + hifi window mask bias
    kp["pos"] = p["pos"][:, :H * W, :].astype(jnp.float32)
    kp["h_bias"] = _window_bias(H, W, window_size)
    return kp


# ----------------------------- pallas_call wrapper -----------------------------

def _whole_spec(arr):
    nd = arr.ndim

    def idx(b):
        return (0,) * nd

    return pl.BlockSpec(arr.shape, idx)


def hilo_forward(kparams, x, H, W, *, num_heads, h_heads, l_heads, head_dim,
                 matmul_dtype=MATMUL_DTYPE):
    B, N, C = x.shape
    assert N == H * W
    if h_heads == 0 or l_heads == 0:
        # TODO(synk): the torch module's `cat(zeros_like(x), ...)` fallback is
        # shape-inconsistent for alpha in {0, 1}; only the mixed hifi+lofi
        # configuration is implemented.
        raise NotImplementedError("hilo_forward requires h_heads > 0 and l_heads > 0")
    h_dim, l_dim = h_heads * head_dim, l_heads * head_dim

    kernel = functools.partial(
        hilo_kernel, num_heads=num_heads, h_heads=h_heads, l_heads=l_heads,
        h_dim=h_dim, l_dim=l_dim, dim=C, matmul_dtype=matmul_dtype)

    inputs = (kparams["h_bias"], x, kparams["pos"],
              kparams["h_q_w"], kparams["h_k_w"], kparams["h_v_w"],
              kparams["h_p_w"], kparams["h_p_b"],
              kparams["l_q_w"], kparams["l_k_w"], kparams["l_v_w"],
              kparams["l_p_w"], kparams["l_p_b"],
              kparams["t_q_w"], kparams["t_q_b"], kparams["t_k_w"],
              kparams["t_k_b"], kparams["t_v_w"], kparams["t_v_b"],
              kparams["t_o_w"], kparams["t_o_b"])

    in_specs = ([_whole_spec(kparams["h_bias"]),
                 pl.BlockSpec((1, N, C), lambda b: (b, 0, 0)),    # x: per-batch tile
                 pl.BlockSpec((1, N, C), lambda b: (0, 0, 0))]    # pos: shared
                + [_whole_spec(a) for a in inputs[3:]])           # weights / biases

    return pl.pallas_call(
        kernel,
        out_shape=jax.ShapeDtypeStruct((B, N, C), x.dtype),
        grid=(B,),
        in_specs=in_specs,
        out_specs=pl.BlockSpec((1, N, C), lambda b: (b, 0, 0)),
        compiler_params=pltpu.CompilerParams(dimension_semantics=("parallel",)),
    )(*inputs)


# ----------------------------- plain-JAX reference -----------------------------

def reference_forward(params, x, H, W, *, num_heads, window_size,
                      l_heads, h_heads, head_dim, scale):
    B, N, C = x.shape
    ws = window_size
    hg, wg = H // ws, W // ws
    G, M = hg * wg, ws * ws
    h_dim = h_heads * head_dim
    l_dim = l_heads * head_dim

    x = x + params["pos"][:, :N, :]
    xs = x.reshape(B, H, W, C)

    # hifi
    xw = xs.reshape(B, hg, ws, wg, ws, C).transpose(0, 1, 3, 2, 4, 5)
    qkv = (xw @ params["h_qkv_w"]).reshape(B, G, M, 3, h_heads, head_dim)
    qkv = qkv.transpose(3, 0, 1, 4, 2, 5)
    q, k, v = qkv[0], qkv[1], qkv[2]
    attn = jax.nn.softmax((q @ jnp.swapaxes(k, -2, -1)) * scale, axis=-1)
    ho = (attn @ v).transpose(0, 1, 3, 2, 4).reshape(B, hg, wg, ws, ws, h_dim)
    ho = ho.transpose(0, 1, 3, 2, 4, 5).reshape(B, H, W, h_dim)
    hifi_out = ho @ params["h_proj_w"] + params["h_proj_b"]

    # lofi
    q = (xs @ params["l_q_w"]).reshape(B, N, l_heads, head_dim).transpose(0, 2, 1, 3)
    kv = (xs @ params["l_kv_w"]).reshape(B, N, 2, l_heads, head_dim).transpose(2, 0, 3, 1, 4)
    k, v = kv[0], kv[1]
    attn = jax.nn.softmax((q @ jnp.swapaxes(k, -2, -1)) * scale, axis=-1)
    lo = (attn @ v).transpose(0, 2, 1, 3).reshape(B, H, W, l_dim)
    lofi_out = lo @ params["l_proj_w"] + params["l_proj_b"]

    xcat = jnp.concatenate([hifi_out, lofi_out], axis=-1).reshape(B, N, C)

    # temporal MHA
    qkv = xcat @ params["in_proj_w"] + params["in_proj_b"]
    q, k, v = jnp.split(qkv, 3, axis=-1)

    def sh(t):
        return t.reshape(B, N, num_heads, head_dim).transpose(0, 2, 1, 3)

    q, k, v = sh(q) * scale, sh(k), sh(v)
    attn = jax.nn.softmax(q @ jnp.swapaxes(k, -2, -1), axis=-1)
    o = (attn @ v).transpose(0, 2, 1, 3).reshape(B, N, C)
    return o @ params["out_proj_w"] + params["out_proj_b"]


# ----------------------------- params & main -----------------------------

def init_params(key, dim, num_heads, seq_len, alpha):
    head_dim = dim // num_heads
    l_heads = int(num_heads * alpha)
    l_dim = l_heads * head_dim
    h_heads = num_heads - l_heads
    h_dim = h_heads * head_dim
    ks = jax.random.split(key, 12)
    s = 0.05
    params = {
        # nn.Parameter(torch.zeros(1, seq_len, dim)) -- random here to exercise the add
        "pos":        s * jax.random.normal(ks[0], (1, seq_len, dim), jnp.float32),
        "l_q_w":      s * jax.random.normal(ks[1], (dim, l_dim), jnp.float32),
        "l_kv_w":     s * jax.random.normal(ks[2], (dim, 2 * l_dim), jnp.float32),
        "l_proj_w":   s * jax.random.normal(ks[3], (l_dim, l_dim), jnp.float32),
        "l_proj_b":   s * jax.random.normal(ks[4], (1, l_dim), jnp.float32),
        "h_qkv_w":    s * jax.random.normal(ks[5], (dim, 3 * h_dim), jnp.float32),
        "h_proj_w":   s * jax.random.normal(ks[6], (h_dim, h_dim), jnp.float32),
        "h_proj_b":   s * jax.random.normal(ks[7], (1, h_dim), jnp.float32),
        "in_proj_w":  s * jax.random.normal(ks[8], (dim, 3 * dim), jnp.float32),
        "in_proj_b":  s * jax.random.normal(ks[9], (1, 3 * dim), jnp.float32),
        "out_proj_w": s * jax.random.normal(ks[10], (dim, dim), jnp.float32),
        "out_proj_b": s * jax.random.normal(ks[11], (1, dim), jnp.float32),
    }
    return params, (head_dim, l_heads, h_heads)


if __name__ == "__main__":
    dim, num_heads, window_size, alpha, seq_len = 32, 8, 2, 0.5, 128
    B, H, W = 2, 4, 4
    N = H * W

    key = jax.random.PRNGKey(0)
    kx, kp = jax.random.split(key)
    x = jax.random.normal(kx, (B, N, dim), jnp.float32)
    params, (head_dim, l_heads, h_heads) = init_params(kp, dim, num_heads, seq_len, alpha)
    scale = head_dim ** (-0.5)

    # One-time weight re-layout / scale folding (outside the hot path).
    kparams = prepare_kernel_params(
        params, dim=dim, num_heads=num_heads, h_heads=h_heads, l_heads=l_heads,
        head_dim=head_dim, scale=scale, window_size=window_size, H=H, W=W)

    out = hilo_forward(kparams, x, H, W, num_heads=num_heads, h_heads=h_heads,
                       l_heads=l_heads, head_dim=head_dim)
    out = jax.block_until_ready(out)

    ref = reference_forward(params, x, H, W, num_heads=num_heads,
                            window_size=window_size, l_heads=l_heads,
                            h_heads=h_heads, head_dim=head_dim, scale=scale)

    assert out.shape == (B, N, dim), out.shape
    max_err = float(jnp.max(jnp.abs(out - ref)))
    tol = 5e-2 if MATMUL_DTYPE == jnp.bfloat16 else 5e-3
    assert max_err < tol, f"mismatch vs reference: {max_err}"
    print("KERNEL_OK")
</pallas_src>

<mosaic_0001>
module attributes {stable_mosaic.version = 11 : i64} {
  func.func @hilo_kernel(%arg0: i32, %arg1: memref<16x16xf32, #tpu.memory_space<vmem>>, %arg2: memref<1x16x32xf32, #tpu.memory_space<vmem>>, %arg3: memref<1x16x32xf32, #tpu.memory_space<vmem>>, %arg4: memref<4x32x4xbf16, #tpu.memory_space<vmem>>, %arg5: memref<4x32x4xbf16, #tpu.memory_space<vmem>>, %arg6: memref<4x32x4xbf16, #tpu.memory_space<vmem>>, %arg7: memref<4x4x16xbf16, #tpu.memory_space<vmem>>, %arg8: memref<1x16xf32, #tpu.memory_space<vmem>>, %arg9: memref<4x32x4xbf16, #tpu.memory_space<vmem>>, %arg10: memref<4x32x4xbf16, #tpu.memory_space<vmem>>, %arg11: memref<4x32x4xbf16, #tpu.memory_space<vmem>>, %arg12: memref<4x4x16xbf16, #tpu.memory_space<vmem>>, %arg13: memref<1x16xf32, #tpu.memory_space<vmem>>, %arg14: memref<8x32x4xbf16, #tpu.memory_space<vmem>>, %arg15: memref<8x1x4xf32, #tpu.memory_space<vmem>>, %arg16: memref<8x32x4xbf16, #tpu.memory_space<vmem>>, %arg17: memref<8x1x4xf32, #tpu.memory_space<vmem>>, %arg18: memref<8x32x4xbf16, #tpu.memory_space<vmem>>, %arg19: memref<8x1x4xf32, #tpu.memory_space<vmem>>, %arg20: memref<8x4x32xbf16, #tpu.memory_space<vmem>>, %arg21: memref<1x32xf32, #tpu.memory_space<vmem>>, %arg22: memref<1x16x32xf32, #tpu.memory_space<vmem>>) attributes {dimension_semantics = [#tpu.dimension_semantics<parallel>], iteration_bounds = array<i64: 2>, scalar_prefetch = 0 : i64, scratch_operands = 0 : i64, tpu.core_type = #tpu.core_type<tc>, window_params = [{pipeline_mode = #tpu.pipeline_mode<synchronous>, transform_indices = @transform_0, window_bounds = array<i64: 16, 16>}, {transform_indices = @transform_1, window_bounds = array<i64: 1, 16, 32>}, {pipeline_mode = #tpu.pipeline_mode<synchronous>, transform_indices = @transform_2, window_bounds = array<i64: 1, 16, 32>}, {pipeline_mode = #tpu.pipeline_mode<synchronous>, transform_indices = @transform_3, window_bounds = array<i64: 4, 32, 4>}, {pipeline_mode = #tpu.pipeline_mode<synchronous>, transform_indices = @transform_4, window_bounds = array<i64: 4, 32, 4>}, {pipeline_mode = #tpu.pipeline_mode<synchronous>, transform_indices = @transform_5, window_bounds = array<i64: 4, 32, 4>}, {pipeline_mode = #tpu.pipeline_mode<synchronous>, transform_indices = @transform_6, window_bounds = array<i64: 4, 4, 16>}, {pipeline_mode = #tpu.pipeline_mode<synchronous>, transform_indices = @transform_7, window_bounds = array<i64: 1, 16>}, {pipeline_mode = #tpu.pipeline_mode<synchronous>, transform_indices = @transform_8, window_bounds = array<i64: 4, 32, 4>}, {pipeline_mode = #tpu.pipeline_mode<synchronous>, transform_indices = @transform_9, window_bounds = array<i64: 4, 32, 4>}, {pipeline_mode = #tpu.pipeline_mode<synchronous>, transform_indices = @transform_10, window_bounds = array<i64: 4, 32, 4>}, {pipeline_mode = #tpu.pipeline_mode<synchronous>, transform_indices = @transform_11, window_bounds = array<i64: 4, 4, 16>}, {pipeline_mode = #tpu.pipeline_mode<synchronous>, transform_indices = @transform_12, window_bounds = array<i64: 1, 16>}, {pipeline_mode = #tpu.pipeline_mode<synchronous>, transform_indices = @transform_13, window_bounds = array<i64: 8, 32, 4>}, {pipeline_mode = #tpu.pipeline_mode<synchronous>, transform_indices = @transform_14, window_bounds = array<i64: 8, 1, 4>}, {pipeline_mode = #tpu.pipeline_mode<synchronous>, transform_indices = @transform_15, window_bounds = array<i64: 8, 32, 4>}, {pipeline_mode = #tpu.pipeline_mode<synchronous>, transform_indices = @transform_16, window_bounds = array<i64: 8, 1, 4>}, {pipeline_mode = #tpu.pipeline_mode<synchronous>, transform_indices = @transform_17, window_bounds = array<i64: 8, 32, 4>}, {pipeline_mode = #tpu.pipeline_mode<synchronous>, transform_indices = @transform_18, window_bounds = array<i64: 8, 1, 4>}, {pipeline_mode = #tpu.pipeline_mode<synchronous>, transform_indices = @transform_19, window_bounds = array<i64: 8, 4, 32>}, {pipeline_mode = #tpu.pipeline_mode<synchronous>, transform_indices = @transform_20, window_bounds = array<i64: 1, 32>}, {transform_indices = @transform_21, window_bounds = array<i64: 1, 16, 32>}]} {
    %c0 = arith.constant 0 : index
    %c0_0 = arith.constant 0 : index
    %c0_1 = arith.constant 0 : index
    %0 = vector.load %arg2[%c0, %c0_0, %c0_1] : memref<1x16x32xf32, #tpu.memory_space<vmem>>, vector<1x16x32xf32>
    %1 = vector.shape_cast %0 : vector<1x16x32xf32> to vector<16x32xf32>
    %c0_2 = arith.constant 0 : index
    %c0_3 = arith.constant 0 : index
    %c0_4 = arith.constant 0 : index
    %2 = vector.load %arg3[%c0_2, %c0_3, %c0_4] : memref<1x16x32xf32, #tpu.memory_space<vmem>>, vector<1x16x32xf32>
    %3 = vector.shape_cast %2 : vector<1x16x32xf32> to vector<16x32xf32>
    %4 = arith.addf %1, %3 : vector<16x32xf32>
    %5 = arith.truncf %4 : vector<16x32xf32> to vector<16x32xbf16>
    %c0_5 = arith.constant 0 : index
    %c0_6 = arith.constant 0 : index
    %6 = vector.load %arg1[%c0_5, %c0_6] : memref<16x16xf32, #tpu.memory_space<vmem>>, vector<16x16xf32>
    %cst = arith.constant 0.000000e+00 : f32
    %7 = vector.broadcast %cst : f32 to vector<16x16xf32>
    %c0_7 = arith.constant 0 : index
    %c0_8 = arith.constant 0 : index
    %c0_9 = arith.constant 0 : index
    %8 = vector.load %arg4[%c0_7, %c0_8, %c0_9] : memref<4x32x4xbf16, #tpu.memory_space<vmem>>, vector<1x32x4xbf16>
    %9 = vector.shape_cast %8 : vector<1x32x4xbf16> to vector<32x4xbf16>
    %cst_10 = arith.constant dense<0.000000e+00> : vector<16x4xf32>
    %10 = tpu.matmul %5, %9, %cst_10 {dimension_numbers = #tpu.dot_dimension_numbers<[1], [0], [0], [1], [0, 0, 1, 1], [], []>} : vector<16x32xbf16>, vector<32x4xbf16>, vector<16x4xf32> -> vector<16x4xf32>
    %c0_11 = arith.constant 0 : index
    %c0_12 = arith.constant 0 : index
    %c0_13 = arith.constant 0 : index
    %11 = vector.load %arg5[%c0_11, %c0_12, %c0_13] : memref<4x32x4xbf16, #tpu.memory_space<vmem>>, vector<1x32x4xbf16>
    %12 = vector.shape_cast %11 : vector<1x32x4xbf16> to vector<32x4xbf16>
    %cst_14 = arith.constant dense<0.000000e+00> : vector<16x4xf32>
    %13 = tpu.matmul %5, %12, %cst_14 {dimension_numbers = #tpu.dot_dimension_numbers<[1], [0], [0], [1], [0, 0, 1, 1], [], []>} : vector<16x32xbf16>, vector<32x4xbf16>, vector<16x4xf32> -> vector<16x4xf32>
    %c0_15 = arith.constant 0 : index
    %c0_16 = arith.constant 0 : index
    %c0_17 = arith.constant 0 : index
    %14 = vector.load %arg6[%c0_15, %c0_16, %c0_17] : memref<4x32x4xbf16, #tpu.memory_space<vmem>>, vector<1x32x4xbf16>
    %15 = vector.shape_cast %14 : vector<1x32x4xbf16> to vector<32x4xbf16>
    %cst_18 = arith.constant dense<0.000000e+00> : vector<16x4xf32>
    %16 = tpu.matmul %5, %15, %cst_18 {dimension_numbers = #tpu.dot_dimension_numbers<[1], [0], [0], [1], [0, 0, 1, 1], [], []>} : vector<16x32xbf16>, vector<32x4xbf16>, vector<16x4xf32> -> vector<16x4xf32>
    %17 = arith.truncf %10 : vector<16x4xf32> to vector<16x4xbf16>
    %18 = arith.truncf %13 : vector<16x4xf32> to vector<16x4xbf16>
    %cst_19 = arith.constant dense<0.000000e+00> : vector<16x16xf32>
    %19 = tpu.matmul %17, %18, %cst_19 {dimension_numbers = #tpu.dot_dimension_numbers<[1], [1], [0], [0], [0, 0, 1, 0], [], []>} : vector<16x4xbf16>, vector<16x4xbf16>, vector<16x16xf32> -> vector<16x16xf32>
    %20 = arith.addf %19, %6 : vector<16x16xf32>
    %cst_20 = arith.constant dense<0xFF800000> : vector<16xf32>
    %21 = vector.multi_reduction <maximumf>, %20, %cst_20 [1] : vector<16x16xf32> to vector<16xf32>
    %22 = vector.shape_cast %21 : vector<16xf32> to vector<16x1xf32>
    %23 = vector.broadcast %22 : vector<16x1xf32> to vector<16x16xf32>
    %24 = arith.subf %20, %23 : vector<16x16xf32>
    %25 = math.exp %24 : vector<16x16xf32>
    %cst_21 = arith.constant dense<0.000000e+00> : vector<16xf32>
    %26 = vector.multi_reduction <add>, %25, %cst_21 [1] : vector<16x16xf32> to vector<16xf32>
    %27 = vector.shape_cast %26 : vector<16xf32> to vector<16x1xf32>
    %28 = tpu.reciprocal %27 {approx = true} : vector<16x1xf32> -> vector<16x1xf32>
    %29 = vector.broadcast %28 : vector<16x1xf32> to vector<16x16xf32>
    %30 = arith.mulf %25, %29 : vector<16x16xf32>
    %31 = arith.truncf %30 : vector<16x16xf32> to vector<16x16xbf16>
    %32 = arith.truncf %16 : vector<16x4xf32> to vector<16x4xbf16>
    %cst_22 = arith.constant dense<0.000000e+00> : vector<16x4xf32>
    %33 = tpu.matmul %31, %32, %cst_22 {dimension_numbers = #tpu.dot_dimension_numbers<[1], [0], [0], [1], [0, 0, 1, 1], [], []>} : vector<16x16xbf16>, vector<16x4xbf16>, vector<16x4xf32> -> vector<16x4xf32>
    %34 = arith.truncf %33 : vector<16x4xf32> to vector<16x4xbf16>
    %c0_23 = arith.constant 0 : index
    %c0_24 = arith.constant 0 : index
    %c0_25 = arith.constant 0 : index
    %35 = vector.load %arg7[%c0_23, %c0_24, %c0_25] : memref<4x4x16xbf16, #tpu.memory_space<vmem>>, vector<1x4x16xbf16>
    %36 = vector.shape_cast %35 : vector<1x4x16xbf16> to vector<4x16xbf16>
    %cst_26 = arith.constant dense<0.000000e+00> : vector<16x16xf32>
    %37 = tpu.matmul %34, %36, %cst_26 {dimension_numbers = #tpu.dot_dimension_numbers<[1], [0], [0], [1], [0, 0, 1, 1], [], []>} : vector<16x4xbf16>, vector<4x16xbf16>, vector<16x16xf32> -> vector<16x16xf32>
    %38 = arith.addf %7, %37 : vector<16x16xf32>
    %c1 = arith.constant 1 : index
    %c0_27 = arith.constant 0 : index
    %c0_28 = arith.constant 0 : index
    %39 = vector.load %arg4[%c1, %c0_27, %c0_28] : memref<4x32x4xbf16, #tpu.memory_space<vmem>>, vector<1x32x4xbf16>
    %40 = vector.shape_cast %39 : vector<1x32x4xbf16> to vector<32x4xbf16>
    %cst_29 = arith.constant dense<0.000000e+00> : vector<16x4xf32>
    %41 = tpu.matmul %5, %40, %cst_29 {dimension_numbers = #tpu.dot_dimension_numbers<[1], [0], [0], [1], [0, 0, 1, 1], [], []>} : vector<16x32xbf16>, vector<32x4xbf16>, vector<16x4xf32> -> vector<16x4xf32>
    %c1_30 = arith.constant 1 : index
    %c0_31 = arith.constant 0 : index
    %c0_32 = arith.constant 0 : index
    %42 = vector.load %arg5[%c1_30, %c0_31, %c0_32] : memref<4x32x4xbf16, #tpu.memory_space<vmem>>, vector<1x32x4xbf16>
    %43 = vector.shape_cast %42 : vector<1x32x4xbf16> to vector<32x4xbf16>
    %cst_33 = arith.constant dense<0.000000e+00> : vector<16x4xf32>
    %44 = tpu.matmul %5, %43, %cst_33 {dimension_numbers = #tpu.dot_dimension_numbers<[1], [0], [0], [1], [0, 0, 1, 1], [], []>} : vector<16x32xbf16>, vector<32x4xbf16>, vector<16x4xf32> -> vector<16x4xf32>
    %c1_34 = arith.constant 1 : index
    %c0_35 = arith.constant 0 : index
    %c0_36 = arith.constant 0 : index
    %45 = vector.load %arg6[%c1_34, %c0_35, %c0_36] : memref<4x32x4xbf16, #tpu.memory_space<vmem>>, vector<1x32x4xbf16>
    %46 = vector.shape_cast %45 : vector<1x32x4xbf16> to vector<32x4xbf16>
    %cst_37 = arith.constant dense<0.000000e+00> : vector<16x4xf32>
    %47 = tpu.matmul %5, %46, %cst_37 {dimension_numbers = #tpu.dot_dimension_numbers<[1], [0], [0], [1], [0, 0, 1, 1], [], []>} : vector<16x32xbf16>, vector<32x4xbf16>, vector<16x4xf32> -> vector<16x4xf32>
    %48 = arith.truncf %41 : vector<16x4xf32> to vector<16x4xbf16>
    %49 = arith.truncf %44 : vector<16x4xf32> to vector<16x4xbf16>
    %cst_38 = arith.constant dense<0.000000e+00> : vector<16x16xf32>
    %50 = tpu.matmul %48, %49, %cst_38 {dimension_numbers = #tpu.dot_dimension_numbers<[1], [1], [0], [0], [0, 0, 1, 0], [], []>} : vector<16x4xbf16>, vector<16x4xbf16>, vector<16x16xf32> -> vector<16x16xf32>
    %51 = arith.addf %50, %6 : vector<16x16xf32>
    %cst_39 = arith.constant dense<0xFF800000> : vector<16xf32>
    %52 = vector.multi_reduction <maximumf>, %51, %cst_39 [1] : vector<16x16xf32> to vector<16xf32>
    %53 = vector.shape_cast %52 : vector<16xf32> to vector<16x1xf32>
    %54 = vector.broadcast %53 : vector<16x1xf32> to vector<16x16xf32>
    %55 = arith.subf %51, %54 : vector<16x16xf32>
    %56 = math.exp %55 : vector<16x16xf32>
    %cst_40 = arith.constant dense<0.000000e+00> : vector<16xf32>
    %57 = vector.multi_reduction <add>, %56, %cst_40 [1] : vector<16x16xf32> to vector<16xf32>
    %58 = vector.shape_cast %57 : vector<16xf32> to vector<16x1xf32>
    %59 = tpu.reciprocal %58 {approx = true} : vector<16x1xf32> -> vector<16x1xf32>
    %60 = vector.broadcast %59 : vector<16x1xf32> to vector<16x16xf32>
    %61 = arith.mulf %56, %60 : vector<16x16xf32>
    %62 = arith.truncf %61 : vector<16x16xf32> to vector<16x16xbf16>
    %63 = arith.truncf %47 : vector<16x4xf32> to vector<16x4xbf16>
    %cst_41 = arith.constant dense<0.000000e+00> : vector<16x4xf32>
    %64 = tpu.matmul %62, %63, %cst_41 {dimension_numbers = #tpu.dot_dimension_numbers<[1], [0], [0], [1], [0, 0, 1, 1], [], []>} : vector<16x16xbf16>, vector<16x4xbf16>, vector<16x4xf32> -> vector<16x4xf32>
    %65 = arith.truncf %64 : vector<16x4xf32> to vector<16x4xbf16>
    %c1_42 = arith.constant 1 : index
    %c0_43 = arith.constant 0 : index
    %c0_44 = arith.constant 0 : index
    %66 = vector.load %arg7[%c1_42, %c0_43, %c0_44] : memref<4x4x16xbf16, #tpu.memory_space<vmem>>, vector<1x4x16xbf16>
    %67 = vector.shape_cast %66 : vector<1x4x16xbf16> to vector<4x16xbf16>
    %cst_45 = arith.constant dense<0.000000e+00> : vector<16x16xf32>
    %68 = tpu.matmul %65, %67, %cst_45 {dimension_numbers = #tpu.dot_dimension_numbers<[1], [0], [0], [1], [0, 0, 1, 1], [], []>} : vector<16x4xbf16>, vector<4x16xbf16>, vector<16x16xf32> -> vector<16x16xf32>
    %69 = arith.addf %38, %68 : vector<16x16xf32>
    %c2 = arith.constant 2 : index
    %c0_46 = arith.constant 0 : index
    %c0_47 = arith.constant 0 : index
    %70 = vector.load %arg4[%c2, %c0_46, %c0_47] : memref<4x32x4xbf16, #tpu.memory_space<vmem>>, vector<1x32x4xbf16>
    %71 = vector.shape_cast %70 : vector<1x32x4xbf16> to vector<32x4xbf16>
    %cst_48 = arith.constant dense<0.000000e+00> : vector<16x4xf32>
    %72 = tpu.matmul %5, %71, %cst_48 {dimension_numbers = #tpu.dot_dimension_numbers<[1], [0], [0], [1], [0, 0, 1, 1], [], []>} : vector<16x32xbf16>, vector<32x4xbf16>, vector<16x4xf32> -> vector<16x4xf32>
    %c2_49 = arith.constant 2 : index
    %c0_50 = arith.constant 0 : index
    %c0_51 = arith.constant 0 : index
    %73 = vector.load %arg5[%c2_49, %c0_50, %c0_51] : memref<4x32x4xbf16, #tpu.memory_space<vmem>>, vector<1x32x4xbf16>
    %74 = vector.shape_cast %73 : vector<1x32x4xbf16> to vector<32x4xbf16>
    %cst_52 = arith.constant dense<0.000000e+00> : vector<16x4xf32>
    %75 = tpu.matmul %5, %74, %cst_52 {dimension_numbers = #tpu.dot_dimension_numbers<[1], [0], [0], [1], [0, 0, 1, 1], [], []>} : vector<16x32xbf16>, vector<32x4xbf16>, vector<16x4xf32> -> vector<16x4xf32>
    %c2_53 = arith.constant 2 : index
    %c0_54 = arith.constant 0 : index
    %c0_55 = arith.constant 0 : index
    %76 = vector.load %arg6[%c2_53, %c0_54, %c0_55] : memref<4x32x4xbf16, #tpu.memory_space<vmem>>, vector<1x32x4xbf16>
    %77 = vector.shape_cast %76 : vector<1x32x4xbf16> to vector<32x4xbf16>
    %cst_56 = arith.constant dense<0.000000e+00> : vector<16x4xf32>
    %78 = tpu.matmul %5, %77, %cst_56 {dimension_numbers = #tpu.dot_dimension_numbers<[1], [0], [0], [1], [0, 0, 1, 1], [], []>} : vector<16x32xbf16>, vector<32x4xbf16>, vector<16x4xf32> -> vector<16x4xf32>
    %79 = arith.truncf %72 : vector<16x4xf32> to vector<16x4xbf16>
    %80 = arith.truncf %75 : vector<16x4xf32> to vector<16x4xbf16>
    %cst_57 = arith.constant dense<0.000000e+00> : vector<16x16xf32>
    %81 = tpu.matmul %79, %80, %cst_57 {dimension_numbers = #tpu.dot_dimension_numbers<[1], [1], [0], [0], [0, 0, 1, 0], [], []>} : vector<16x4xbf16>, vector<16x4xbf16>, vector<16x16xf32> -> vector<16x16xf32>
    %82 = arith.addf %81, %6 : vector<16x16xf32>
    %cst_58 = arith.constant dense<0xFF800000> : vector<16xf32>
    %83 = vector.multi_reduction <maximumf>, %82, %cst_58 [1] : vector<16x16xf32> to vector<16xf32>
    %84 = vector.shape_cast %83 : vector<16xf32> to vector<16x1xf32>
    %85 = vector.broadcast %84 : vector<16x1xf32> to vector<16x16xf32>
    %86 = arith.subf %82, %85 : vector<16x16xf32>
    %87 = math.exp %86 : vector<16x16xf32>
    %cst_59 = arith.constant dense<0.000000e+00> : vector<16xf32>
    %88 = vector.multi_reduction <add>, %87, %cst_59 [1] : vector<16x16xf32> to vector<16xf32>
    %89 = vector.shape_cast %88 : vector<16xf32> to vector<16x1xf32>
    %90 = tpu.reciprocal %89 {approx = true} : vector<16x1xf32> -> vector<16x1xf32>
    %91 = vector.broadcast %90 : vector<16x1xf32> to vector<16x16xf32>
    %92 = arith.mulf %87, %91 : vector<16x16xf32>
    %93 = arith.truncf %92 : vector<16x16xf32> to vector<16x16xbf16>
    %94 = arith.truncf %78 : vector<16x4xf32> to vector<16x4xbf16>
    %cst_60 = arith.constant dense<0.000000e+00> : vector<16x4xf32>
    %95 = tpu.matmul %93, %94, %cst_60 {dimension_numbers = #tpu.dot_dimension_numbers<[1], [0], [0], [1], [0, 0, 1, 1], [], []>} : vector<16x16xbf16>, vector<16x4xbf16>, vector<16x4xf32> -> vector<16x4xf32>
    %96 = arith.truncf %95 : vector<16x4xf32> to vector<16x4xbf16>
    %c2_61 = arith.constant 2 : index
    %c0_62 = arith.constant 0 : index
    %c0_63 = arith.constant 0 : index
    %97 = vector.load %arg7[%c2_61, %c0_62, %c0_63] : memref<4x4x16xbf16, #tpu.memory_space<vmem>>, vector<1x4x16xbf16>
    %98 = vector.shape_cast %97 : vector<1x4x16xbf16> to vector<4x16xbf16>
    %cst_64 = arith.constant dense<0.000000e+00> : vector<16x16xf32>
    %99 = tpu.matmul %96, %98, %cst_64 {dimension_numbers = #tpu.dot_dimension_numbers<[1], [0], [0], [1], [0, 0, 1, 1], [], []>} : vector<16x4xbf16>, vector<4x16xbf16>, vector<16x16xf32> -> vector<16x16xf32>
    %100 = arith.addf %69, %99 : vector<16x16xf32>
    %c3 = arith.constant 3 : index
    %c0_65 = arith.constant 0 : index
    %c0_66 = arith.constant 0 : index
    %101 = vector.load %arg4[%c3, %c0_65, %c0_66] : memref<4x32x4xbf16, #tpu.memory_space<vmem>>, vector<1x32x4xbf16>
    %102 = vector.shape_cast %101 : vector<1x32x4xbf16> to vector<32x4xbf16>
    %cst_67 = arith.constant dense<0.000000e+00> : vector<16x4xf32>
    %103 = tpu.matmul %5, %102, %cst_67 {dimension_numbers = #tpu.dot_dimension_numbers<[1], [0], [0], [1], [0, 0, 1, 1], [], []>} : vector<16x32xbf16>, vector<32x4xbf16>, vector<16x4xf32> -> vector<16x4xf32>
    %c3_68 = arith.constant 3 : index
    %c0_69 = arith.constant 0 : index
    %c0_70 = arith.constant 0 : index
    %104 = vector.load %arg5[%c3_68, %c0_69, %c0_70] : memref<4x32x4xbf16, #tpu.memory_space<vmem>>, vector<1x32x4xbf16>
    %105 = vector.shape_cast %104 : vector<1x32x4xbf16> to vector<32x4xbf16>
    %cst_71 = arith.constant dense<0.000000e+00> : vector<16x4xf32>
    %106 = tpu.matmul %5, %105, %cst_71 {dimension_numbers = #tpu.dot_dimension_numbers<[1], [0], [0], [1], [0, 0, 1, 1], [], []>} : vector<16x32xbf16>, vector<32x4xbf16>, vector<16x4xf32> -> vector<16x4xf32>
    %c3_72 = arith.constant 3 : index
    %c0_73 = arith.constant 0 : index
    %c0_74 = arith.constant 0 : index
    %107 = vector.load %arg6[%c3_72, %c0_73, %c0_74] : memref<4x32x4xbf16, #tpu.memory_space<vmem>>, vector<1x32x4xbf16>
    %108 = vector.shape_cast %107 : vector<1x32x4xbf16> to vector<32x4xbf16>
    %cst_75 = arith.constant dense<0.000000e+00> : vector<16x4xf32>
    %109 = tpu.matmul %5, %108, %cst_75 {dimension_numbers = #tpu.dot_dimension_numbers<[1], [0], [0], [1], [0, 0, 1, 1], [], []>} : vector<16x32xbf16>, vector<32x4xbf16>, vector<16x4xf32> -> vector<16x4xf32>
    %110 = arith.truncf %103 : vector<16x4xf32> to vector<16x4xbf16>
    %111 = arith.truncf %106 : vector<16x4xf32> to vector<16x4xbf16>
    %cst_76 = arith.constant dense<0.000000e+00> : vector<16x16xf32>
    %112 = tpu.matmul %110, %111, %cst_76 {dimension_numbers = #tpu.dot_dimension_numbers<[1], [1], [0], [0], [0, 0, 1, 0], [], []>} : vector<16x4xbf16>, vector<16x4xbf16>, vector<16x16xf32> -> vector<16x16xf32>
    %113 = arith.addf %112, %6 : vector<16x16xf32>
    %cst_77 = arith.constant dense<0xFF800000> : vector<16xf32>
    %114 = vector.multi_reduction <maximumf>, %113, %cst_77 [1] : vector<16x16xf32> to vector<16xf32>
    %115 = vector.shape_cast %114 : vector<16xf32> to vector<16x1xf32>
    %116 = vector.broadcast %115 : vector<16x1xf32> to vector<16x16xf32>
    %117 = arith.subf %113, %116 : vector<16x16xf32>
    %118 = math.exp %117 : vector<16x16xf32>
    %cst_78 = arith.constant dense<0.000000e+00> : vector<16xf32>
    %119 = vector.multi_reduction <add>, %118, %cst_78 [1] : vector<16x16xf32> to vector<16xf32>
    %120 = vector.shape_cast %119 : vector<16xf32> to vector<16x1xf32>
    %121 = tpu.reciprocal %120 {approx = true} : vector<16x1xf32> -> vector<16x1xf32>
    %122 = vector.broadcast %121 : vector<16x1xf32> to vector<16x16xf32>
    %123 = arith.mulf %118, %122 : vector<16x16xf32>
    %124 = arith.truncf %123 : vector<16x16xf32> to vector<16x16xbf16>
    %125 = arith.truncf %109 : vector<16x4xf32> to vector<16x4xbf16>
    %cst_79 = arith.constant dense<0.000000e+00> : vector<16x4xf32>
    %126 = tpu.matmul %124, %125, %cst_79 {dimension_numbers = #tpu.dot_dimension_numbers<[1], [0], [0], [1], [0, 0, 1, 1], [], []>} : vector<16x16xbf16>, vector<16x4xbf16>, vector<16x4xf32> -> vector<16x4xf32>
    %127 = arith.truncf %126 : vector<16x4xf32> to vector<16x4xbf16>
    %c3_80 = arith.constant 3 : index
    %c0_81 = arith.constant 0 : index
    %c0_82 = arith.constant 0 : index
    %128 = vector.load %arg7[%c3_80, %c0_81, %c0_82] : memref<4x4x16xbf16, #tpu.memory_space<vmem>>, vector<1x4x16xbf16>
    %129 = vector.shape_cast %128 : vector<1x4x16xbf16> to vector<4x16xbf16>
    %cst_83 = arith.constant dense<0.000000e+00> : vector<16x16xf32>
    %130 = tpu.matmul %127, %129, %cst_83 {dimension_numbers = #tpu.dot_dimension_numbers<[1], [0], [0], [1], [0, 0, 1, 1], [], []>} : vector<16x4xbf16>, vector<4x16xbf16>, vector<16x16xf32> -> vector<16x16xf32>
    %131 = arith.addf %100, %130 : vector<16x16xf32>
    %c0_84 = arith.constant 0 : index
    %c0_85 = arith.constant 0 : index
    %132 = vector.load %arg8[%c0_84, %c0_85] : memref<1x16xf32, #tpu.memory_space<vmem>>, vector<1x16xf32>
    %133 = vector.broadcast %132 : vector<1x16xf32> to vector<16x16xf32>
    %134 = arith.addf %131, %133 : vector<16x16xf32>
    %cst_86 = arith.constant 0.000000e+00 : f32
    %135 = vector.broadcast %cst_86 : f32 to vector<16x16xf32>
    %c0_87 = arith.constant 0 : index
    %c0_88 = arith.constant 0 : index
    %c0_89 = arith.constant 0 : index
    %136 = vector.load %arg9[%c0_87, %c0_88, %c0_89] : memref<4x32x4xbf16, #tpu.memory_space<vmem>>, vector<1x32x4xbf16>
    %137 = vector.shape_cast %136 : vector<1x32x4xbf16> to vector<32x4xbf16>
    %cst_90 = arith.constant dense<0.000000e+00> : vector<16x4xf32>
    %138 = tpu.matmul %5, %137, %cst_90 {dimension_numbers = #tpu.dot_dimension_numbers<[1], [0], [0], [1], [0, 0, 1, 1], [], []>} : vector<16x32xbf16>, vector<32x4xbf16>, vector<16x4xf32> -> vector<16x4xf32>
    %c0_91 = arith.constant 0 : index
    %c0_92 = arith.constant 0 : index
    %c0_93 = arith.constant 0 : index
    %139 = vector.load %arg10[%c0_91, %c0_92, %c0_93] : memref<4x32x4xbf16, #tpu.memory_space<vmem>>, vector<1x32x4xbf16>
    %140 = vector.shape_cast %139 : vector<1x32x4xbf16> to vector<32x4xbf16>
    %cst_94 = arith.constant dense<0.000000e+00> : vector<16x4xf32>
    %141 = tpu.matmul %5, %140, %cst_94 {dimension_numbers = #tpu.dot_dimension_numbers<[1], [0], [0], [1], [0, 0, 1, 1], [], []>} : vector<16x32xbf16>, vector<32x4xbf16>, vector<16x4xf32> -> vector<16x4xf32>
    %c0_95 = arith.constant 0 : index
    %c0_96 = arith.constant 0 : index
    %c0_97 = arith.constant 0 : index
    %142 = vector.load %arg11[%c0_95, %c0_96, %c0_97] : memref<4x32x4xbf16, #tpu.memory_space<vmem>>, vector<1x32x4xbf16>
    %143 = vector.shape_cast %142 : vector<1x32x4xbf16> to vector<32x4xbf16>
    %cst_98 = arith.constant dense<0.000000e+00> : vector<16x4xf32>
    %144 = tpu.matmul %5, %143, %cst_98 {dimension_numbers = #tpu.dot_dimension_numbers<[1], [0], [0], [1], [0, 0, 1, 1], [], []>} : vector<16x32xbf16>, vector<32x4xbf16>, vector<16x4xf32> -> vector<16x4xf32>
    %145 = arith.truncf %138 : vector<16x4xf32> to vector<16x4xbf16>
    %146 = arith.truncf %141 : vector<16x4xf32> to vector<16x4xbf16>
    %cst_99 = arith.constant dense<0.000000e+00> : vector<16x16xf32>
    %147 = tpu.matmul %145, %146, %cst_99 {dimension_numbers = #tpu.dot_dimension_numbers<[1], [1], [0], [0], [0, 0, 1, 0], [], []>} : vector<16x4xbf16>, vector<16x4xbf16>, vector<16x16xf32> -> vector<16x16xf32>
    %cst_100 = arith.constant dense<0xFF800000> : vector<16xf32>
    %148 = vector.multi_reduction <maximumf>, %147, %cst_100 [1] : vector<16x16xf32> to vector<16xf32>
    %149 = vector.shape_cast %148 : vector<16xf32> to vector<16x1xf32>
    %150 = vector.broadcast %149 : vector<16x1xf32> to vector<16x16xf32>
    %151 = arith.subf %147, %150 : vector<16x16xf32>
    %152 = math.exp %151 : vector<16x16xf32>
    %cst_101 = arith.constant dense<0.000000e+00> : vector<16xf32>
    %153 = vector.multi_reduction <add>, %152, %cst_101 [1] : vector<16x16xf32> to vector<16xf32>
    %154 = vector.shape_cast %153 : vector<16xf32> to vector<16x1xf32>
    %155 = tpu.reciprocal %154 {approx = true} : vector<16x1xf32> -> vector<16x1xf32>
    %156 = vector.broadcast %155 : vector<16x1xf32> to vector<16x16xf32>
    %157 = arith.mulf %152, %156 : vector<16x16xf32>
    %158 = arith.truncf %157 : vector<16x16xf32> to vector<16x16xbf16>
    %159 = arith.truncf %144 : vector<16x4xf32> to vector<16x4xbf16>
    %cst_102 = arith.constant dense<0.000000e+00> : vector<16x4xf32>
    %160 = tpu.matmul %158, %159, %cst_102 {dimension_numbers = #tpu.dot_dimension_numbers<[1], [0], [0], [1], [0, 0, 1, 1], [], []>} : vector<16x16xbf16>, vector<16x4xbf16>, vector<16x4xf32> -> vector<16x4xf32>
    %161 = arith.truncf %160 : vector<16x4xf32> to vector<16x4xbf16>
    %c0_103 = arith.constant 0 : index
    %c0_104 = arith.constant 0 : index
    %c0_105 = arith.constant 0 : index
    %162 = vector.load %arg12[%c0_103, %c0_104, %c0_105] : memref<4x4x16xbf16, #tpu.memory_space<vmem>>, vector<1x4x16xbf16>
    %163 = vector.shape_cast %162 : vector<1x4x16xbf16> to vector<4x16xbf16>
    %cst_106 = arith.constant dense<0.000000e+00> : vector<16x16xf32>
    %164 = tpu.matmul %161, %163, %cst_106 {dimension_numbers = #tpu.dot_dimension_numbers<[1], [0], [0], [1], [0, 0, 1, 1], [], []>} : vector<16x4xbf16>, vector<4x16xbf16>, vector<16x16xf32> -> vector<16x16xf32>
    %165 = arith.addf %135, %164 : vector<16x16xf32>
    %c1_107 = arith.constant 1 : index
    %c0_108 = arith.constant 0 : index
    %c0_109 = arith.constant 0 : index
    %166 = vector.load %arg9[%c1_107, %c0_108, %c0_109] : memref<4x32x4xbf16, #tpu.memory_space<vmem>>, vector<1x32x4xbf16>
    %167 = vector.shape_cast %166 : vector<1x32x4xbf16> to vector<32x4xbf16>
    %cst_110 = arith.constant dense<0.000000e+00> : vector<16x4xf32>
    %168 = tpu.matmul %5, %167, %cst_110 {dimension_numbers = #tpu.dot_dimension_numbers<[1], [0], [0], [1], [0, 0, 1, 1], [], []>} : vector<16x32xbf16>, vector<32x4xbf16>, vector<16x4xf32> -> vector<16x4xf32>
    %c1_111 = arith.constant 1 : index
    %c0_112 = arith.constant 0 : index
    %c0_113 = arith.constant 0 : index
    %169 = vector.load %arg10[%c1_111, %c0_112, %c0_113] : memref<4x32x4xbf16, #tpu.memory_space<vmem>>, vector<1x32x4xbf16>
    %170 = vector.shape_cast %169 : vector<1x32x4xbf16> to vector<32x4xbf16>
    %cst_114 = arith.constant dense<0.000000e+00> : vector<16x4xf32>
    %171 = tpu.matmul %5, %170, %cst_114 {dimension_numbers = #tpu.dot_dimension_numbers<[1], [0], [0], [1], [0, 0, 1, 1], [], []>} : vector<16x32xbf16>, vector<32x4xbf16>, vector<16x4xf32> -> vector<16x4xf32>
    %c1_115 = arith.constant 1 : index
    %c0_116 = arith.constant 0 : index
    %c0_117 = arith.constant 0 : index
    %172 = vector.load %arg11[%c1_115, %c0_116, %c0_117] : memref<4x32x4xbf16, #tpu.memory_space<vmem>>, vector<1x32x4xbf16>
    %173 = vector.shape_cast %172 : vector<1x32x4xbf16> to vector<32x4xbf16>
    %cst_118 = arith.constant dense<0.000000e+00> : vector<16x4xf32>
    %174 = tpu.matmul %5, %173, %cst_118 {dimension_numbers = #tpu.dot_dimension_numbers<[1], [0], [0], [1], [0, 0, 1, 1], [], []>} : vector<16x32xbf16>, vector<32x4xbf16>, vector<16x4xf32> -> vector<16x4xf32>
    %175 = arith.truncf %168 : vector<16x4xf32> to vector<16x4xbf16>
    %176 = arith.truncf %171 : vector<16x4xf32> to vector<16x4xbf16>
    %cst_119 = arith.constant dense<0.000000e+00> : vector<16x16xf32>
    %177 = tpu.matmul %175, %176, %cst_119 {dimension_numbers = #tpu.dot_dimension_numbers<[1], [1], [0], [0], [0, 0, 1, 0], [], []>} : vector<16x4xbf16>, vector<16x4xbf16>, vector<16x16xf32> -> vector<16x16xf32>
    %cst_120 = arith.constant dense<0xFF800000> : vector<16xf32>
    %178 = vector.multi_reduction <maximumf>, %177, %cst_120 [1] : vector<16x16xf32> to vector<16xf32>
    %179 = vector.shape_cast %178 : vector<16xf32> to vector<16x1xf32>
    %180 = vector.broadcast %179 : vector<16x1xf32> to vector<16x16xf32>
    %181 = arith.subf %177, %180 : vector<16x16xf32>
    %182 = math.exp %181 : vector<16x16xf32>
    %cst_121 = arith.constant dense<0.000000e+00> : vector<16xf32>
    %183 = vector.multi_reduction <add>, %182, %cst_121 [1] : vector<16x16xf32> to vector<16xf32>
    %184 = vector.shape_cast %183 : vector<16xf32> to vector<16x1xf32>
    %185 = tpu.reciprocal %184 {approx = true} : vector<16x1xf32> -> vector<16x1xf32>
    %186 = vector.broadcast %185 : vector<16x1xf32> to vector<16x16xf32>
    %187 = arith.mulf %182, %186 : vector<16x16xf32>
    %188 = arith.truncf %187 : vector<16x16xf32> to vector<16x16xbf16>
    %189 = arith.truncf %174 : vector<16x4xf32> to vector<16x4xbf16>
    %cst_122 = arith.constant dense<0.000000e+00> : vector<16x4xf32>
    %190 = tpu.matmul %188, %189, %cst_122 {dimension_numbers = #tpu.dot_dimension_numbers<[1], [0], [0], [1], [0, 0, 1, 1], [], []>} : vector<16x16xbf16>, vector<16x4xbf16>, vector<16x4xf32> -> vector<16x4xf32>
    %191 = arith.truncf %190 : vector<16x4xf32> to vector<16x4xbf16>
    %c1_123 = arith.constant 1 : index
    %c0_124 = arith.constant 0 : index
    %c0_125 = arith.constant 0 : index
    %192 = vector.load %arg12[%c1_123, %c0_124, %c0_125] : memref<4x4x16xbf16, #tpu.memory_space<vmem>>, vector<1x4x16xbf16>
    %193 = vector.shape_cast %192 : vector<1x4x16xbf16> to vector<4x16xbf16>
    %cst_126 = arith.constant dense<0.000000e+00> : vector<16x16xf32>
    %194 = tpu.matmul %191, %193, %cst_126 {dimension_numbers = #tpu.dot_dimension_numbers<[1], [0], [0], [1], [0, 0, 1, 1], [], []>} : vector<16x4xbf16>, vector<4x16xbf16>, vector<16x16xf32> -> vector<16x16xf32>
    %195 = arith.addf %165, %194 : vector<16x16xf32>
    %c2_127 = arith.constant 2 : index
    %c0_128 = arith.constant 0 : index
    %c0_129 = arith.constant 0 : index
    %196 = vector.load %arg9[%c2_127, %c0_128, %c0_129] : memref<4x32x4xbf16, #tpu.memory_space<vmem>>, vector<1x32x4xbf16>
    %197 = vector.shape_cast %196 : vector<1x32x4xbf16> to vector<32x4xbf16>
    %cst_130 = arith.constant dense<0.000000e+00> : vector<16x4xf32>
    %198 = tpu.matmul %5, %197, %cst_130 {dimension_numbers = #tpu.dot_dimension_numbers<[1], [0], [0], [1], [0, 0, 1, 1], [], []>} : vector<16x32xbf16>, vector<32x4xbf16>, vector<16x4xf32> -> vector<16x4xf32>
    %c2_131 = arith.constant 2 : index
    %c0_132 = arith.constant 0 : index
    %c0_133 = arith.constant 0 : index
    %199 = vector.load %arg10[%c2_131, %c0_132, %c0_133] : memref<4x32x4xbf16, #tpu.memory_space<vmem>>, vector<1x32x4xbf16>
    %200 = vector.shape_cast %199 : vector<1x32x4xbf16> to vector<32x4xbf16>
    %cst_134 = arith.constant dense<0.000000e+00> : vector<16x4xf32>
    %201 = tpu.matmul %5, %200, %cst_134 {dimension_numbers = #tpu.dot_dimension_numbers<[1], [0], [0], [1], [0, 0, 1, 1], [], []>} : vector<16x32xbf16>, vector<32x4xbf16>, vector<16x4xf32> -> vector<16x4xf32>
    %c2_135 = arith.constant 2 : index
    %c0_136 = arith.constant 0 : index
    %c0_137 = arith.constant 0 : index
    %202 = vector.load %arg11[%c2_135, %c0_136, %c0_137] : memref<4x32x4xbf16, #tpu.memory_space<vmem>>, vector<1x32x4xbf16>
    %203 = vector.shape_cast %202 : vector<1x32x4xbf16> to vector<32x4xbf16>
    %cst_138 = arith.constant dense<0.000000e+00> : vector<16x4xf32>
    %204 = tpu.matmul %5, %203, %cst_138 {dimension_numbers = #tpu.dot_dimension_numbers<[1], [0], [0], [1], [0, 0, 1, 1], [], []>} : vector<16x32xbf16>, vector<32x4xbf16>, vector<16x4xf32> -> vector<16x4xf32>
    %205 = arith.truncf %198 : vector<16x4xf32> to vector<16x4xbf16>
    %206 = arith.truncf %201 : vector<16x4xf32> to vector<16x4xbf16>
    %cst_139 = arith.constant dense<0.000000e+00> : vector<16x16xf32>
    %207 = tpu.matmul %205, %206, %cst_139 {dimension_numbers = #tpu.dot_dimension_numbers<[1], [1], [0], [0], [0, 0, 1, 0], [], []>} : vector<16x4xbf16>, vector<16x4xbf16>, vector<16x16xf32> -> vector<16x16xf32>
    %cst_140 = arith.constant dense<0xFF800000> : vector<16xf32>
    %208 = vector.multi_reduction <maximumf>, %207, %cst_140 [1] : vector<16x16xf32> to vector<16xf32>
    %209 = vector.shape_cast %208 : vector<16xf32> to vector<16x1xf32>
    %210 = vector.broadcast %209 : vector<16x1xf32> to vector<16x16xf32>
    %211 = arith.subf %207, %210 : vector<16x16xf32>
    %212 = math.exp %211 : vector<16x16xf32>
    %cst_141 = arith.constant dense<0.000000e+00> : vector<16xf32>
    %213 = vector.multi_reduction <add>, %212, %cst_141 [1] : vector<16x16xf32> to vector<16xf32>
    %214 = vector.shape_cast %213 : vector<16xf32> to vector<16x1xf32>
    %215 = tpu.reciprocal %214 {approx = true} : vector<16x1xf32> -> vector<16x1xf32>
    %216 = vector.broadcast %215 : vector<16x1xf32> to vector<16x16xf32>
    %217 = arith.mulf %212, %216 : vector<16x16xf32>
    %218 = arith.truncf %217 : vector<16x16xf32> to vector<16x16xbf16>
    %219 = arith.truncf %204 : vector<16x4xf32> to vector<16x4xbf16>
    %cst_142 = arith.constant dense<0.000000e+00> : vector<16x4xf32>
    %220 = tpu.matmul %218, %219, %cst_142 {dimension_numbers = #tpu.dot_dimension_numbers<[1], [0], [0], [1], [0, 0, 1, 1], [], []>} : vector<16x16xbf16>, vector<16x4xbf16>, vector<16x4xf32> -> vector<16x4xf32>
    %221 = arith.truncf %220 : vector<16x4xf32> to vector<16x4xbf16>
    %c2_143 = arith.constant 2 : index
    %c0_144 = arith.constant 0 : index
    %c0_145 = arith.constant 0 : index
    %222 = vector.load %arg12[%c2_143, %c0_144, %c0_145] : memref<4x4x16xbf16, #tpu.memory_space<vmem>>, vector<1x4x16xbf16>
    %223 = vector.shape_cast %222 : vector<1x4x16xbf16> to vector<4x16xbf16>
    %cst_146 = arith.constant dense<0.000000e+00> : vector<16x16xf32>
    %224 = tpu.matmul %221, %223, %cst_146 {dimension_numbers = #tpu.dot_dimension_numbers<[1], [0], [0], [1], [0, 0, 1, 1], [], []>} : vector<16x4xbf16>, vector<4x16xbf16>, vector<16x16xf32> -> vector<16x16xf32>
    %225 = arith.addf %195, %224 : vector<16x16xf32>
    %c3_147 = arith.constant 3 : index
    %c0_148 = arith.constant 0 : index
    %c0_149 = arith.constant 0 : index
    %226 = vector.load %arg9[%c3_147, %c0_148, %c0_149] : memref<4x32x4xbf16, #tpu.memory_space<vmem>>, vector<1x32x4xbf16>
    %227 = vector.shape_cast %226 : vector<1x32x4xbf16> to vector<32x4xbf16>
    %cst_150 = arith.constant dense<0.000000e+00> : vector<16x4xf32>
    %228 = tpu.matmul %5, %227, %cst_150 {dimension_numbers = #tpu.dot_dimension_numbers<[1], [0], [0], [1], [0, 0, 1, 1], [], []>} : vector<16x32xbf16>, vector<32x4xbf16>, vector<16x4xf32> -> vector<16x4xf32>
    %c3_151 = arith.constant 3 : index
    %c0_152 = arith.constant 0 : index
    %c0_153 = arith.constant 0 : index
    %229 = vector.load %arg10[%c3_151, %c0_152, %c0_153] : memref<4x32x4xbf16, #tpu.memory_space<vmem>>, vector<1x32x4xbf16>
    %230 = vector.shape_cast %229 : vector<1x32x4xbf16> to vector<32x4xbf16>
    %cst_154 = arith.constant dense<0.000000e+00> : vector<16x4xf32>
    %231 = tpu.matmul %5, %230, %cst_154 {dimension_numbers = #tpu.dot_dimension_numbers<[1], [0], [0], [1], [0, 0, 1, 1], [], []>} : vector<16x32xbf16>, vector<32x4xbf16>, vector<16x4xf32> -> vector<16x4xf32>
    %c3_155 = arith.constant 3 : index
    %c0_156 = arith.constant 0 : index
    %c0_157 = arith.constant 0 : index
    %232 = vector.load %arg11[%c3_155, %c0_156, %c0_157] : memref<4x32x4xbf16, #tpu.memory_space<vmem>>, vector<1x32x4xbf16>
    %233 = vector.shape_cast %232 : vector<1x32x4xbf16> to vector<32x4xbf16>
    %cst_158 = arith.constant dense<0.000000e+00> : vector<16x4xf32>
    %234 = tpu.matmul %5, %233, %cst_158 {dimension_numbers = #tpu.dot_dimension_numbers<[1], [0], [0], [1], [0, 0, 1, 1], [], []>} : vector<16x32xbf16>, vector<32x4xbf16>, vector<16x4xf32> -> vector<16x4xf32>
    %235 = arith.truncf %228 : vector<16x4xf32> to vector<16x4xbf16>
    %236 = arith.truncf %231 : vector<16x4xf32> to vector<16x4xbf16>
    %cst_159 = arith.constant dense<0.000000e+00> : vector<16x16xf32>
    %237 = tpu.matmul %235, %236, %cst_159 {dimension_numbers = #tpu.dot_dimension_numbers<[1], [1], [0], [0], [0, 0, 1, 0], [], []>} : vector<16x4xbf16>, vector<16x4xbf16>, vector<16x16xf32> -> vector<16x16xf32>
    %cst_160 = arith.constant dense<0xFF800000> : vector<16xf32>
    %238 = vector.multi_reduction <maximumf>, %237, %cst_160 [1] : vector<16x16xf32> to vector<16xf32>
    %239 = vector.shape_cast %238 : vector<16xf32> to vector<16x1xf32>
    %240 = vector.broadcast %239 : vector<16x1xf32> to vector<16x16xf32>
    %241 = arith.subf %237, %240 : vector<16x16xf32>
    %242 = math.exp %241 : vector<16x16xf32>
    %cst_161 = arith.constant dense<0.000000e+00> : vector<16xf32>
    %243 = vector.multi_reduction <add>, %242, %cst_161 [1] : vector<16x16xf32> to vector<16xf32>
    %244 = vector.shape_cast %243 : vector<16xf32> to vector<16x1xf32>
    %245 = tpu.reciprocal %244 {approx = true} : vector<16x1xf32> -> vector<16x1xf32>
    %246 = vector.broadcast %245 : vector<16x1xf32> to vector<16x16xf32>
    %247 = arith.mulf %242, %246 : vector<16x16xf32>
    %248 = arith.truncf %247 : vector<16x16xf32> to vector<16x16xbf16>
    %249 = arith.truncf %234 : vector<16x4xf32> to vector<16x4xbf16>
    %cst_162 = arith.constant dense<0.000000e+00> : vector<16x4xf32>
    %250 = tpu.matmul %248, %249, %cst_162 {dimension_numbers = #tpu.dot_dimension_numbers<[1], [0], [0], [1], [0, 0, 1, 1], [], []>} : vector<16x16xbf16>, vector<16x4xbf16>, vector<16x4xf32> -> vector<16x4xf32>
    %251 = arith.truncf %250 : vector<16x4xf32> to vector<16x4xbf16>
    %c3_163 = arith.constant 3 : index
    %c0_164 = arith.constant 0 : index
    %c0_165 = arith.constant 0 : index
    %252 = vector.load %arg12[%c3_163, %c0_164, %c0_165] : memref<4x4x16xbf16, #tpu.memory_space<vmem>>, vector<1x4x16xbf16>
    %253 = vector.shape_cast %252 : vector<1x4x16xbf16> to vector<4x16xbf16>
    %cst_166 = arith.constant dense<0.000000e+00> : vector<16x16xf32>
    %254 = tpu.matmul %251, %253, %cst_166 {dimension_numbers = #tpu.dot_dimension_numbers<[1], [0], [0], [1], [0, 0, 1, 1], [], []>} : vector<16x4xbf16>, vector<4x16xbf16>, vector<16x16xf32> -> vector<16x16xf32>
    %255 = arith.addf %225, %254 : vector<16x16xf32>
    %c0_167 = arith.constant 0 : index
    %c0_168 = arith.constant 0 : index
    %256 = vector.load %arg13[%c0_167, %c0_168] : memref<1x16xf32, #tpu.memory_space<vmem>>, vector<1x16xf32>
    %257 = vector.broadcast %256 : vector<1x16xf32> to vector<16x16xf32>
    %258 = arith.addf %255, %257 : vector<16x16xf32>
    %259 = tpu.concatenate %134, %258 in 1 : vector<16x16xf32>, vector<16x16xf32> -> vector<16x32xf32>
    %260 = arith.truncf %259 : vector<16x32xf32> to vector<16x32xbf16>
    %cst_169 = arith.constant 0.000000e+00 : f32
    %261 = vector.broadcast %cst_169 : f32 to vector<16x32xf32>
    %c0_170 = arith.constant 0 : index
    %c0_171 = arith.constant 0 : index
    %c0_172 = arith.constant 0 : index
    %262 = vector.load %arg14[%c0_170, %c0_171, %c0_172] : memref<8x32x4xbf16, #tpu.memory_space<vmem>>, vector<1x32x4xbf16>
    %263 = vector.shape_cast %262 : vector<1x32x4xbf16> to vector<32x4xbf16>
    %cst_173 = arith.constant dense<0.000000e+00> : vector<16x4xf32>
    %264 = tpu.matmul %260, %263, %cst_173 {dimension_numbers = #tpu.dot_dimension_numbers<[1], [0], [0], [1], [0, 0, 1, 1], [], []>} : vector<16x32xbf16>, vector<32x4xbf16>, vector<16x4xf32> -> vector<16x4xf32>
    %c0_174 = arith.constant 0 : index
    %c0_175 = arith.constant 0 : index
    %c0_176 = arith.constant 0 : index
    %265 = vector.load %arg16[%c0_174, %c0_175, %c0_176] : memref<8x32x4xbf16, #tpu.memory_space<vmem>>, vector<1x32x4xbf16>
    %266 = vector.shape_cast %265 : vector<1x32x4xbf16> to vector<32x4xbf16>
    %cst_177 = arith.constant dense<0.000000e+00> : vector<16x4xf32>
    %267 = tpu.matmul %260, %266, %cst_177 {dimension_numbers = #tpu.dot_dimension_numbers<[1], [0], [0], [1], [0, 0, 1, 1], [], []>} : vector<16x32xbf16>, vector<32x4xbf16>, vector<16x4xf32> -> vector<16x4xf32>
    %c0_178 = arith.constant 0 : index
    %c0_179 = arith.constant 0 : index
    %c0_180 = arith.constant 0 : index
    %268 = vector.load %arg18[%c0_178, %c0_179, %c0_180] : memref<8x32x4xbf16, #tpu.memory_space<vmem>>, vector<1x32x4xbf16>
    %269 = vector.shape_cast %268 : vector<1x32x4xbf16> to vector<32x4xbf16>
    %cst_181 = arith.constant dense<0.000000e+00> : vector<16x4xf32>
    %270 = tpu.matmul %260, %269, %cst_181 {dimension_numbers = #tpu.dot_dimension_numbers<[1], [0], [0], [1], [0, 0, 1, 1], [], []>} : vector<16x32xbf16>, vector<32x4xbf16>, vector<16x4xf32> -> vector<16x4xf32>
    %c0_182 = arith.constant 0 : index
    %c0_183 = arith.constant 0 : index
    %c0_184 = arith.constant 0 : index
    %271 = vector.load %arg15[%c0_182, %c0_183, %c0_184] : memref<8x1x4xf32, #tpu.memory_space<vmem>>, vector<1x1x4xf32>
    %272 = vector.shape_cast %271 : vector<1x1x4xf32> to vector<1x4xf32>
    %273 = vector.broadcast %272 : vector<1x4xf32> to vector<16x4xf32>
    %274 = arith.addf %264, %273 : vector<16x4xf32>
    %c0_185 = arith.constant 0 : index
    %c0_186 = arith.constant 0 : index
    %c0_187 = arith.constant 0 : index
    %275 = vector.load %arg17[%c0_185, %c0_186, %c0_187] : memref<8x1x4xf32, #tpu.memory_space<vmem>>, vector<1x1x4xf32>
    %276 = vector.shape_cast %275 : vector<1x1x4xf32> to vector<1x4xf32>
    %277 = vector.broadcast %276 : vector<1x4xf32> to vector<16x4xf32>
    %278 = arith.addf %267, %277 : vector<16x4xf32>
    %c0_188 = arith.constant 0 : index
    %c0_189 = arith.constant 0 : index
    %c0_190 = arith.constant 0 : index
    %279 = vector.load %arg19[%c0_188, %c0_189, %c0_190] : memref<8x1x4xf32, #tpu.memory_space<vmem>>, vector<1x1x4xf32>
    %280 = vector.shape_cast %279 : vector<1x1x4xf32> to vector<1x4xf32>
    %281 = vector.broadcast %280 : vector<1x4xf32> to vector<16x4xf32>
    %282 = arith.addf %270, %281 : vector<16x4xf32>
    %283 = arith.truncf %274 : vector<16x4xf32> to vector<16x4xbf16>
    %284 = arith.truncf %278 : vector<16x4xf32> to vector<16x4xbf16>
    %cst_191 = arith.constant dense<0.000000e+00> : vector<16x16xf32>
    %285 = tpu.matmul %283, %284, %cst_191 {dimension_numbers = #tpu.dot_dimension_numbers<[1], [1], [0], [0], [0, 0, 1, 0], [], []>} : vector<16x4xbf16>, vector<16x4xbf16>, vector<16x16xf32> -> vector<16x16xf32>
    %cst_192 = arith.constant dense<0xFF800000> : vector<16xf32>
    %286 = vector.multi_reduction <maximumf>, %285, %cst_192 [1] : vector<16x16xf32> to vector<16xf32>
    %287 = vector.shape_cast %286 : vector<16xf32> to vector<16x1xf32>
    %288 = vector.broadcast %287 : vector<16x1xf32> to vector<16x16xf32>
    %289 = arith.subf %285, %288 : vector<16x16xf32>
    %290 = math.exp %289 : vector<16x16xf32>
    %cst_193 = arith.constant dense<0.000000e+00> : vector<16xf32>
    %291 = vector.multi_reduction <add>, %290, %cst_193 [1] : vector<16x16xf32> to vector<16xf32>
    %292 = vector.shape_cast %291 : vector<16xf32> to vector<16x1xf32>
    %293 = tpu.reciprocal %292 {approx = true} : vector<16x1xf32> -> vector<16x1xf32>
    %294 = vector.broadcast %293 : vector<16x1xf32> to vector<16x16xf32>
    %295 = arith.mulf %290, %294 : vector<16x16xf32>
    %296 = arith.truncf %295 : vector<16x16xf32> to vector<16x16xbf16>
    %297 = arith.truncf %282 : vector<16x4xf32> to vector<16x4xbf16>
    %cst_194 = arith.constant dense<0.000000e+00> : vector<16x4xf32>
    %298 = tpu.matmul %296, %297, %cst_194 {dimension_numbers = #tpu.dot_dimension_numbers<[1], [0], [0], [1], [0, 0, 1, 1], [], []>} : vector<16x16xbf16>, vector<16x4xbf16>, vector<16x4xf32> -> vector<16x4xf32>
    %299 = arith.truncf %298 : vector<16x4xf32> to vector<16x4xbf16>
    %c0_195 = arith.constant 0 : index
    %c0_196 = arith.constant 0 : index
    %c0_197 = arith.constant 0 : index
    %300 = vector.load %arg20[%c0_195, %c0_196, %c0_197] : memref<8x4x32xbf16, #tpu.memory_space<vmem>>, vector<1x4x32xbf16>
    %301 = vector.shape_cast %300 : vector<1x4x32xbf16> to vector<4x32xbf16>
    %cst_198 = arith.constant dense<0.000000e+00> : vector<16x32xf32>
    %302 = tpu.matmul %299, %301, %cst_198 {dimension_numbers = #tpu.dot_dimension_numbers<[1], [0], [0], [1], [0, 0, 1, 1], [], []>} : vector<16x4xbf16>, vector<4x32xbf16>, vector<16x32xf32> -> vector<16x32xf32>
    %303 = arith.addf %261, %302 : vector<16x32xf32>
    %c1_199 = arith.constant 1 : index
    %c0_200 = arith.constant 0 : index
    %c0_201 = arith.constant 0 : index
    %304 = vector.load %arg14[%c1_199, %c0_200, %c0_201] : memref<8x32x4xbf16, #tpu.memory_space<vmem>>, vector<1x32x4xbf16>
    %305 = vector.shape_cast %304 : vector<1x32x4xbf16> to vector<32x4xbf16>
    %cst_202 = arith.constant dense<0.000000e+00> : vector<16x4xf32>
    %306 = tpu.matmul %260, %305, %cst_202 {dimension_numbers = #tpu.dot_dimension_numbers<[1], [0], [0], [1], [0, 0, 1, 1], [], []>} : vector<16x32xbf16>, vector<32x4xbf16>, vector<16x4xf32> -> vector<16x4xf32>
    %c1_203 = arith.constant 1 : index
    %c0_204 = arith.constant 0 : index
    %c0_205 = arith.constant 0 : index
    %307 = vector.load %arg16[%c1_203, %c0_204, %c0_205] : memref<8x32x4xbf16, #tpu.memory_space<vmem>>, vector<1x32x4xbf16>
    %308 = vector.shape_cast %307 : vector<1x32x4xbf16> to vector<32x4xbf16>
    %cst_206 = arith.constant dense<0.000000e+00> : vector<16x4xf32>
    %309 = tpu.matmul %260, %308, %cst_206 {dimension_numbers = #tpu.dot_dimension_numbers<[1], [0], [0], [1], [0, 0, 1, 1], [], []>} : vector<16x32xbf16>, vector<32x4xbf16>, vector<16x4xf32> -> vector<16x4xf32>
    %c1_207 = arith.constant 1 : index
    %c0_208 = arith.constant 0 : index
    %c0_209 = arith.constant 0 : index
    %310 = vector.load %arg18[%c1_207, %c0_208, %c0_209] : memref<8x32x4xbf16, #tpu.memory_space<vmem>>, vector<1x32x4xbf16>
    %311 = vector.shape_cast %310 : vector<1x32x4xbf16> to vector<32x4xbf16>
    %cst_210 = arith.constant dense<0.000000e+00> : vector<16x4xf32>
    %312 = tpu.matmul %260, %311, %cst_210 {dimension_numbers = #tpu.dot_dimension_numbers<[1], [0], [0], [1], [0, 0, 1, 1], [], []>} : vector<16x32xbf16>, vector<32x4xbf16>, vector<16x4xf32> -> vector<16x4xf32>
    %c1_211 = arith.constant 1 : index
    %c0_212 = arith.constant 0 : index
    %c0_213 = arith.constant 0 : index
    %313 = vector.load %arg15[%c1_211, %c0_212, %c0_213] : memref<8x1x4xf32, #tpu.memory_space<vmem>>, vector<1x1x4xf32>
    %314 = vector.shape_cast %313 : vector<1x1x4xf32> to vector<1x4xf32>
    %315 = vector.broadcast %314 : vector<1x4xf32> to vector<16x4xf32>
    %316 = arith.addf %306, %315 : vector<16x4xf32>
    %c1_214 = arith.constant 1 : index
    %c0_215 = arith.constant 0 : index
    %c0_216 = arith.constant 0 : index
    %317 = vector.load %arg17[%c1_214, %c0_215, %c0_216] : memref<8x1x4xf32, #tpu.memory_space<vmem>>, vector<1x1x4xf32>
    %318 = vector.shape_cast %317 : vector<1x1x4xf32> to vector<1x4xf32>
    %319 = vector.broadcast %318 : vector<1x4xf32> to vector<16x4xf32>
    %320 = arith.addf %309, %319 : vector<16x4xf32>
    %c1_217 = arith.constant 1 : index
    %c0_218 = arith.constant 0 : index
    %c0_219 = arith.constant 0 : index
    %321 = vector.load %arg19[%c1_217, %c0_218, %c0_219] : memref<8x1x4xf32, #tpu.memory_space<vmem>>, vector<1x1x4xf32>
    %322 = vector.shape_cast %321 : vector<1x1x4xf32> to vector<1x4xf32>
    %323 = vector.broadcast %322 : vector<1x4xf32> to vector<16x4xf32>
    %324 = arith.addf %312, %323 : vector<16x4xf32>
    %325 = arith.truncf %316 : vector<16x4xf32> to vector<16x4xbf16>
    %326 = arith.truncf %320 : vector<16x4xf32> to vector<16x4xbf16>
    %cst_220 = arith.constant dense<0.000000e+00> : vector<16x16xf32>
    %327 = tpu.matmul %325, %326, %cst_220 {dimension_numbers = #tpu.dot_dimension_numbers<[1], [1], [0], [0], [0, 0, 1, 0], [], []>} : vector<16x4xbf16>, vector<16x4xbf16>, vector<16x16xf32> -> vector<16x16xf32>
    %cst_221 = arith.constant dense<0xFF800000> : vector<16xf32>
    %328 = vector.multi_reduction <maximumf>, %327, %cst_221 [1] : vector<16x16xf32> to vector<16xf32>
    %329 = vector.shape_cast %328 : vector<16xf32> to vector<16x1xf32>
    %330 = vector.broadcast %329 : vector<16x1xf32> to vector<16x16xf32>
    %331 = arith.subf %327, %330 : vector<16x16xf32>
    %332 = math.exp %331 : vector<16x16xf32>
    %cst_222 = arith.constant dense<0.000000e+00> : vector<16xf32>
    %333 = vector.multi_reduction <add>, %332, %cst_222 [1] : vector<16x16xf32> to vector<16xf32>
    %334 = vector.shape_cast %333 : vector<16xf32> to vector<16x1xf32>
    %335 = tpu.reciprocal %334 {approx = true} : vector<16x1xf32> -> vector<16x1xf32>
    %336 = vector.broadcast %335 : vector<16x1xf32> to vector<16x16xf32>
    %337 = arith.mulf %332, %336 : vector<16x16xf32>
    %338 = arith.truncf %337 : vector<16x16xf32> to vector<16x16xbf16>
    %339 = arith.truncf %324 : vector<16x4xf32> to vector<16x4xbf16>
    %cst_223 = arith.constant dense<0.000000e+00> : vector<16x4xf32>
    %340 = tpu.matmul %338, %339, %cst_223 {dimension_numbers = #tpu.dot_dimension_numbers<[1], [0], [0], [1], [0, 0, 1, 1], [], []>} : vector<16x16xbf16>, vector<16x4xbf16>, vector<16x4xf32> -> vector<16x4xf32>
    %341 = arith.truncf %340 : vector<16x4xf32> to vector<16x4xbf16>
    %c1_224 = arith.constant 1 : index
    %c0_225 = arith.constant 0 : index
    %c0_226 = arith.constant 0 : index
    %342 = vector.load %arg20[%c1_224, %c0_225, %c0_226] : memref<8x4x32xbf16, #tpu.memory_space<vmem>>, vector<1x4x32xbf16>
    %343 = vector.shape_cast %342 : vector<1x4x32xbf16> to vector<4x32xbf16>
    %cst_227 = arith.constant dense<0.000000e+00> : vector<16x32xf32>
    %344 = tpu.matmul %341, %343, %cst_227 {dimension_numbers = #tpu.dot_dimension_numbers<[1], [0], [0], [1], [0, 0, 1, 1], [], []>} : vector<16x4xbf16>, vector<4x32xbf16>, vector<16x32xf32> -> vector<16x32xf32>
    %345 = arith.addf %303, %344 : vector<16x32xf32>
    %c2_228 = arith.constant 2 : index
    %c0_229 = arith.constant 0 : index
    %c0_230 = arith.constant 0 : index
    %346 = vector.load %arg14[%c2_228, %c0_229, %c0_230] : memref<8x32x4xbf16, #tpu.memory_space<vmem>>, vector<1x32x4xbf16>
    %347 = vector.shape_cast %346 : vector<1x32x4xbf16> to vector<32x4xbf16>
    %cst_231 = arith.constant dense<0.000000e+00> : vector<16x4xf32>
    %348 = tpu.matmul %260, %347, %cst_231 {dimension_numbers = #tpu.dot_dimension_numbers<[1], [0], [0], [1], [0, 0, 1, 1], [], []>} : vector<16x32xbf16>, vector<32x4xbf16>, vector<16x4xf32> -> vector<16x4xf32>
    %c2_232 = arith.constant 2 : index
    %c0_233 = arith.constant 0 : index
    %c0_234 = arith.constant 0 : index
    %349 = vector.load %arg16[%c2_232, %c0_233, %c0_234] : memref<8x32x4xbf16, #tpu.memory_space<vmem>>, vector<1x32x4xbf16>
    %350 = vector.shape_cast %349 : vector<1x32x4xbf16> to vector<32x4xbf16>
    %cst_235 = arith.constant dense<0.000000e+00> : vector<16x4xf32>
    %351 = tpu.matmul %260, %350, %cst_235 {dimension_numbers = #tpu.dot_dimension_numbers<[1], [0], [0], [1], [0, 0, 1, 1], [], []>} : vector<16x32xbf16>, vector<32x4xbf16>, vector<16x4xf32> -> vector<16x4xf32>
    %c2_236 = arith.constant 2 : index
    %c0_237 = arith.constant 0 : index
    %c0_238 = arith.constant 0 : index
    %352 = vector.load %arg18[%c2_236, %c0_237, %c0_238] : memref<8x32x4xbf16, #tpu.memory_space<vmem>>, vector<1x32x4xbf16>
    %353 = vector.shape_cast %352 : vector<1x32x4xbf16> to vector<32x4xbf16>
    %cst_239 = arith.constant dense<0.000000e+00> : vector<16x4xf32>
    %354 = tpu.matmul %260, %353, %cst_239 {dimension_numbers = #tpu.dot_dimension_numbers<[1], [0], [0], [1], [0, 0, 1, 1], [], []>} : vector<16x32xbf16>, vector<32x4xbf16>, vector<16x4xf32> -> vector<16x4xf32>
    %c2_240 = arith.constant 2 : index
    %c0_241 = arith.constant 0 : index
    %c0_242 = arith.constant 0 : index
    %355 = vector.load %arg15[%c2_240, %c0_241, %c0_242] : memref<8x1x4xf32, #tpu.memory_space<vmem>>, vector<1x1x4xf32>
    %356 = vector.shape_cast %355 : vector<1x1x4xf32> to vector<1x4xf32>
    %357 = vector.broadcast %356 : vector<1x4xf32> to vector<16x4xf32>
    %358 = arith.addf %348, %357 : vector<16x4xf32>
    %c2_243 = arith.constant 2 : index
    %c0_244 = arith.constant 0 : index
    %c0_245 = arith.constant 0 : index
    %359 = vector.load %arg17[%c2_243, %c0_244, %c0_245] : memref<8x1x4xf32, #tpu.memory_space<vmem>>, vector<1x1x4xf32>
    %360 = vector.shape_cast %359 : vector<1x1x4xf32> to vector<1x4xf32>
    %361 = vector.broadcast %360 : vector<1x4xf32> to vector<16x4xf32>
    %362 = arith.addf %351, %361 : vector<16x4xf32>
    %c2_246 = arith.constant 2 : index
    %c0_247 = arith.constant 0 : index
    %c0_248 = arith.constant 0 : index
    %363 = vector.load %arg19[%c2_246, %c0_247, %c0_248] : memref<8x1x4xf32, #tpu.memory_space<vmem>>, vector<1x1x4xf32>
    %364 = vector.shape_cast %363 : vector<1x1x4xf32> to vector<1x4xf32>
    %365 = vector.broadcast %364 : vector<1x4xf32> to vector<16x4xf32>
    %366 = arith.addf %354, %365 : vector<16x4xf32>
    %367 = arith.truncf %358 : vector<16x4xf32> to vector<16x4xbf16>
    %368 = arith.truncf %362 : vector<16x4xf32> to vector<16x4xbf16>
    %cst_249 = arith.constant dense<0.000000e+00> : vector<16x16xf32>
    %369 = tpu.matmul %367, %368, %cst_249 {dimension_numbers = #tpu.dot_dimension_numbers<[1], [1], [0], [0], [0, 0, 1, 0], [], []>} : vector<16x4xbf16>, vector<16x4xbf16>, vector<16x16xf32> -> vector<16x16xf32>
    %cst_250 = arith.constant dense<0xFF800000> : vector<16xf32>
    %370 = vector.multi_reduction <maximumf>, %369, %cst_250 [1] : vector<16x16xf32> to vector<16xf32>
    %371 = vector.shape_cast %370 : vector<16xf32> to vector<16x1xf32>
    %372 = vector.broadcast %371 : vector<16x1xf32> to vector<16x16xf32>
    %373 = arith.subf %369, %372 : vector<16x16xf32>
    %374 = math.exp %373 : vector<16x16xf32>
    %cst_251 = arith.constant dense<0.000000e+00> : vector<16xf32>
    %375 = vector.multi_reduction <add>, %374, %cst_251 [1] : vector<16x16xf32> to vector<16xf32>
    %376 = vector.shape_cast %375 : vector<16xf32> to vector<16x1xf32>
    %377 = tpu.reciprocal %376 {approx = true} : vector<16x1xf32> -> vector<16x1xf32>
    %378 = vector.broadcast %377 : vector<16x1xf32> to vector<16x16xf32>
    %379 = arith.mulf %374, %378 : vector<16x16xf32>
    %380 = arith.truncf %379 : vector<16x16xf32> to vector<16x16xbf16>
    %381 = arith.truncf %366 : vector<16x4xf32> to vector<16x4xbf16>
    %cst_252 = arith.constant dense<0.000000e+00> : vector<16x4xf32>
    %382 = tpu.matmul %380, %381, %cst_252 {dimension_numbers = #tpu.dot_dimension_numbers<[1], [0], [0], [1], [0, 0, 1, 1], [], []>} : vector<16x16xbf16>, vector<16x4xbf16>, vector<16x4xf32> -> vector<16x4xf32>
    %383 = arith.truncf %382 : vector<16x4xf32> to vector<16x4xbf16>
    %c2_253 = arith.constant 2 : index
    %c0_254 = arith.constant 0 : index
    %c0_255 = arith.constant 0 : index
    %384 = vector.load %arg20[%c2_253, %c0_254, %c0_255] : memref<8x4x32xbf16, #tpu.memory_space<vmem>>, vector<1x4x32xbf16>
    %385 = vector.shape_cast %384 : vector<1x4x32xbf16> to vector<4x32xbf16>
    %cst_256 = arith.constant dense<0.000000e+00> : vector<16x32xf32>
    %386 = tpu.matmul %383, %385, %cst_256 {dimension_numbers = #tpu.dot_dimension_numbers<[1], [0], [0], [1], [0, 0, 1, 1], [], []>} : vector<16x4xbf16>, vector<4x32xbf16>, vector<16x32xf32> -> vector<16x32xf32>
    %387 = arith.addf %345, %386 : vector<16x32xf32>
    %c3_257 = arith.constant 3 : index
    %c0_258 = arith.constant 0 : index
    %c0_259 = arith.constant 0 : index
    %388 = vector.load %arg14[%c3_257, %c0_258, %c0_259] : memref<8x32x4xbf16, #tpu.memory_space<vmem>>, vector<1x32x4xbf16>
    %389 = vector.shape_cast %388 : vector<1x32x4xbf16> to vector<32x4xbf16>
    %cst_260 = arith.constant dense<0.000000e+00> : vector<16x4xf32>
    %390 = tpu.matmul %260, %389, %cst_260 {dimension_numbers = #tpu.dot_dimension_numbers<[1], [0], [0], [1], [0, 0, 1, 1], [], []>} : vector<16x32xbf16>, vector<32x4xbf16>, vector<16x4xf32> -> vector<16x4xf32>
    %c3_261 = arith.constant 3 : index
    %c0_262 = arith.constant 0 : index
    %c0_263 = arith.constant 0 : index
    %391 = vector.load %arg16[%c3_261, %c0_262, %c0_263] : memref<8x32x4xbf16, #tpu.memory_space<vmem>>, vector<1x32x4xbf16>
    %392 = vector.shape_cast %391 : vector<1x32x4xbf16> to vector<32x4xbf16>
    %cst_264 = arith.constant dense<0.000000e+00> : vector<16x4xf32>
    %393 = tpu.matmul %260, %392, %cst_264 {dimension_numbers = #tpu.dot_dimension_numbers<[1], [0], [0], [1], [0, 0, 1, 1], [], []>} : vector<16x32xbf16>, vector<32x4xbf16>, vector<16x4xf32> -> vector<16x4xf32>
    %c3_265 = arith.constant 3 : index
    %c0_266 = arith.constant 0 : index
    %c0_267 = arith.constant 0 : index
    %394 = vector.load %arg18[%c3_265, %c0_266, %c0_267] : memref<8x32x4xbf16, #tpu.memory_space<vmem>>, vector<1x32x4xbf16>
    %395 = vector.shape_cast %394 : vector<1x32x4xbf16> to vector<32x4xbf16>
    %cst_268 = arith.constant dense<0.000000e+00> : vector<16x4xf32>
    %396 = tpu.matmul %260, %395, %cst_268 {dimension_numbers = #tpu.dot_dimension_numbers<[1], [0], [0], [1], [0, 0, 1, 1], [], []>} : vector<16x32xbf16>, vector<32x4xbf16>, vector<16x4xf32> -> vector<16x4xf32>
    %c3_269 = arith.constant 3 : index
    %c0_270 = arith.constant 0 : index
    %c0_271 = arith.constant 0 : index
    %397 = vector.load %arg15[%c3_269, %c0_270, %c0_271] : memref<8x1x4xf32, #tpu.memory_space<vmem>>, vector<1x1x4xf32>
    %398 = vector.shape_cast %397 : vector<1x1x4xf32> to vector<1x4xf32>
    %399 = vector.broadcast %398 : vector<1x4xf32> to vector<16x4xf32>
    %400 = arith.addf %390, %399 : vector<16x4xf32>
    %c3_272 = arith.constant 3 : index
    %c0_273 = arith.constant 0 : index
    %c0_274 = arith.constant 0 : index
    %401 = vector.load %arg17[%c3_272, %c0_273, %c0_274] : memref<8x1x4xf32, #tpu.memory_space<vmem>>, vector<1x1x4xf32>
    %402 = vector.shape_cast %401 : vector<1x1x4xf32> to vector<1x4xf32>
    %403 = vector.broadcast %402 : vector<1x4xf32> to vector<16x4xf32>
    %404 = arith.addf %393, %403 : vector<16x4xf32>
    %c3_275 = arith.constant 3 : index
    %c0_276 = arith.constant 0 : index
    %c0_277 = arith.constant 0 : index
    %405 = vector.load %arg19[%c3_275, %c0_276, %c0_277] : memref<8x1x4xf32, #tpu.memory_space<vmem>>, vector<1x1x4xf32>
    %406 = vector.shape_cast %405 : vector<1x1x4xf32> to vector<1x4xf32>
    %407 = vector.broadcast %406 : vector<1x4xf32> to vector<16x4xf32>
    %408 = arith.addf %396, %407 : vector<16x4xf32>
    %409 = arith.truncf %400 : vector<16x4xf32> to vector<16x4xbf16>
    %410 = arith.truncf %404 : vector<16x4xf32> to vector<16x4xbf16>
    %cst_278 = arith.constant dense<0.000000e+00> : vector<16x16xf32>
    %411 = tpu.matmul %409, %410, %cst_278 {dimension_numbers = #tpu.dot_dimension_numbers<[1], [1], [0], [0], [0, 0, 1, 0], [], []>} : vector<16x4xbf16>, vector<16x4xbf16>, vector<16x16xf32> -> vector<16x16xf32>
    %cst_279 = arith.constant dense<0xFF800000> : vector<16xf32>
    %412 = vector.multi_reduction <maximumf>, %411, %cst_279 [1] : vector<16x16xf32> to vector<16xf32>
    %413 = vector.shape_cast %412 : vector<16xf32> to vector<16x1xf32>
    %414 = vector.broadcast %413 : vector<16x1xf32> to vector<16x16xf32>
    %415 = arith.subf %411, %414 : vector<16x16xf32>
    %416 = math.exp %415 : vector<16x16xf32>
    %cst_280 = arith.constant dense<0.000000e+00> : vector<16xf32>
    %417 = vector.multi_reduction <add>, %416, %cst_280 [1] : vector<16x16xf32> to vector<16xf32>
    %418 = vector.shape_cast %417 : vector<16xf32> to vector<16x1xf32>
    %419 = tpu.reciprocal %418 {approx = true} : vector<16x1xf32> -> vector<16x1xf32>
    %420 = vector.broadcast %419 : vector<16x1xf32> to vector<16x16xf32>
    %421 = arith.mulf %416, %420 : vector<16x16xf32>
    %422 = arith.truncf %421 : vector<16x16xf32> to vector<16x16xbf16>
    %423 = arith.truncf %408 : vector<16x4xf32> to vector<16x4xbf16>
    %cst_281 = arith.constant dense<0.000000e+00> : vector<16x4xf32>
    %424 = tpu.matmul %422, %423, %cst_281 {dimension_numbers = #tpu.dot_dimension_numbers<[1], [0], [0], [1], [0, 0, 1, 1], [], []>} : vector<16x16xbf16>, vector<16x4xbf16>, vector<16x4xf32> -> vector<16x4xf32>
    %425 = arith.truncf %424 : vector<16x4xf32> to vector<16x4xbf16>
    %c3_282 = arith.constant 3 : index
    %c0_283 = arith.constant 0 : index
    %c0_284 = arith.constant 0 : index
    %426 = vector.load %arg20[%c3_282, %c0_283, %c0_284] : memref<8x4x32xbf16, #tpu.memory_space<vmem>>, vector<1x4x32xbf16>
    %427 = vector.shape_cast %426 : vector<1x4x32xbf16> to vector<4x32xbf16>
    %cst_285 = arith.constant dense<0.000000e+00> : vector<16x32xf32>
    %428 = tpu.matmul %425, %427, %cst_285 {dimension_numbers = #tpu.dot_dimension_numbers<[1], [0], [0], [1], [0, 0, 1, 1], [], []>} : vector<16x4xbf16>, vector<4x32xbf16>, vector<16x32xf32> -> vector<16x32xf32>
    %429 = arith.addf %387, %428 : vector<16x32xf32>
    %c4 = arith.constant 4 : index
    %c0_286 = arith.constant 0 : index
    %c0_287 = arith.constant 0 : index
    %430 = vector.load %arg14[%c4, %c0_286, %c0_287] : memref<8x32x4xbf16, #tpu.memory_space<vmem>>, vector<1x32x4xbf16>
    %431 = vector.shape_cast %430 : vector<1x32x4xbf16> to vector<32x4xbf16>
    %cst_288 = arith.constant dense<0.000000e+00> : vector<16x4xf32>
    %432 = tpu.matmul %260, %431, %cst_288 {dimension_numbers = #tpu.dot_dimension_numbers<[1], [0], [0], [1], [0, 0, 1, 1], [], []>} : vector<16x32xbf16>, vector<32x4xbf16>, vector<16x4xf32> -> vector<16x4xf32>
    %c4_289 = arith.constant 4 : index
    %c0_290 = arith.constant 0 : index
    %c0_291 = arith.constant 0 : index
    %433 = vector.load %arg16[%c4_289, %c0_290, %c0_291] : memref<8x32x4xbf16, #tpu.memory_space<vmem>>, vector<1x32x4xbf16>
    %434 = vector.shape_cast %433 : vector<1x32x4xbf16> to vector<32x4xbf16>
    %cst_292 = arith.constant dense<0.000000e+00> : vector<16x4xf32>
    %435 = tpu.matmul %260, %434, %cst_292 {dimension_numbers = #tpu.dot_dimension_numbers<[1], [0], [0], [1], [0, 0, 1, 1], [], []>} : vector<16x32xbf16>, vector<32x4xbf16>, vector<16x4xf32> -> vector<16x4xf32>
    %c4_293 = arith.constant 4 : index
    %c0_294 = arith.constant 0 : index
    %c0_295 = arith.constant 0 : index
    %436 = vector.load %arg18[%c4_293, %c0_294, %c0_295] : memref<8x32x4xbf16, #tpu.memory_space<vmem>>, vector<1x32x4xbf16>
    %437 = vector.shape_cast %436 : vector<1x32x4xbf16> to vector<32x4xbf16>
    %cst_296 = arith.constant dense<0.000000e+00> : vector<16x4xf32>
    %438 = tpu.matmul %260, %437, %cst_296 {dimension_numbers = #tpu.dot_dimension_numbers<[1], [0], [0], [1], [0, 0, 1, 1], [], []>} : vector<16x32xbf16>, vector<32x4xbf16>, vector<16x4xf32> -> vector<16x4xf32>
    %c4_297 = arith.constant 4 : index
    %c0_298 = arith.constant 0 : index
    %c0_299 = arith.constant 0 : index
    %439 = vector.load %arg15[%c4_297, %c0_298, %c0_299] : memref<8x1x4xf32, #tpu.memory_space<vmem>>, vector<1x1x4xf32>
    %440 = vector.shape_cast %439 : vector<1x1x4xf32> to vector<1x4xf32>
    %441 = vector.broadcast %440 : vector<1x4xf32> to vector<16x4xf32>
    %442 = arith.addf %432, %441 : vector<16x4xf32>
    %c4_300 = arith.constant 4 : index
    %c0_301 = arith.constant 0 : index
    %c0_302 = arith.constant 0 : index
    %443 = vector.load %arg17[%c4_300, %c0_301, %c0_302] : memref<8x1x4xf32, #tpu.memory_space<vmem>>, vector<1x1x4xf32>
    %444 = vector.shape_cast %443 : vector<1x1x4xf32> to vector<1x4xf32>
    %445 = vector.broadcast %444 : vector<1x4xf32> to vector<16x4xf32>
    %446 = arith.addf %435, %445 : vector<16x4xf32>
    %c4_303 = arith.constant 4 : index
    %c0_304 = arith.constant 0 : index
    %c0_305 = arith.constant 0 : index
    %447 = vector.load %arg19[%c4_303, %c0_304, %c0_305] : memref<8x1x4xf32, #tpu.memory_space<vmem>>, vector<1x1x4xf32>
    %448 = vector.shape_cast %447 : vector<1x1x4xf32> to vector<1x4xf32>
    %449 = vector.broadcast %448 : vector<1x4xf32> to vector<16x4xf32>
    %450 = arith.addf %438, %449 : vector<16x4xf32>
    %451 = arith.truncf %442 : vector<16x4xf32> to vector<16x4xbf16>
    %452 = arith.truncf %446 : vector<16x4xf32> to vector<16x4xbf16>
    %cst_306 = arith.constant dense<0.000000e+00> : vector<16x16xf32>
    %453 = tpu.matmul %451, %452, %cst_306 {dimension_numbers = #tpu.dot_dimension_numbers<[1], [1], [0], [0], [0, 0, 1, 0], [], []>} : vector<16x4xbf16>, vector<16x4xbf16>, vector<16x16xf32> -> vector<16x16xf32>
    %cst_307 = arith.constant dense<0xFF800000> : vector<16xf32>
    %454 = vector.multi_reduction <maximumf>, %453, %cst_307 [1] : vector<16x16xf32> to vector<16xf32>
    %455 = vector.shape_cast %454 : vector<16xf32> to vector<16x1xf32>
    %456 = vector.broadcast %455 : vector<16x1xf32> to vector<16x16xf32>
    %457 = arith.subf %453, %456 : vector<16x16xf32>
    %458 = math.exp %457 : vector<16x16xf32>
    %cst_308 = arith.constant dense<0.000000e+00> : vector<16xf32>
    %459 = vector.multi_reduction <add>, %458, %cst_308 [1] : vector<16x16xf32> to vector<16xf32>
    %460 = vector.shape_cast %459 : vector<16xf32> to vector<16x1xf32>
    %461 = tpu.reciprocal %460 {approx = true} : vector<16x1xf32> -> vector<16x1xf32>
    %462 = vector.broadcast %461 : vector<16x1xf32> to vector<16x16xf32>
    %463 = arith.mulf %458, %462 : vector<16x16xf32>
    %464 = arith.truncf %463 : vector<16x16xf32> to vector<16x16xbf16>
    %465 = arith.truncf %450 : vector<16x4xf32> to vector<16x4xbf16>
    %cst_309 = arith.constant dense<0.000000e+00> : vector<16x4xf32>
    %466 = tpu.matmul %464, %465, %cst_309 {dimension_numbers = #tpu.dot_dimension_numbers<[1], [0], [0], [1], [0, 0, 1, 1], [], []>} : vector<16x16xbf16>, vector<16x4xbf16>, vector<16x4xf32> -> vector<16x4xf32>
    %467 = arith.truncf %466 : vector<16x4xf32> to vector<16x4xbf16>
    %c4_310 = arith.constant 4 : index
    %c0_311 = arith.constant 0 : index
    %c0_312 = arith.constant 0 : index
    %468 = vector.load %arg20[%c4_310, %c0_311, %c0_312] : memref<8x4x32xbf16, #tpu.memory_space<vmem>>, vector<1x4x32xbf16>
    %469 = vector.shape_cast %468 : vector<1x4x32xbf16> to vector<4x32xbf16>
    %cst_313 = arith.constant dense<0.000000e+00> : vector<16x32xf32>
    %470 = tpu.matmul %467, %469, %cst_313 {dimension_numbers = #tpu.dot_dimension_numbers<[1], [0], [0], [1], [0, 0, 1, 1], [], []>} : vector<16x4xbf16>, vector<4x32xbf16>, vector<16x32xf32> -> vector<16x32xf32>
    %471 = arith.addf %429, %470 : vector<16x32xf32>
    %c5 = arith.constant 5 : index
    %c0_314 = arith.constant 0 : index
    %c0_315 = arith.constant 0 : index
    %472 = vector.load %arg14[%c5, %c0_314, %c0_315] : memref<8x32x4xbf16, #tpu.memory_space<vmem>>, vector<1x32x4xbf16>
    %473 = vector.shape_cast %472 : vector<1x32x4xbf16> to vector<32x4xbf16>
    %cst_316 = arith.constant dense<0.000000e+00> : vector<16x4xf32>
    %474 = tpu.matmul %260, %473, %cst_316 {dimension_numbers = #tpu.dot_dimension_numbers<[1], [0], [0], [1], [0, 0, 1, 1], [], []>} : vector<16x32xbf16>, vector<32x4xbf16>, vector<16x4xf32> -> vector<16x4xf32>
    %c5_317 = arith.constant 5 : index
    %c0_318 = arith.constant 0 : index
    %c0_319 = arith.constant 0 : index
    %475 = vector.load %arg16[%c5_317, %c0_318, %c0_319] : memref<8x32x4xbf16, #tpu.memory_space<vmem>>, vector<1x32x4xbf16>
    %476 = vector.shape_cast %475 : vector<1x32x4xbf16> to vector<32x4xbf16>
    %cst_320 = arith.constant dense<0.000000e+00> : vector<16x4xf32>
    %477 = tpu.matmul %260, %476, %cst_320 {dimension_numbers = #tpu.dot_dimension_numbers<[1], [0], [0], [1], [0, 0, 1, 1], [], []>} : vector<16x32xbf16>, vector<32x4xbf16>, vector<16x4xf32> -> vector<16x4xf32>
    %c5_321 = arith.constant 5 : index
    %c0_322 = arith.constant 0 : index
    %c0_323 = arith.constant 0 : index
    %478 = vector.load %arg18[%c5_321, %c0_322, %c0_323] : memref<8x32x4xbf16, #tpu.memory_space<vmem>>, vector<1x32x4xbf16>
    %479 = vector.shape_cast %478 : vector<1x32x4xbf16> to vector<32x4xbf16>
    %cst_324 = arith.constant dense<0.000000e+00> : vector<16x4xf32>
    %480 = tpu.matmul %260, %479, %cst_324 {dimension_numbers = #tpu.dot_dimension_numbers<[1], [0], [0], [1], [0, 0, 1, 1], [], []>} : vector<16x32xbf16>, vector<32x4xbf16>, vector<16x4xf32> -> vector<16x4xf32>
    %c5_325 = arith.constant 5 : index
    %c0_326 = arith.constant 0 : index
    %c0_327 = arith.constant 0 : index
    %481 = vector.load %arg15[%c5_325, %c0_326, %c0_327] : memref<8x1x4xf32, #tpu.memory_space<vmem>>, vector<1x1x4xf32>
    %482 = vector.shape_cast %481 : vector<1x1x4xf32> to vector<1x4xf32>
    %483 = vector.broadcast %482 : vector<1x4xf32> to vector<16x4xf32>
    %484 = arith.addf %474, %483 : vector<16x4xf32>
    %c5_328 = arith.constant 5 : index
    %c0_329 = arith.constant 0 : index
    %c0_330 = arith.constant 0 : index
    %485 = vector.load %arg17[%c5_328, %c0_329, %c0_330] : memref<8x1x4xf32, #tpu.memory_space<vmem>>, vector<1x1x4xf32>
    %486 = vector.shape_cast %485 : vector<1x1x4xf32> to vector<1x4xf32>
    %487 = vector.broadcast %486 : vector<1x4xf32> to vector<16x4xf32>
    %488 = arith.addf %477, %487 : vector<16x4xf32>
    %c5_331 = arith.constant 5 : index
    %c0_332 = arith.constant 0 : index
    %c0_333 = arith.constant 0 : index
    %489 = vector.load %arg19[%c5_331, %c0_332, %c0_333] : memref<8x1x4xf32, #tpu.memory_space<vmem>>, vector<1x1x4xf32>
    %490 = vector.shape_cast %489 : vector<1x1x4xf32> to vector<1x4xf32>
    %491 = vector.broadcast %490 : vector<1x4xf32> to vector<16x4xf32>
    %492 = arith.addf %480, %491 : vector<16x4xf32>
    %493 = arith.truncf %484 : vector<16x4xf32> to vector<16x4xbf16>
    %494 = arith.truncf %488 : vector<16x4xf32> to vector<16x4xbf16>
    %cst_334 = arith.constant dense<0.000000e+00> : vector<16x16xf32>
    %495 = tpu.matmul %493, %494, %cst_334 {dimension_numbers = #tpu.dot_dimension_numbers<[1], [1], [0], [0], [0, 0, 1, 0], [], []>} : vector<16x4xbf16>, vector<16x4xbf16>, vector<16x16xf32> -> vector<16x16xf32>
    %cst_335 = arith.constant dense<0xFF800000> : vector<16xf32>
    %496 = vector.multi_reduction <maximumf>, %495, %cst_335 [1] : vector<16x16xf32> to vector<16xf32>
    %497 = vector.shape_cast %496 : vector<16xf32> to vector<16x1xf32>
    %498 = vector.broadcast %497 : vector<16x1xf32> to vector<16x16xf32>
    %499 = arith.subf %495, %498 : vector<16x16xf32>
    %500 = math.exp %499 : vector<16x16xf32>
    %cst_336 = arith.constant dense<0.000000e+00> : vector<16xf32>
    %501 = vector.multi_reduction <add>, %500, %cst_336 [1] : vector<16x16xf32> to vector<16xf32>
    %502 = vector.shape_cast %501 : vector<16xf32> to vector<16x1xf32>
    %503 = tpu.reciprocal %502 {approx = true} : vector<16x1xf32> -> vector<16x1xf32>
    %504 = vector.broadcast %503 : vector<16x1xf32> to vector<16x16xf32>
    %505 = arith.mulf %500, %504 : vector<16x16xf32>
    %506 = arith.truncf %505 : vector<16x16xf32> to vector<16x16xbf16>
    %507 = arith.truncf %492 : vector<16x4xf32> to vector<16x4xbf16>
    %cst_337 = arith.constant dense<0.000000e+00> : vector<16x4xf32>
    %508 = tpu.matmul %506, %507, %cst_337 {dimension_numbers = #tpu.dot_dimension_numbers<[1], [0], [0], [1], [0, 0, 1, 1], [], []>} : vector<16x16xbf16>, vector<16x4xbf16>, vector<16x4xf32> -> vector<16x4xf32>
    %509 = arith.truncf %508 : vector<16x4xf32> to vector<16x4xbf16>
    %c5_338 = arith.constant 5 : index
    %c0_339 = arith.constant 0 : index
    %c0_340 = arith.constant 0 : index
    %510 = vector.load %arg20[%c5_338, %c0_339, %c0_340] : memref<8x4x32xbf16, #tpu.memory_space<vmem>>, vector<1x4x32xbf16>
    %511 = vector.shape_cast %510 : vector<1x4x32xbf16> to vector<4x32xbf16>
    %cst_341 = arith.constant dense<0.000000e+00> : vector<16x32xf32>
    %512 = tpu.matmul %509, %511, %cst_341 {dimension_numbers = #tpu.dot_dimension_numbers<[1], [0], [0], [1], [0, 0, 1, 1], [], []>} : vector<16x4xbf16>, vector<4x32xbf16>, vector<16x32xf32> -> vector<16x32xf32>
    %513 = arith.addf %471, %512 : vector<16x32xf32>
    %c6 = arith.constant 6 : index
    %c0_342 = arith.constant 0 : index
    %c0_343 = arith.constant 0 : index
    %514 = vector.load %arg14[%c6, %c0_342, %c0_343] : memref<8x32x4xbf16, #tpu.memory_space<vmem>>, vector<1x32x4xbf16>
    %515 = vector.shape_cast %514 : vector<1x32x4xbf16> to vector<32x4xbf16>
    %cst_344 = arith.constant dense<0.000000e+00> : vector<16x4xf32>
    %516 = tpu.matmul %260, %515, %cst_344 {dimension_numbers = #tpu.dot_dimension_numbers<[1], [0], [0], [1], [0, 0, 1, 1], [], []>} : vector<16x32xbf16>, vector<32x4xbf16>, vector<16x4xf32> -> vector<16x4xf32>
    %c6_345 = arith.constant 6 : index
    %c0_346 = arith.constant 0 : index
    %c0_347 = arith.constant 0 : index
    %517 = vector.load %arg16[%c6_345, %c0_346, %c0_347] : memref<8x32x4xbf16, #tpu.memory_space<vmem>>, vector<1x32x4xbf16>
    %518 = vector.shape_cast %517 : vector<1x32x4xbf16> to vector<32x4xbf16>
    %cst_348 = arith.constant dense<0.000000e+00> : vector<16x4xf32>
    %519 = tpu.matmul %260, %518, %cst_348 {dimension_numbers = #tpu.dot_dimension_numbers<[1], [0], [0], [1], [0, 0, 1, 1], [], []>} : vector<16x32xbf16>, vector<32x4xbf16>, vector<16x4xf32> -> vector<16x4xf32>
    %c6_349 = arith.constant 6 : index
    %c0_350 = arith.constant 0 : index
    %c0_351 = arith.constant 0 : index
    %520 = vector.load %arg18[%c6_349, %c0_350, %c0_351] : memref<8x32x4xbf16, #tpu.memory_space<vmem>>, vector<1x32x4xbf16>
    %521 = vector.shape_cast %520 : vector<1x32x4xbf16> to vector<32x4xbf16>
    %cst_352 = arith.constant dense<0.000000e+00> : vector<16x4xf32>
    %522 = tpu.matmul %260, %521, %cst_352 {dimension_numbers = #tpu.dot_dimension_numbers<[1], [0], [0], [1], [0, 0, 1, 1], [], []>} : vector<16x32xbf16>, vector<32x4xbf16>, vector<16x4xf32> -> vector<16x4xf32>
    %c6_353 = arith.constant 6 : index
    %c0_354 = arith.constant 0 : index
    %c0_355 = arith.constant 0 : index
    %523 = vector.load %arg15[%c6_353, %c0_354, %c0_355] : memref<8x1x4xf32, #tpu.memory_space<vmem>>, vector<1x1x4xf32>
    %524 = vector.shape_cast %523 : vector<1x1x4xf32> to vector<1x4xf32>
    %525 = vector.broadcast %524 : vector<1x4xf32> to vector<16x4xf32>
    %526 = arith.addf %516, %525 : vector<16x4xf32>
    %c6_356 = arith.constant 6 : index
    %c0_357 = arith.constant 0 : index
    %c0_358 = arith.constant 0 : index
    %527 = vector.load %arg17[%c6_356, %c0_357, %c0_358] : memref<8x1x4xf32, #tpu.memory_space<vmem>>, vector<1x1x4xf32>
    %528 = vector.shape_cast %527 : vector<1x1x4xf32> to vector<1x4xf32>
    %529 = vector.broadcast %528 : vector<1x4xf32> to vector<16x4xf32>
    %530 = arith.addf %519, %529 : vector<16x4xf32>
    %c6_359 = arith.constant 6 : index
    %c0_360 = arith.constant 0 : index
    %c0_361 = arith.constant 0 : index
    %531 = vector.load %arg19[%c6_359, %c0_360, %c0_361] : memref<8x1x4xf32, #tpu.memory_space<vmem>>, vector<1x1x4xf32>
    %532 = vector.shape_cast %531 : vector<1x1x4xf32> to vector<1x4xf32>
    %533 = vector.broadcast %532 : vector<1x4xf32> to vector<16x4xf32>
    %534 = arith.addf %522, %533 : vector<16x4xf32>
    %535 = arith.truncf %526 : vector<16x4xf32> to vector<16x4xbf16>
    %536 = arith.truncf %530 : vector<16x4xf32> to vector<16x4xbf16>
    %cst_362 = arith.constant dense<0.000000e+00> : vector<16x16xf32>
    %537 = tpu.matmul %535, %536, %cst_362 {dimension_numbers = #tpu.dot_dimension_numbers<[1], [1], [0], [0], [0, 0, 1, 0], [], []>} : vector<16x4xbf16>, vector<16x4xbf16>, vector<16x16xf32> -> vector<16x16xf32>
    %cst_363 = arith.constant dense<0xFF800000> : vector<16xf32>
    %538 = vector.multi_reduction <maximumf>, %537, %cst_363 [1] : vector<16x16xf32> to vector<16xf32>
    %539 = vector.shape_cast %538 : vector<16xf32> to vector<16x1xf32>
    %540 = vector.broadcast %539 : vector<16x1xf32> to vector<16x16xf32>
    %541 = arith.subf %537, %540 : vector<16x16xf32>
    %542 = math.exp %541 : vector<16x16xf32>
    %cst_364 = arith.constant dense<0.000000e+00> : vector<16xf32>
    %543 = vector.multi_reduction <add>, %542, %cst_364 [1] : vector<16x16xf32> to vector<16xf32>
    %544 = vector.shape_cast %543 : vector<16xf32> to vector<16x1xf32>
    %545 = tpu.reciprocal %544 {approx = true} : vector<16x1xf32> -> vector<16x1xf32>
    %546 = vector.broadcast %545 : vector<16x1xf32> to vector<16x16xf32>
    %547 = arith.mulf %542, %546 : vector<16x16xf32>
    %548 = arith.truncf %547 : vector<16x16xf32> to vector<16x16xbf16>
    %549 = arith.truncf %534 : vector<16x4xf32> to vector<16x4xbf16>
    %cst_365 = arith.constant dense<0.000000e+00> : vector<16x4xf32>
    %550 = tpu.matmul %548, %549, %cst_365 {dimension_numbers = #tpu.dot_dimension_numbers<[1], [0], [0], [1], [0, 0, 1, 1], [], []>} : vector<16x16xbf16>, vector<16x4xbf16>, vector<16x4xf32> -> vector<16x4xf32>
    %551 = arith.truncf %550 : vector<16x4xf32> to vector<16x4xbf16>
    %c6_366 = arith.constant 6 : index
    %c0_367 = arith.constant 0 : index
    %c0_368 = arith.constant 0 : index
    %552 = vector.load %arg20[%c6_366, %c0_367, %c0_368] : memref<8x4x32xbf16, #tpu.memory_space<vmem>>, vector<1x4x32xbf16>
    %553 = vector.shape_cast %552 : vector<1x4x32xbf16> to vector<4x32xbf16>
    %cst_369 = arith.constant dense<0.000000e+00> : vector<16x32xf32>
    %554 = tpu.matmul %551, %553, %cst_369 {dimension_numbers = #tpu.dot_dimension_numbers<[1], [0], [0], [1], [0, 0, 1, 1], [], []>} : vector<16x4xbf16>, vector<4x32xbf16>, vector<16x32xf32> -> vector<16x32xf32>
    %555 = arith.addf %513, %554 : vector<16x32xf32>
    %c7 = arith.constant 7 : index
    %c0_370 = arith.constant 0 : index
    %c0_371 = arith.constant 0 : index
    %556 = vector.load %arg14[%c7, %c0_370, %c0_371] : memref<8x32x4xbf16, #tpu.memory_space<vmem>>, vector<1x32x4xbf16>
    %557 = vector.shape_cast %556 : vector<1x32x4xbf16> to vector<32x4xbf16>
    %cst_372 = arith.constant dense<0.000000e+00> : vector<16x4xf32>
    %558 = tpu.matmul %260, %557, %cst_372 {dimension_numbers = #tpu.dot_dimension_numbers<[1], [0], [0], [1], [0, 0, 1, 1], [], []>} : vector<16x32xbf16>, vector<32x4xbf16>, vector<16x4xf32> -> vector<16x4xf32>
    %c7_373 = arith.constant 7 : index
    %c0_374 = arith.constant 0 : index
    %c0_375 = arith.constant 0 : index
    %559 = vector.load %arg16[%c7_373, %c0_374, %c0_375] : memref<8x32x4xbf16, #tpu.memory_space<vmem>>, vector<1x32x4xbf16>
    %560 = vector.shape_cast %559 : vector<1x32x4xbf16> to vector<32x4xbf16>
    %cst_376 = arith.constant dense<0.000000e+00> : vector<16x4xf32>
    %561 = tpu.matmul %260, %560, %cst_376 {dimension_numbers = #tpu.dot_dimension_numbers<[1], [0], [0], [1], [0, 0, 1, 1], [], []>} : vector<16x32xbf16>, vector<32x4xbf16>, vector<16x4xf32> -> vector<16x4xf32>
    %c7_377 = arith.constant 7 : index
    %c0_378 = arith.constant 0 : index
    %c0_379 = arith.constant 0 : index
    %562 = vector.load %arg18[%c7_377, %c0_378, %c0_379] : memref<8x32x4xbf16, #tpu.memory_space<vmem>>, vector<1x32x4xbf16>
    %563 = vector.shape_cast %562 : vector<1x32x4xbf16> to vector<32x4xbf16>
    %cst_380 = arith.constant dense<0.000000e+00> : vector<16x4xf32>
    %564 = tpu.matmul %260, %563, %cst_380 {dimension_numbers = #tpu.dot_dimension_numbers<[1], [0], [0], [1], [0, 0, 1, 1], [], []>} : vector<16x32xbf16>, vector<32x4xbf16>, vector<16x4xf32> -> vector<16x4xf32>
    %c7_381 = arith.constant 7 : index
    %c0_382 = arith.constant 0 : index
    %c0_383 = arith.constant 0 : index
    %565 = vector.load %arg15[%c7_381, %c0_382, %c0_383] : memref<8x1x4xf32, #tpu.memory_space<vmem>>, vector<1x1x4xf32>
    %566 = vector.shape_cast %565 : vector<1x1x4xf32> to vector<1x4xf32>
    %567 = vector.broadcast %566 : vector<1x4xf32> to vector<16x4xf32>
    %568 = arith.addf %558, %567 : vector<16x4xf32>
    %c7_384 = arith.constant 7 : index
    %c0_385 = arith.constant 0 : index
    %c0_386 = arith.constant 0 : index
    %569 = vector.load %arg17[%c7_384, %c0_385, %c0_386] : memref<8x1x4xf32, #tpu.memory_space<vmem>>, vector<1x1x4xf32>
    %570 = vector.shape_cast %569 : vector<1x1x4xf32> to vector<1x4xf32>
    %571 = vector.broadcast %570 : vector<1x4xf32> to vector<16x4xf32>
    %572 = arith.addf %561, %571 : vector<16x4xf32>
    %c7_387 = arith.constant 7 : index
    %c0_388 = arith.constant 0 : index
    %c0_389 = arith.constant 0 : index
    %573 = vector.load %arg19[%c7_387, %c0_388, %c0_389] : memref<8x1x4xf32, #tpu.memory_space<vmem>>, vector<1x1x4xf32>
    %574 = vector.shape_cast %573 : vector<1x1x4xf32> to vector<1x4xf32>
    %575 = vector.broadcast %574 : vector<1x4xf32> to vector<16x4xf32>
    %576 = arith.addf %564, %575 : vector<16x4xf32>
    %577 = arith.truncf %568 : vector<16x4xf32> to vector<16x4xbf16>
    %578 = arith.truncf %572 : vector<16x4xf32> to vector<16x4xbf16>
    %cst_390 = arith.constant dense<0.000000e+00> : vector<16x16xf32>
    %579 = tpu.matmul %577, %578, %cst_390 {dimension_numbers = #tpu.dot_dimension_numbers<[1], [1], [0], [0], [0, 0, 1, 0], [], []>} : vector<16x4xbf16>, vector<16x4xbf16>, vector<16x16xf32> -> vector<16x16xf32>
    %cst_391 = arith.constant dense<0xFF800000> : vector<16xf32>
    %580 = vector.multi_reduction <maximumf>, %579, %cst_391 [1] : vector<16x16xf32> to vector<16xf32>
    %581 = vector.shape_cast %580 : vector<16xf32> to vector<16x1xf32>
    %582 = vector.broadcast %581 : vector<16x1xf32> to vector<16x16xf32>
    %583 = arith.subf %579, %582 : vector<16x16xf32>
    %584 = math.exp %583 : vector<16x16xf32>
    %cst_392 = arith.constant dense<0.000000e+00> : vector<16xf32>
    %585 = vector.multi_reduction <add>, %584, %cst_392 [1] : vector<16x16xf32> to vector<16xf32>
    %586 = vector.shape_cast %585 : vector<16xf32> to vector<16x1xf32>
    %587 = tpu.reciprocal %586 {approx = true} : vector<16x1xf32> -> vector<16x1xf32>
    %588 = vector.broadcast %587 : vector<16x1xf32> to vector<16x16xf32>
    %589 = arith.mulf %584, %588 : vector<16x16xf32>
    %590 = arith.truncf %589 : vector<16x16xf32> to vector<16x16xbf16>
    %591 = arith.truncf %576 : vector<16x4xf32> to vector<16x4xbf16>
    %cst_393 = arith.constant dense<0.000000e+00> : vector<16x4xf32>
    %592 = tpu.matmul %590, %591, %cst_393 {dimension_numbers = #tpu.dot_dimension_numbers<[1], [0], [0], [1], [0, 0, 1, 1], [], []>} : vector<16x16xbf16>, vector<16x4xbf16>, vector<16x4xf32> -> vector<16x4xf32>
    %593 = arith.truncf %592 : vector<16x4xf32> to vector<16x4xbf16>
    %c7_394 = arith.constant 7 : index
    %c0_395 = arith.constant 0 : index
    %c0_396 = arith.constant 0 : index
    %594 = vector.load %arg20[%c7_394, %c0_395, %c0_396] : memref<8x4x32xbf16, #tpu.memory_space<vmem>>, vector<1x4x32xbf16>
    %595 = vector.shape_cast %594 : vector<1x4x32xbf16> to vector<4x32xbf16>
    %cst_397 = arith.constant dense<0.000000e+00> : vector<16x32xf32>
    %596 = tpu.matmul %593, %595, %cst_397 {dimension_numbers = #tpu.dot_dimension_numbers<[1], [0], [0], [1], [0, 0, 1, 1], [], []>} : vector<16x4xbf16>, vector<4x32xbf16>, vector<16x32xf32> -> vector<16x32xf32>
    %597 = arith.addf %555, %596 : vector<16x32xf32>
    %c0_398 = arith.constant 0 : index
    %c0_399 = arith.constant 0 : index
    %598 = vector.load %arg21[%c0_398, %c0_399] : memref<1x32xf32, #tpu.memory_space<vmem>>, vector<1x32xf32>
    %599 = vector.broadcast %598 : vector<1x32xf32> to vector<16x32xf32>
    %600 = arith.addf %597, %599 : vector<16x32xf32>
    %c0_400 = arith.constant 0 : index
    %c0_401 = arith.constant 0 : index
    %c0_402 = arith.constant 0 : index
    %601 = vector.load %arg22[%c0_400, %c0_401, %c0_402] : memref<1x16x32xf32, #tpu.memory_space<vmem>>, vector<1x16x32xf32>
    %602 = vector.shape_cast %601 : vector<1x16x32xf32> to vector<16x32xf32>
    %603 = vector.shape_cast %600 : vector<16x32xf32> to vector<1x16x32xf32>
    tpu.vector_store %arg22[%c0_400, %c0_401, %c0_402], %603 {strides = array<i32>} : memref<1x16x32xf32, #tpu.memory_space<vmem>>, vector<1x16x32xf32>,
    return
  }
  func.func @transform_0(%arg0: i32) -> (i32, i32) {
    %c0_i32 = arith.constant 0 : i32
    %c0_i32_0 = arith.constant 0 : i32
    %c0_i32_1 = arith.constant 0 : i32
    return %c0_i32, %c0_i32_0 : i32, i32
  }
  func.func @transform_1(%arg0: i32) -> (i32, i32, i32) {
    %c0_i32 = arith.constant 0 : i32
    %c0_i32_0 = arith.constant 0 : i32
    %c0_i32_1 = arith.constant 0 : i32
    return %arg0, %c0_i32, %c0_i32_0 : i32, i32, i32
  }
  func.func @transform_2(%arg0: i32) -> (i32, i32, i32) {
    %c0_i32 = arith.constant 0 : i32
    %c0_i32_0 = arith.constant 0 : i32
    %c0_i32_1 = arith.constant 0 : i32
    %c0_i32_2 = arith.constant 0 : i32
    return %c0_i32, %c0_i32_0, %c0_i32_1 : i32, i32, i32
  }
  func.func @transform_3(%arg0: i32) -> (i32, i32, i32) {
    %c0_i32 = arith.constant 0 : i32
    %c0_i32_0 = arith.constant 0 : i32
    %c0_i32_1 = arith.constant 0 : i32
    %c0_i32_2 = arith.constant 0 : i32
    return %c0_i32, %c0_i32_0, %c0_i32_1 : i32, i32, i32
  }
  func.func @transform_4(%arg0: i32) -> (i32, i32, i32) {
    %c0_i32 = arith.constant 0 : i32
    %c0_i32_0 = arith.constant 0 : i32
    %c0_i32_1 = arith.constant 0 : i32
    %c0_i32_2 = arith.constant 0 : i32
    return %c0_i32, %c0_i32_0, %c0_i32_1 : i32, i32, i32
  }
  func.func @transform_5(%arg0: i32) -> (i32, i32, i32) {
    %c0_i32 = arith.constant 0 : i32
    %c0_i32_0 = arith.constant 0 : i32
    %c0_i32_1 = arith.constant 0 : i32
    %c0_i32_2 = arith.constant 0 : i32
    return %c0_i32, %c0_i32_0, %c0_i32_1 : i32, i32, i32
  }
  func.func @transform_6(%arg0: i32) -> (i32, i32, i32) {
    %c0_i32 = arith.constant 0 : i32
    %c0_i32_0 = arith.constant 0 : i32
    %c0_i32_1 = arith.constant 0 : i32
    %c0_i32_2 = arith.constant 0 : i32
    return %c0_i32, %c0_i32_0, %c0_i32_1 : i32, i32, i32
  }
  func.func @transform_7(%arg0: i32) -> (i32, i32) {
    %c0_i32 = arith.constant 0 : i32
    %c0_i32_0 = arith.constant 0 : i32
    %c0_i32_1 = arith.constant 0 : i32
    return %c0_i32, %c0_i32_0 : i32, i32
  }
  func.func @transform_8(%arg0: i32) -> (i32, i32, i32) {
    %c0_i32 = arith.constant 0 : i32
    %c0_i32_0 = arith.constant 0 : i32
    %c0_i32_1 = arith.constant 0 : i32
    %c0_i32_2 = arith.constant 0 : i32
    return %c0_i32, %c0_i32_0, %c0_i32_1 : i32, i32, i32
  }
  func.func @transform_9(%arg0: i32) -> (i32, i32, i32) {
    %c0_i32 = arith.constant 0 : i32
    %c0_i32_0 = arith.constant 0 : i32
    %c0_i32_1 = arith.constant 0 : i32
    %c0_i32_2 = arith.constant 0 : i32
    return %c0_i32, %c0_i32_0, %c0_i32_1 : i32, i32, i32
  }
  func.func @transform_10(%arg0: i32) -> (i32, i32, i32) {
    %c0_i32 = arith.constant 0 : i32
    %c0_i32_0 = arith.constant 0 : i32
    %c0_i32_1 = arith.constant 0 : i32
    %c0_i32_2 = arith.constant 0 : i32
    return %c0_i32, %c0_i32_0, %c0_i32_1 : i32, i32, i32
  }
  func.func @transform_11(%arg0: i32) -> (i32, i32, i32) {
    %c0_i32 = arith.constant 0 : i32
    %c0_i32_0 = arith.constant 0 : i32
    %c0_i32_1 = arith.constant 0 : i32
    %c0_i32_2 = arith.constant 0 : i32
    return %c0_i32, %c0_i32_0, %c0_i32_1 : i32, i32, i32
  }
  func.func @transform_12(%arg0: i32) -> (i32, i32) {
    %c0_i32 = arith.constant 0 : i32
    %c0_i32_0 = arith.constant 0 : i32
    %c0_i32_1 = arith.constant 0 : i32
    return %c0_i32, %c0_i32_0 : i32, i32
  }
  func.func @transform_13(%arg0: i32) -> (i32, i32, i32) {
    %c0_i32 = arith.constant 0 : i32
    %c0_i32_0 = arith.constant 0 : i32
    %c0_i32_1 = arith.constant 0 : i32
    %c0_i32_2 = arith.constant 0 : i32
    return %c0_i32, %c0_i32_0, %c0_i32_1 : i32, i32, i32
  }
  func.func @transform_14(%arg0: i32) -> (i32, i32, i32) {
    %c0_i32 = arith.constant 0 : i32
    %c0_i32_0 = arith.constant 0 : i32
    %c0_i32_1 = arith.constant 0 : i32
    %c0_i32_2 = arith.constant 0 : i32
    return %c0_i32, %c0_i32_0, %c0_i32_1 : i32, i32, i32
  }
  func.func @transform_15(%arg0: i32) -> (i32, i32, i32) {
    %c0_i32 = arith.constant 0 : i32
    %c0_i32_0 = arith.constant 0 : i32
    %c0_i32_1 = arith.constant 0 : i32
    %c0_i32_2 = arith.constant 0 : i32
    return %c0_i32, %c0_i32_0, %c0_i32_1 : i32, i32, i32
  }
  func.func @transform_16(%arg0: i32) -> (i32, i32, i32) {
    %c0_i32 = arith.constant 0 : i32
    %c0_i32_0 = arith.constant 0 : i32
    %c0_i32_1 = arith.constant 0 : i32
    %c0_i32_2 = arith.constant 0 : i32
    return %c0_i32, %c0_i32_0, %c0_i32_1 : i32, i32, i32
  }
  func.func @transform_17(%arg0: i32) -> (i32, i32, i32) {
    %c0_i32 = arith.constant 0 : i32
    %c0_i32_0 = arith.constant 0 : i32
    %c0_i32_1 = arith.constant 0 : i32
    %c0_i32_2 = arith.constant 0 : i32
    return %c0_i32, %c0_i32_0, %c0_i32_1 : i32, i32, i32
  }
  func.func @transform_18(%arg0: i32) -> (i32, i32, i32) {
    %c0_i32 = arith.constant 0 : i32
    %c0_i32_0 = arith.constant 0 : i32
    %c0_i32_1 = arith.constant 0 : i32
    %c0_i32_2 = arith.constant 0 : i32
    return %c0_i32, %c0_i32_0, %c0_i32_1 : i32, i32, i32
  }
  func.func @transform_19(%arg0: i32) -> (i32, i32, i32) {
    %c0_i32 = arith.constant 0 : i32
    %c0_i32_0 = arith.constant 0 : i32
    %c0_i32_1 = arith.constant 0 : i32
    %c0_i32_2 = arith.constant 0 : i32
    return %c0_i32, %c0_i32_0, %c0_i32_1 : i32, i32, i32
  }
  func.func @transform_20(%arg0: i32) -> (i32, i32) {
    %c0_i32 = arith.constant 0 : i32
    %c0_i32_0 = arith.constant 0 : i32
    %c0_i32_1 = arith.constant 0 : i32
    return %c0_i32, %c0_i32_0 : i32, i32
  }
  func.func @transform_21(%arg0: i32) -> (i32, i32, i32) {
    %c0_i32 = arith.constant 0 : i32
    %c0_i32_0 = arith.constant 0 : i32
    %c0_i32_1 = arith.constant 0 : i32
    return %arg0, %c0_i32, %c0_i32_0 : i32, i32, i32
  }
}

</mosaic_0001>

<bundles_post_ra>
// kernel: tpu_custom_call.1
= control target key start
LH: loop header
LB: loop body
LE: loop exit
PB: predicated region body
PF: predicated region fallthrough
CT: control target
= control target key end

     0   :  { %s9450_s0 = inlined_call_operand.vmem [shape: f32[16,16], index: 0, kind: input, shape index: {}]   ;;  %s9451_s1 = inlined_call_operand.vmem [shape: f32[2,16,32], index: 1, kind: input, shape index: {}]   ;;  %s9452_s2 = inlined_call_operand.vmem [shape: f32[1,16,32], index: 2, kind: input, shape index: {}]   ;;  %s9453_s3 = inlined_call_operand.vmem [shape: bf16[4,32,4], index: 3, kind: input, shape index: {}]   ;;  %s9454_s4 = inlined_call_operand.vmem [shape: bf16[4,32,4], index: 4, kind: input, shape index: {}]   ;;  %s9455_s5 = inlined_call_operand.vmem [shape: bf16[4,32,4], index: 5, kind: input, shape index: {}]   ;;  %s9456_s6 = inlined_call_operand.vmem [shape: bf16[4,4,16], index: 6, kind: input, shape index: {}]   ;;  %s9457_s7 = inlined_call_operand.vmem [shape: f32[1,16], index: 7, kind: input, shape index: {}]   ;;  %s9458_s8 = inlined_call_operand.vmem [shape: bf16[4,32,4], index: 8, kind: input, shape index: {}]   ;;  %s9459_s9 = inlined_call_operand.vmem [shape: bf16[4,32,4], index: 9, kind: input, shape index: {}]   ;;  %s9460_s10 = inlined_call_operand.vmem [shape: bf16[4,32,4], index: 10, kind: input, shape index: {}]   ;;  %s9461_s11 = inlined_call_operand.vmem [shape: bf16[4,4,16], index: 11, kind: input, shape index: {}]   ;;  %s9462_s12 = inlined_call_operand.vmem [shape: f32[1,16], index: 12, kind: input, shape index: {}]   ;;  %s9463_s13 = inlined_call_operand.vmem [shape: bf16[8,32,4], index: 13, kind: input, shape index: {}]   ;;  %s9464_s14 = inlined_call_operand.vmem [shape: f32[8,1,4], index: 14, kind: input, shape index: {}]   ;;  %s9465_s15 = inlined_call_operand.vmem [shape: bf16[8,32,4], index: 15, kind: input, shape index: {}]   ;;  %s9466_s16 = inlined_call_operand.vmem [shape: f32[8,1,4], index: 16, kind: input, shape index: {}]   ;;  %s9467_s17 = inlined_call_operand.vmem [shape: bf16[8,32,4], index: 17, kind: input, shape index: {}]   ;;  %s9468_s18 = inlined_call_operand.vmem [shape: f32[8,1,4], index: 18, kind: input, shape index: {}]   ;;  %s9469_s19 = inlined_call_operand.vmem [shape: bf16[8,4,32], index: 19, kind: input, shape index: {}]   ;;  %s9470_s20 = inlined_call_operand.vmem [shape: f32[1,32], index: 20, kind: input, shape index: {}]   ;;  %s9471_s21 = inlined_call_operand.hbm [shape: f32[2,16,32], index: 21, kind: output, shape index: {}]  }
   0x1   :  { %9488 = sst [smem:[#allocation12_spill]] %s9450_s0 }
   0x2   :  { %9489 = sst [smem:[#allocation13_spill]] %s9451_s1 }
   0x3   :  { %9490 = sst [smem:[#allocation14_spill]] %s9452_s2 }
   0x4   :  { %9491 = sst [smem:[#allocation15_spill]] %s9453_s3 }
   0x5   :  { %9492 = sst [smem:[#allocation16_spill]] %s9454_s4 }
   0x6   :  { %9493 = sst [smem:[#allocation17_spill]] %s9455_s5 }
   0x7   :  { %9494 = sst [smem:[#allocation18_spill]] %s9456_s6 }
   0x8   :  { %9495 = sst [smem:[#allocation19_spill]] %s9470_s20 }
   0x9   :  { %9496 = sst [smem:[#allocation20_spill]] %s9471_s21 }
   0xa   :  { %26 = vsyncpa [#allocation3], 0 }
   0xb   :  { %28 = vsyncpa [#allocation3 + $0x1], 0  ;;  %s8232_s2 = smov 0   ;;  %s8234_s25 = smov 0  }
   0xc   :  { %s8236_s26 = smov 0   ;;  %s8238_s27 = smov 0  }
   0xd LB: > { %9497 = sst [smem:[#allocation5_spill]] %s8102_s2  ;;  %s8253_s3 = sadd.s32 4294967295, %s8114_s27   ;;  %s8114_s27 = sphi %s8238_s27, %s9521_s27   ;;  %s8110_s26 = sphi %s8236_s26, %s9523_s26   ;;  %s8106_s25 = sphi %s8234_s25, %s9525_s25   ;;  %s8102_s2 = sphi %s8232_s2, %s9524_s2  }
   0xe   : > { %9498 = sst [smem:[#allocation6_spill]] %s8110_s26  ;;  %s6444_s28 = sadd.s32 4294967294, %s8114_s27  }
   0xf   : > { %9499 = sst [smem:[#allocation7_spill]] %s8114_s27  ;;  %s8257_s29 = sadd.s32 1, %s8114_s27  }
  0x10   : > { %9500 = sst [smem:[#allocation8_spill]] %s8257_s29  ;;  %s487_s0 = sadd.s32 1, %s8110_s26 }
  0x11   : > { %s484_s4 = ssub.s32 %s8114_s27, %s8257_s29  ;;  %p497_p0 = scmp.ne.s32.totalorder %s8110_s26, %s8106_s25 }
  0x12   : > { %p485_p1 = scmp.eq.s32.totalorder %s484_s4, 0  ;;  %p498_p2 = scmp.eq.s32.totalorder %s8253_s3, 1 }
  0x13   : > { %p503_p3 = scmp.ne.s32.totalorder %s8106_s25, %s8102_s2  ;;  %p504_p4 = scmp.eq.s32.totalorder %s6444_s28, 1 }
  0x14   : > { %s8268_s30 = scalar_select %p485_p1, %s8110_s26, %s487_s0  }
  0x15   : > { %p8270_p5 = por %p498_p2, %p497_p0  ;;  %p8274_p6 = por %p504_p4, %p503_p3 }
  0x16   : > { %9501 = sst [smem:[#allocation9_spill]] %s8268_s30  ;;  %p6447_p7 = scmp.ge.s32.totalorder %s8114_s27, 1 }
  0x17   : > { %s9502_s5 = scalar_select %p8270_p5, 1, 0 }
  0x18   : > { %s9504_s22 = scalar_select %p8274_p6, 1, 0 }
  0x19   : > { %9503 = sst [smem:[#allocation10_spill]] %s9502_s5  ;;  %p590_p8 = scmp.lt.s32.totalorder %s8114_s27, 3 }
  0x1a   : > { %9505 = sst [smem:[#allocation11_spill]] %s9504_s22 }
  0x1b   : > { %p591_p9 = pnand %p6447_p7, %p590_p8 }
  0x1c   : > { %s9506_s24 = sld [smem:[#allocation16_spill]] (!%p591_p9)  ;;  %v8116_v1 = vmov (!%p591_p9), 0.0   ;;  %s9507_s26 = sld [smem:[#allocation15_spill]] (!%p591_p9)  ;;  %vm8117_vm0 = vmmov (!%p591_p9), 0   ;;  %vm681_vm1 = vcmask (!%p591_p9), 261120   ;;  %vm842_vm2 = vcmask (!%p591_p9), 31744  }
  0x1d   : > { %594 = sbr.rel (%p591_p9) target bundleno = 15612 (0x3cfc), region = 104  ;;  %7115 = vmatprep.subr.bf16.mxu1 (!%p591_p9), %v8116_v1  ;;  %7107 = vmatprep.subr.bf16.mxu0 (!%p591_p9), %v8116_v1  ;;  %p650_p10 = scmp.lt.s32.totalorder (!%p591_p9), %s8253_s3, 1  ;;  %vm890_vm3 = vcmask (!%p591_p9), 130048   ;;  %vm1258_vm4 = vcmask (!%p591_p9), 1041408  }
  0x1e   : > { %7119 = vmatprep.mubr.msk.bf16.mxu1 (!%p591_p9), %vm8117_vm0, %v8116_v1  ;;  %7111 = vmatprep.mubr.msk.bf16.mxu0 (!%p591_p9), %vm8117_vm0, %v8116_v1  ;;  %s9509_s0 = sld [smem:[#allocation14_spill]] (!%p591_p9)  ;;  %s9510_s5 = sld [smem:[#allocation13_spill]] (!%p591_p9) }
  0x1f   : > { %s9511_s2 = sld [smem:[#allocation17_spill]] (!%p591_p9)  ;;  %s9513_s28 = sld [smem:[#allocation12_spill]] (!%p591_p9) }
  0x20   : > { %s9514_s6 = sld [smem:[#allocation18_spill]] (!%p591_p9)  ;;  %s8118_s4 = smov (!%p591_p9), 16  }
  0x21   : > { %s647_s22 = sand.u32 (!%p591_p9), 1, %s8106_s25   ;;  %s9515_s30 = sld [smem:[#allocation19_spill]] (!%p591_p9) }
  0x22   : > { %v7828_v0 = vld [vmem:[%s9506_s24] sm:$0xff] (!%p591_p9)   ;;  %v7829_v2 = vld [vmem:[%s9506_s24 + $0x8] sm:$0xff] (!%p591_p9)   ;;  %s9508_s29 = smov (!%p591_p9), %s9507_s26  ;;  %v7834_v58 = vld [vmem:[%s9506_s24 + $0x10] sm:$0xff] (!%p591_p9)  }
  0x23   : > { %7116 = vmatpush3.bf16.msra.mxu1 (!%p591_p9), %v7828_v0  ;;  %v7830_v3 = vld [vmem:[%s9507_s26] sm:$0xff] (!%p591_p9)   ;;  %v7831_v5 = vld [vmem:[%s9508_s29 + $0x8] sm:$0xff] (!%p591_p9)   ;;  %v7836_v50 = vld [vmem:[%s9508_s29 + $0x10] sm:$0xff] (!%p591_p9)  }
  0x24   : > { %7117 = vmatprep.subr.bf16.mxu1 %v8116_v1  ;;  %7108 = vmatpush3.bf16.msra.mxu0 %v7830_v3  ;;  %s651_s23 = scalar_select %p650_p10, %s8253_s3, 1  ;;  %v658_v4 = vld [vmem:[%s9509_s0] sm:$0xff]  ;;  %v659_v6 = vld [vmem:[%s9509_s0 + $0x8] sm:$0xff]  ;;  %v7837_v51 = vld [vmem:[%s9508_s29 + $0x18] sm:$0xff]  }
  0x25   : > { %7109 = vmatprep.subr.bf16.mxu0 %v8116_v1  ;;  %v7832_v23 = vld [vmem:[%s9511_s2] sm:$0xff]   ;;  %v8348_v27 = vld [vmem:[%s9513_s28 + $0x8] sm:$0xff]  ;;  %v7835_v60 = vld [vmem:[%s9506_s24 + $0x18] sm:$0xff]   ;;  %s8119_s0 = smov [#allocation2]  }
  0x26   : > { %s6865_s26 = sshll.u32 %s651_s23, 4  ;;  %v8343_v25 = vld [vmem:[%s9513_s28] sm:$0xff]  ;;  %s6448_s23 = sshll.u32 %s647_s22, 4 }
  0x27   : > { %7118 = vmatpush3.bf16.msra.mxu1 %v7829_v2  ;;  %s654_s20 = scalar_lea.vmem %s9510_s5, %s6865_s26  ;;  %s9512_s5 = smov %s9511_s2 }
  0x28   : > { %7131 = vmatprep.subr.bf16.mxu1 %v8116_v1  ;;  %v656_v7 = vld [vmem:[%s654_s20] sm:$0xff]  ;;  %v657_v8 = vld [vmem:[%s654_s20 + $0x8] sm:$0xff]  ;;  %7110 = vmatpush3.bf16.msra.mxu0 %v7831_v5  ;;  %s6866_s2 = sshll.u32 %s8253_s3, 8  ;;  %s9409_s3 = scalar_lea.sflag [#allocation3], %s647_s22 }
  0x29   : > { %v660_v9 = vadd.f32 %v658_v4, %v656_v7  ;;  %v661_v10 = vadd.f32 %v659_v6, %v657_v8  ;;  %7123 = vmatprep.subr.bf16.mxu0 %v8116_v1  ;;  %v7833_v24 = vld [vmem:[%s9512_s5 + $0x8] sm:$0xff]   ;;  %s8056_s1 = sshll.u32 %s8119_s0, 4  ;;  %s8057_s1 = int_to_ptr.vmem [resolvable:$false] %s8056_s1 }
  0x2a   : > { %s8058_s26 = scalar_lea.vmem %s8057_s1, 512 }
  0x2b   : > { %v8313_v11 = vpack.c.bf16 %v661_v10, %v660_v9 }
  0x2d   : > { %7120 = vmatmul.mubr.msk.bf16.vlgmr.msra.gmra.mrb[0].mxu1 %vm681_vm1, %v8313_v11  ;;  %7112 = vmatmul.mubr.msk.bf16.vlgmr.msra.gmra.mrb[0].mxu0 %vm681_vm1, %v8313_v11 }
  0x2e   : > { %7133 = vmatprep.mubr.msk.bf16.mxu1 %vm8117_vm0, %v8116_v1  ;;  %7127 = vmatprep.mubr.msk.bf16.mxu0 %vm8117_vm0, %v8116_v1 }
  0x2f   : > { %7124 = vmatpush3.bf16.msra.mxu0 %v7832_v23 }
  0x30   : > { %7125 = vmatprep.subr.bf16.mxu0 %v8116_v1 }
  0x33   : > { %7126 = vmatpush3.bf16.msra.mxu0 %v7833_v24 }
  0x34   : > { %7137 = vmatprep.subr.bf16.mxu0 %v8116_v1 }
  0x36   : > { %7128 = vmatmul.mubr.msk.bf16.vlgmr.msra.gmra.mrb[4].mxu0 %vm681_vm1, %v8313_v11 }
  0x37   : > { %7139 = vmatprep.mubr.msk.bf16.mxu0 %vm8117_vm0, %v8116_v1 }
 0x100   : > { %v776_v12 = vpop.f32.mrb[0].mxu1  ;;  %v719_v13 = vpop.f32.mrb[0].mxu0 }
 0x101   : > { %v7121_v14 = vpop.f32.mrb[1].mxu1  ;;  %v7113_v15 = vpop.f32.mrb[1].mxu0 }
 0x102   : > { %v779_v16 = vpop.f32.mrb[2].mxu1  ;;  %v722_v17 = vpop.f32.mrb[2].mxu0  ;;  %v7838_v15 = vld [vmem:[%s9512_s5 + $0x10] sm:$0xff]  }
 0x103   : > { %v841_v18 = vpack.c.bf16 %v779_v16, %v776_v12  ;;  %v7122_v19 = vpop.f32.mrb[3].mxu1  ;;  %v840_v20 = vpack.c.bf16 %v722_v17, %v719_v13  ;;  %v7114_v21 = vpop.f32.mrb[3].mxu0  ;;  %v7839_v16 = vld [vmem:[%s9512_s5 + $0x18] sm:$0xff]  }
 0x105   : > { %v847_v22 = vsel %vm842_vm2, %v841_v18, 0 }
 0x106   : > { %7132 = vmatpush3.bf16.xpose.msra.mxu1 %v847_v22 }
 0x107   : > { %7143 = vmatprep.subr.bf16.mxu1 %v8116_v1 }
 0x109   : > { %v833_v45 = vpop.f32.mrb[4].mxu0 }
 0x10a   : > { %v7129_v46 = vpop.f32.mrb[5].mxu0 }
 0x10b   : > { %v836_v47 = vpop.f32.mrb[6].mxu0 }
 0x10c   : > { %v7130_v48 = vpop.f32.mrb[7].mxu0  ;;  %v914_v49 = vpack.c.bf16 %v836_v47, %v833_v45 }
 0x10d   : > { %7134 = vmatmul.mubr.msk.bf16.vlgmr.msra.gmra.mrb[4].mxu1 %vm842_vm2, %v840_v20  ;;  %v960_v48 = vld [vmem:[%s9514_s6] sm:$0x3] }
 0x10e   : > { %7147 = vmatprep.mubr.msk.bf16.mxu1 %vm8117_vm0, %v8116_v1  ;;  %7138 = vmatpush3.bf16.msra.mxu0 %v914_v49 }
 0x10f   : > { %7151 = vmatprep.subr.bf16.mxu0 %v8116_v1  ;;  %7144 = vmatpush3.bf16.msra.mxu1 %v7836_v50 }
 0x110   : > { %7145 = vmatprep.subr.bf16.mxu1 %v8116_v1 }
 0x113   : > { %7146 = vmatpush3.bf16.msra.mxu1 %v7837_v51 }
 0x114   : > { %7159 = vmatprep.subr.bf16.mxu1 %v8116_v1 }
 0x116   : > { %7148 = vmatmul.mubr.msk.bf16.vlgmr.msra.gmra.mrb[8].mxu1 %vm681_vm1, %v8313_v11 }
 0x117   : > { %7163 = vmatprep.mubr.msk.bf16.mxu1 %vm8117_vm0, %v8116_v1  ;;  %7160 = vmatpush3.bf16.msra.mxu1 %v7838_v15 }
 0x118   : > { %7161 = vmatprep.subr.bf16.mxu1 %v8116_v1 }
 0x11b   : > { %7162 = vmatpush3.bf16.msra.mxu1 %v7839_v16 }
 0x11c   : > { %7173 = vmatprep.subr.bf16.mxu1 %v8116_v1 }
 0x11e   : > { %7164 = vmatmul.mubr.msk.bf16.vlgmr.msra.gmra.mrb[12].mxu1 %vm681_vm1, %v8313_v11 }
 0x11f   : > { %7175 = vmatprep.mubr.msk.bf16.mxu1 %vm8117_vm0, %v8116_v1 }
 0x1e0   : > { %v883_v26 = vpop.f32.mrb[4].mxu1 }
 0x1e1   : > { %v884_v28 = vadd.f32 %v883_v26, %v8343_v25  ;;  %v7135_v29 = vpop.f32.mrb[5].mxu1 }
 0x1e2   : > { %v886_v30 = vpop.f32.mrb[6].mxu1 }
 0x1e3   : > { %v887_v31 = vadd.f32 %v886_v30, %v8348_v27  ;;  %v7136_v32 = vpop.f32.mrb[7].mxu1  ;;  %v891_v33 = vsel %vm890_vm3, %v884_v28, -inf }
 0x1e4   : > { %892 = vmax.xlane.f32.xlu0 %v891_v33 }
 0x1e5   : > { %v894_v34 = vsel %vm890_vm3, %v887_v31, -inf }
 0x1e8   : > { %895 = vmax.xlane.f32.xlu0 %v894_v34 }
 0x1e9   : > { %v1012_v61 = vpop.f32.mrb[8].mxu1 }
 0x1ea   : > { %v7149_v62 = vpop.f32.mrb[9].mxu1 }
 0x1eb   : > { %v1015_v63 = vpop.f32.mrb[10].mxu1 }
 0x1ec   : > { %v1135_v0 = vpack.c.bf16 %v1015_v63, %v1012_v61  ;;  %v7150_v2 = vpop.f32.mrb[11].mxu1  ;;  %v7843_v61 = vld [vmem:[%s9508_s29 + $0x28] sm:$0xff]  }
 0x271   : > { %v893_v35 = vpop.xlane.xlu0 %892 }
 0x272   : > { %v897_v36 = vsub.f32 %v884_v28, %v893_v35 }
 0x274   : > { %v899_v37 = vmul.f32 1.442695, %v897_v36 }
 0x275   : > { %v896_v38 = vpop.xlane.xlu0 %895 }
 0x276   : > { %7924 = vpow2.f32 %v899_v37  ;;  %v898_v39 = vsub.f32 %v887_v31, %v896_v38  ;;  %v1128_v37 = vpop.f32.mrb[12].mxu1 }
 0x277   : > { %v7165_v38 = vpop.f32.mrb[13].mxu1 }
 0x278   : > { %v901_v40 = vmul.f32 1.442695, %v898_v39  ;;  %v1131_v39 = vpop.f32.mrb[14].mxu1 }
 0x27a   : > { %7926 = vpow2.f32 %v901_v40  ;;  %v7166_v40 = vpop.f32.mrb[15].mxu1 }
 0x280   : > { %v7925_v41 = vpop.eup %7924 }
 0x281   : > { %v903_v42 = vsel %vm890_vm3, %v7925_v41, 0.0 }
 0x282   : > { %904 = vadd.xlane.f32.xlu1 %v903_v42  ;;  %v6485_v42 = vld [vmem:[%s9514_s6 + $0x2] sm:$0x3] }
 0x284   : > { %v7927_v43 = vpop.eup %7926 }
 0x285   : > { %v906_v44 = vsel %vm890_vm3, %v7927_v43, 0.0 }
 0x286   : > { %907 = vadd.xlane.f32.xlu1 %v906_v44 }
 0x30f   : > { %v905_v52 = vpop.xlane.xlu1 %904 }
 0x310   : > { %7928 = vrcp.f32 %v905_v52  ;;  %v1307_v52 = vsel %vm1258_vm4, %v960_v48, 0  ;;  %v6511_v48 = vld [vmem:[%s9514_s6 + $0x4] sm:$0x3] }
 0x313   : > { %v908_v53 = vpop.xlane.xlu1 %907 }
 0x314   : > { %7930 = vrcp.f32 %v908_v53  ;;  %v7840_v53 = vld [vmem:[%s9506_s24 + $0x20] sm:$0xff]  }
 0x31a   : > { %v7929_v54 = vpop.eup %7928 }
 0x31b   : > { %v911_v56 = vmul.f32 %v7929_v54, %v7925_v41  ;;  %v1207_v41 = vpack.c.bf16 %v1131_v39, %v1128_v37  ;;  %v7841_v54 = vld [vmem:[%s9506_s24 + $0x28] sm:$0xff]  }
 0x31d   : > { %7174 = vmatpush3.bf16.msra.mxu1 %v1207_v41 }
 0x31e   : > { %v7931_v55 = vpop.eup %7930  ;;  %7185 = vmatprep.subr.bf16.mxu1 %v8116_v1 }
 0x31f   : > { %v912_v57 = vmul.f32 %v7931_v55, %v7927_v43  ;;  %v1260_v43 = vsel %vm1258_vm4, %v6485_v42, 0 }
 0x321   : > { %v913_v59 = vpack.c.bf16 %v912_v57, %v911_v56 }
 0x323   : > { %7140 = vmatmul.mubr.msk.bf16.vlgmr.msra.gmra.mrb[8].mxu0 %vm890_vm3, %v913_v59 }
 0x324   : > { %7152 = vmatpush3.bf16.msra.mxu0 %v7834_v58  ;;  %7155 = vmatprep.mubr.msk.bf16.mxu0 %vm8117_vm0, %v8116_v1  ;;  %v7842_v58 = vld [vmem:[%s9508_s29 + $0x20] sm:$0xff]  }
 0x325   : > { %7153 = vmatprep.subr.bf16.mxu0 %v8116_v1 }
 0x328   : > { %7154 = vmatpush3.bf16.msra.mxu0 %v7835_v60 }
 0x329   : > { %7167 = vmatprep.subr.bf16.mxu0 %v8116_v1 }
 0x32b   : > { %7156 = vmatmul.mubr.msk.bf16.vlgmr.msra.gmra.mrb[12].mxu0 %vm681_vm1, %v8313_v11 }
 0x32c   : > { %7169 = vmatprep.mubr.msk.bf16.mxu0 %vm8117_vm0, %v8116_v1 }
 0x3f6   : > { %v8384_v3 = vpop.f32.mrb[8].mxu0 }
 0x3f7   : > { %v7141_v4 = vpop.f32.mrb[9].mxu0 }
 0x3f8   : > { %v8386_v5 = vpop.f32.mrb[10].mxu0 }
 0x3f9   : > { %v959_v6 = vpack.c.bf16 %v8386_v5, %v8384_v3  ;;  %v7142_v7 = vpop.f32.mrb[11].mxu0 }
 0x3fe   : > { %v1070_v8 = vpop.f32.mrb[12].mxu0 }
 0x3ff   : > { %v7157_v9 = vpop.f32.mrb[13].mxu0 }
 0x400   : > { %v1073_v10 = vpop.f32.mrb[14].mxu0 }
 0x401   : > { %v1136_v12 = vpack.c.bf16 %v1073_v10, %v1070_v8  ;;  %v7158_v13 = vpop.f32.mrb[15].mxu0 }
 0x403   : > { %v1141_v14 = vsel %vm842_vm2, %v1136_v12, 0 }
 0x404   : > { %7168 = vmatpush3.bf16.xpose.msra.mxu0 %v1141_v14 }
 0x405   : > { %7179 = vmatprep.subr.bf16.mxu0 %v8116_v1 }
 0x40b   : > { %7170 = vmatmul.mubr.msk.bf16.vlgmr.msra.gmra.mrb[16].mxu0 %vm842_vm2, %v1135_v0 }
 0x40c   : > { %7181 = vmatprep.mubr.msk.bf16.mxu0 %vm8117_vm0, %v8116_v1  ;;  %7180 = vmatpush3.bf16.msra.mxu0 %v1260_v43 }
 0x40d   : > { %7191 = vmatprep.subr.bf16.mxu0 %v8116_v1 }
 0x4de   : > { %v1177_v17 = vpop.f32.mrb[16].mxu0 }
 0x4df   : > { %v1178_v18 = vadd.f32 %v1177_v17, %v8343_v25  ;;  %v7171_v19 = vpop.f32.mrb[17].mxu0 }
 0x4e0   : > { %v1180_v20 = vpop.f32.mrb[18].mxu0 }
 0x4e1   : > { %v1181_v21 = vadd.f32 %v1180_v20, %v8348_v27  ;;  %v7172_v22 = vpop.f32.mrb[19].mxu0  ;;  %v1184_v23 = vsel %vm890_vm3, %v1178_v18, -inf }
 0x4e2   : > { %1185 = vmax.xlane.f32.xlu0 %v1184_v23  ;;  %v7845_v22 = vld [vmem:[%s9512_s5 + $0x28] sm:$0xff]  }
 0x4e3   : > { %v1187_v24 = vsel %vm890_vm3, %v1181_v21, -inf }
 0x4e4   : > { %1188 = vmax.xlane.f32.xlu1 %v1187_v24 }
 0x56f   : > { %v1186_v26 = vpop.xlane.xlu0 %1185 }
 0x570   : > { %v1190_v28 = vsub.f32 %v1178_v18, %v1186_v26 }
 0x571   : > { %v1189_v29 = vpop.xlane.xlu1 %1188 }
 0x572   : > { %v1192_v30 = vmul.f32 1.442695, %v1190_v28  ;;  %v1191_v31 = vsub.f32 %v1181_v21, %v1189_v29  ;;  %v7844_v21 = vld [vmem:[%s9512_s5 + $0x20] sm:$0xff]  }
 0x574   : > { %7932 = vpow2.f32 %v1192_v30  ;;  %v1194_v32 = vmul.f32 1.442695, %v1191_v31 }
 0x576   : > { %7934 = vpow2.f32 %v1194_v32 }
 0x57e   : > { %v7933_v33 = vpop.eup %7932 }
 0x57f   : > { %v1196_v34 = vsel %vm890_vm3, %v7933_v33, 0.0 }
 0x580   : > { %v7935_v35 = vpop.eup %7934  ;;  %1197 = vadd.xlane.f32.xlu0 %v1196_v34 }
 0x581   : > { %v1199_v36 = vsel %vm890_vm3, %v7935_v35, 0.0 }
 0x582   : > { %1200 = vadd.xlane.f32.xlu1 %v1199_v36 }
 0x60d   : > { %v1198_v44 = vpop.xlane.xlu0 %1197 }
 0x60e   : > { %7936 = vrcp.f32 %v1198_v44 }
 0x60f   : > { %v1201_v45 = vpop.xlane.xlu1 %1200 }
 0x610   : > { %7938 = vrcp.f32 %v1201_v45 }
 0x618   : > { %v7937_v46 = vpop.eup %7936 }
 0x619   : > { %v1204_v49 = vmul.f32 %v7937_v46, %v7933_v33 }
 0x61a   : > { %v7939_v47 = vpop.eup %7938 }
 0x61b   : > { %v1205_v50 = vmul.f32 %v7939_v47, %v7935_v35 }
 0x61d   : > { %v1206_v51 = vpack.c.bf16 %v1205_v50, %v1204_v49  ;;  %v1648_v49 = vsel %vm1258_vm4, %v6511_v48, 0 }
 0x61f   : > { %7176 = vmatmul.mubr.msk.bf16.vlgmr.msra.gmra.mrb[16].mxu1 %vm890_vm3, %v1206_v51 }
 0x620   : > { %7186 = vmatpush3.bf16.msra.mxu1 %v1307_v52  ;;  %7187 = vmatprep.mubr.msk.bf16.mxu1 %vm8117_vm0, %v8116_v1 }
 0x621   : > { %7199 = vmatprep.subr.bf16.mxu1 %v8116_v1 }
 0x627   : > { %7188 = vmatmul.mubr.msk.bf16.vlgmr.msra.gmra.mrb[20].mxu1 %vm842_vm2, %v959_v6 }
 0x628   : > { %7200 = vmatpush3.bf16.msra.mxu1 %v7840_v53  ;;  %7203 = vmatprep.mubr.msk.bf16.mxu1 %vm8117_vm0, %v8116_v1 }
 0x629   : > { %7201 = vmatprep.subr.bf16.mxu1 %v8116_v1 }
 0x62c   : > { %7202 = vmatpush3.bf16.msra.mxu1 %v7841_v54 }
 0x62d   : > { %7215 = vmatprep.subr.bf16.mxu1 %v8116_v1 }
 0x62f   : > { %7204 = vmatmul.mubr.msk.bf16.vlgmr.msra.gmra.mrb[24].mxu1 %vm681_vm1, %v8313_v11 }
 0x630   : > { %7217 = vmatprep.mubr.msk.bf16.mxu1 %vm8117_vm0, %v8116_v1 }
 0x6f2   : > { %v1245_v55 = vpop.f32.mrb[16].mxu1 }
 0x6f3   : > { %v7177_v56 = vpop.f32.mrb[17].mxu1 }
 0x6f4   : > { %v1248_v57 = vpop.f32.mrb[18].mxu1 }
 0x6f5   : > { %v1252_v59 = vpack.c.bf16 %v1248_v57, %v1245_v55  ;;  %v7178_v60 = vpop.f32.mrb[19].mxu1  ;;  %v7848_v57 = vld [vmem:[%s9508_s29 + $0x30] sm:$0xff]  }
 0x6f7   : > { %7182 = vmatmul.mubr.msk.bf16.vlgmr.msra.gmra.mrb[20].mxu0 %vm842_vm2, %v1252_v59 }
 0x6f8   : > { %7192 = vmatpush3.bf16.msra.mxu0 %v7842_v58  ;;  %7195 = vmatprep.mubr.msk.bf16.mxu0 %vm8117_vm0, %v8116_v1  ;;  %v7849_v58 = vld [vmem:[%s9508_s29 + $0x38] sm:$0xff]  }
 0x6f9   : > { %7193 = vmatprep.subr.bf16.mxu0 %v8116_v1 }
 0x6fa   : > { %v1343_v62 = vpop.f32.mrb[20].mxu1 }
 0x6fb   : > { %v7189_v63 = vpop.f32.mrb[21].mxu1 }
 0x6fc   : > { %v1346_v0 = vpop.f32.mrb[22].mxu1  ;;  %7194 = vmatpush3.bf16.msra.mxu0 %v7843_v61 }
 0x6fd   : > { %v7190_v2 = vpop.f32.mrb[23].mxu1  ;;  %7207 = vmatprep.subr.bf16.mxu0 %v8116_v1 }
 0x6fe   : > { %v7847_v2 = vld [vmem:[%s9506_s24 + $0x38] sm:$0xff]  }
 0x6ff   : > { %7196 = vmatmul.mubr.msk.bf16.vlgmr.msra.gmra.mrb[24].mxu0 %vm681_vm1, %v8313_v11 }
 0x700   : > { %7211 = vmatprep.mubr.msk.bf16.mxu0 %vm8117_vm0, %v8116_v1  ;;  %7208 = vmatpush3.bf16.msra.mxu0 %v7844_v21 }
 0x701   : > { %7209 = vmatprep.subr.bf16.mxu0 %v8116_v1 }
 0x702   : > { %v1459_v3 = vpop.f32.mrb[24].mxu1 }
 0x703   : > { %v7205_v4 = vpop.f32.mrb[25].mxu1 }
 0x704   : > { %v1462_v5 = vpop.f32.mrb[26].mxu1  ;;  %7210 = vmatpush3.bf16.msra.mxu0 %v7845_v22 }
 0x705   : > { %v1525_v6 = vpack.c.bf16 %v1462_v5, %v1459_v3  ;;  %v7206_v7 = vpop.f32.mrb[27].mxu1  ;;  %7221 = vmatprep.subr.bf16.mxu0 %v8116_v1 }
 0x707   : > { %v1530_v8 = vsel %vm842_vm2, %v1525_v6, 0  ;;  %7212 = vmatmul.mubr.msk.bf16.vlgmr.msra.gmra.mrb[28].mxu0 %vm681_vm1, %v8313_v11 }
 0x708   : > { %7216 = vmatpush3.bf16.xpose.msra.mxu1 %v1530_v8  ;;  %7223 = vmatprep.mubr.msk.bf16.mxu0 %vm8117_vm0, %v8116_v1 }
 0x709   : > { %7227 = vmatprep.subr.bf16.mxu1 %v8116_v1 }
 0x7ca   : > { %v1296_v9 = vpop.f32.mrb[20].mxu0 }
 0x7cb   : > { %v8462_v10 = vadd.f32 %v1343_v62, %v1296_v9  ;;  %v7183_v12 = vpop.f32.mrb[21].mxu0  ;;  %v7846_v62 = vld [vmem:[%s9506_s24 + $0x30] sm:$0xff]  }
 0x7cc   : > { %v1299_v13 = vpop.f32.mrb[22].mxu0 }
 0x7cd   : > { %v8464_v14 = vadd.f32 %v1346_v0, %v1299_v13  ;;  %v7184_v15 = vpop.f32.mrb[23].mxu0 }
 0x7d2   : > { %v1401_v16 = vpop.f32.mrb[24].mxu0 }
 0x7d3   : > { %v7197_v17 = vpop.f32.mrb[25].mxu0 }
 0x7d4   : > { %v1404_v18 = vpop.f32.mrb[26].mxu0 }
 0x7d5   : > { %v1524_v19 = vpack.c.bf16 %v1404_v18, %v1401_v16  ;;  %v7198_v20 = vpop.f32.mrb[27].mxu0 }
 0x7d7   : > { %7218 = vmatmul.mubr.msk.bf16.vlgmr.msra.gmra.mrb[28].mxu1 %vm842_vm2, %v1524_v19 }
 0x7d8   : > { %7229 = vmatprep.mubr.msk.bf16.mxu1 %vm8117_vm0, %v8116_v1  ;;  %7228 = vmatpush3.bf16.msra.mxu1 %v1648_v49 }
 0x7d9   : > { %7241 = vmatprep.subr.bf16.mxu1 %v8116_v1 }
 0x7da   : > { %v1517_v43 = vpop.f32.mrb[28].mxu0 }
 0x7db   : > { %v7213_v44 = vpop.f32.mrb[29].mxu0 }
 0x7dc   : > { %v1520_v45 = vpop.f32.mrb[30].mxu0 }
 0x7dd   : > { %v7214_v46 = vpop.f32.mrb[31].mxu0  ;;  %v1596_v47 = vpack.c.bf16 %v1520_v45, %v1517_v43 }
 0x7de   : > { %v6536_v46 = vld [vmem:[%s9514_s6 + $0x6] sm:$0x3] }
 0x7df   : > { %7222 = vmatpush3.bf16.msra.mxu0 %v1596_v47  ;;  %v1991_v47 = vsel %vm1258_vm4, %v6536_v46, 0 }
 0x7e0   : > { %7233 = vmatprep.subr.bf16.mxu0 %v8116_v1 }
 0x8aa   : > { %v1566_v23 = vpop.f32.mrb[28].mxu1 }
 0x8ab   : > { %v1567_v24 = vadd.f32 %v1566_v23, %v8343_v25  ;;  %v7219_v26 = vpop.f32.mrb[29].mxu1 }
 0x8ac   : > { %v1569_v28 = vpop.f32.mrb[30].mxu1 }
 0x8ad   : > { %v1570_v29 = vadd.f32 %v1569_v28, %v8348_v27  ;;  %v7220_v30 = vpop.f32.mrb[31].mxu1  ;;  %v1573_v31 = vsel %vm890_vm3, %v1567_v24, -inf }
 0x8ae   : > { %1574 = vmax.xlane.f32.xlu0 %v1573_v31 }
 0x8af   : > { %v1576_v32 = vsel %vm890_vm3, %v1570_v29, -inf }
 0x8b0   : > { %1577 = vmax.xlane.f32.xlu1 %v1576_v32 }
 0x93b   : > { %v1575_v33 = vpop.xlane.xlu0 %1574 }
 0x93c   : > { %v1579_v34 = vsub.f32 %v1567_v24, %v1575_v33 }
 0x93d   : > { %v1578_v35 = vpop.xlane.xlu1 %1577 }
 0x93e   : > { %v1581_v36 = vmul.f32 1.442695, %v1579_v34  ;;  %v1580_v37 = vsub.f32 %v1570_v29, %v1578_v35 }
 0x940   : > { %7940 = vpow2.f32 %v1581_v36  ;;  %v1583_v38 = vmul.f32 1.442695, %v1580_v37 }
 0x942   : > { %7942 = vpow2.f32 %v1583_v38 }
 0x94a   : > { %v7941_v39 = vpop.eup %7940 }
 0x94b   : > { %v1585_v40 = vsel %vm890_vm3, %v7941_v39, 0.0 }
 0x94c   : > { %v7943_v41 = vpop.eup %7942  ;;  %1586 = vadd.xlane.f32.xlu0 %v1585_v40 }
 0x94d   : > { %v1588_v42 = vsel %vm890_vm3, %v7943_v41, 0.0 }
 0x94e   : > { %1589 = vadd.xlane.f32.xlu1 %v1588_v42 }
 0x9d9   : > { %v1587_v50 = vpop.xlane.xlu0 %1586 }
 0x9da   : > { %7944 = vrcp.f32 %v1587_v50 }
 0x9db   : > { %v1590_v51 = vpop.xlane.xlu1 %1589 }
 0x9dc   : > { %7946 = vrcp.f32 %v1590_v51 }
 0x9e4   : > { %v7945_v52 = vpop.eup %7944 }
 0x9e5   : > { %v1593_v54 = vmul.f32 %v7945_v52, %v7941_v39 }
 0x9e6   : > { %v7947_v53 = vpop.eup %7946 }
 0x9e7   : > { %v1594_v55 = vmul.f32 %v7947_v53, %v7943_v41 }
 0x9e9   : > { %v1595_v56 = vpack.c.bf16 %v1594_v55, %v1593_v54  ;;  %v7854_v55 = vld [vmem:[%s9458_s8] sm:$0xff]  }
 0x9eb   : > { %7224 = vmatmul.mubr.msk.bf16.vlgmr.msra.gmra.mrb[32].mxu0 %vm890_vm3, %v1595_v56  ;;  %v7855_v56 = vld [vmem:[%s9458_s8 + $0x8] sm:$0xff]  }
 0x9ec   : > { %7237 = vmatprep.mubr.msk.bf16.mxu0 %vm8117_vm0, %v8116_v1  ;;  %7234 = vmatpush3.bf16.msra.mxu0 %v7848_v57 }
 0x9ed   : > { %7235 = vmatprep.subr.bf16.mxu0 %v8116_v1 }
 0x9f0   : > { %7236 = vmatpush3.bf16.msra.mxu0 %v7849_v58 }
 0x9f1   : > { %7249 = vmatprep.subr.bf16.mxu0 %v8116_v1 }
 0x9f3   : > { %7238 = vmatmul.mubr.msk.bf16.vlgmr.msra.gmra.mrb[36].mxu0 %vm681_vm1, %v8313_v11 }
 0x9f4   : > { %7253 = vmatprep.mubr.msk.bf16.mxu0 %vm8117_vm0, %v8116_v1 }
 0xabe   : > { %v1634_v59 = vpop.f32.mrb[32].mxu0 }
 0xabf   : > { %v7225_v60 = vpop.f32.mrb[33].mxu0 }
 0xac0   : > { %v1637_v61 = vpop.f32.mrb[34].mxu0  ;;  %v7852_v60 = vld [vmem:[%s9459_s9] sm:$0xff]  }
 0xac1   : > { %v1641_v63 = vpack.c.bf16 %v1637_v61, %v1634_v59  ;;  %v7226_v0 = vpop.f32.mrb[35].mxu0 }
 0xac3   : > { %7230 = vmatmul.mubr.msk.bf16.vlgmr.msra.gmra.mrb[32].mxu1 %vm842_vm2, %v1641_v63  ;;  %v7853_v63 = vld [vmem:[%s9459_s9 + $0x8] sm:$0xff]  }
 0xac4   : > { %7242 = vmatpush3.bf16.msra.mxu1 %v7846_v62  ;;  %7245 = vmatprep.mubr.msk.bf16.mxu1 %vm8117_vm0, %v8116_v1 }
 0xac5   : > { %7243 = vmatprep.subr.bf16.mxu1 %v8116_v1 }
 0xac6   : > { %v1744_v3 = vpop.f32.mrb[36].mxu0 }
 0xac7   : > { %v7239_v4 = vpop.f32.mrb[37].mxu0 }
 0xac8   : > { %7244 = vmatpush3.bf16.msra.mxu1 %v7847_v2  ;;  %v1747_v5 = vpop.f32.mrb[38].mxu0 }
 0xac9   : > { %7257 = vmatprep.subr.bf16.mxu1 %v8116_v1  ;;  %v1867_v6 = vpack.c.bf16 %v1747_v5, %v1744_v3  ;;  %v7240_v7 = vpop.f32.mrb[39].mxu0 }
 0xacb   : > { %7246 = vmatmul.mubr.msk.bf16.vlgmr.msra.gmra.mrb[36].mxu1 %vm681_vm1, %v8313_v11 }
 0xacc   : > { %7259 = vmatprep.mubr.msk.bf16.mxu1 %vm8117_vm0, %v8116_v1 }
 0xb96   : > { %v1684_v8 = vpop.f32.mrb[32].mxu1 }
 0xb97   : > { %v8524_v9 = vadd.f32 %v1684_v8, %v8462_v10  ;;  %v7231_v12 = vpop.f32.mrb[33].mxu1  ;;  %v7850_v10 = vld [vmem:[%s9512_s5 + $0x30] sm:$0xff]  }
 0xb98   : > { %v1687_v13 = vpop.f32.mrb[34].mxu1  ;;  %7250 = vmatpush3.bf16.msra.mxu0 %v7850_v10 }
 0xb99   : > { %v8527_v15 = vadd.f32 %v1687_v13, %v8464_v14  ;;  %v7232_v16 = vpop.f32.mrb[35].mxu1  ;;  %v7851_v14 = vld [vmem:[%s9512_s5 + $0x38] sm:$0xff]   ;;  %7251 = vmatprep.subr.bf16.mxu0 %v8116_v1  ;;  %s9517_s5 = sld [smem:[#allocation20_spill]] }
 0xb9c   : > { %7252 = vmatpush3.bf16.msra.mxu0 %v7851_v14 }
 0xb9d   : > { %7263 = vmatprep.subr.bf16.mxu0 %v8116_v1 }
 0xb9e   : > { %v1802_v17 = vpop.f32.mrb[36].mxu1 }
 0xb9f   : > { %v7247_v18 = vpop.f32.mrb[37].mxu1  ;;  %7254 = vmatmul.mubr.msk.bf16.vlgmr.msra.gmra.mrb[40].mxu0 %vm681_vm1, %v8313_v11  ;;  %s9403_s6 = scalar_lea.hbm %s9517_s5, %s6866_s2 }
 0xba0   : > { %v1805_v19 = vpop.f32.mrb[38].mxu1  ;;  %7265 = vmatprep.mubr.msk.bf16.mxu0 %vm8117_vm0, %v8116_v1 }
 0xba1   : > { %v1868_v20 = vpack.c.bf16 %v1805_v19, %v1802_v17  ;;  %v7248_v21 = vpop.f32.mrb[39].mxu1 }
 0xba3   : > { %v1873_v22 = vsel %vm842_vm2, %v1868_v20, 0 }
 0xba4   : > { %7258 = vmatpush3.bf16.xpose.msra.mxu1 %v1873_v22 }
 0xba5   : > { %7269 = vmatprep.subr.bf16.mxu1 %v8116_v1 }
 0xbab   : > { %7260 = vmatmul.mubr.msk.bf16.vlgmr.msra.gmra.mrb[40].mxu1 %vm842_vm2, %v1867_v6 }
 0xbac   : > { %7271 = vmatprep.mubr.msk.bf16.mxu1 %vm8117_vm0, %v8116_v1  ;;  %7270 = vmatpush3.bf16.msra.mxu1 %v1991_v47 }
 0xbad   : > { %7283 = vmatprep.subr.bf16.mxu1 %v8116_v1 }
 0xc72   : > { %v1860_v41 = vpop.f32.mrb[40].mxu0 }
 0xc73   : > { %v7255_v42 = vpop.f32.mrb[41].mxu0 }
 0xc74   : > { %v1863_v43 = vpop.f32.mrb[42].mxu0  ;;  %v7860_v42 = vld [vmem:[%s9458_s8 + $0x10] sm:$0xff]  }
 0xc75   : > { %v7256_v44 = vpop.f32.mrb[43].mxu0  ;;  %v1939_v45 = vpack.c.bf16 %v1863_v43, %v1860_v41  ;;  %v7861_v43 = vld [vmem:[%s9458_s8 + $0x18] sm:$0xff]  }
 0xc77   : > { %7264 = vmatpush3.bf16.msra.mxu0 %v1939_v45 }
 0xc78   : > { %7275 = vmatprep.subr.bf16.mxu0 %v8116_v1 }
 0xc7e   : > { %v1909_v23 = vpop.f32.mrb[40].mxu1 }
 0xc7f   : > { %v1910_v24 = vadd.f32 %v1909_v23, %v8343_v25  ;;  %v7261_v26 = vpop.f32.mrb[41].mxu1 }
 0xc80   : > { %v1912_v28 = vpop.f32.mrb[42].mxu1 }
 0xc81   : > { %v1913_v29 = vadd.f32 %v1912_v28, %v8348_v27  ;;  %v7262_v30 = vpop.f32.mrb[43].mxu1  ;;  %v1916_v31 = vsel %vm890_vm3, %v1910_v24, -inf }
 0xc82   : > { %1917 = vmax.xlane.f32.xlu0 %v1916_v31 }
 0xc83   : > { %v1919_v32 = vsel %vm890_vm3, %v1913_v29, -inf }
 0xc84   : > { %1920 = vmax.xlane.f32.xlu1 %v1919_v32 }
 0xd0f   : > { %v1918_v33 = vpop.xlane.xlu0 %1917 }
 0xd10   : > { %v1922_v34 = vsub.f32 %v1910_v24, %v1918_v33 }
 0xd11   : > { %v1921_v35 = vpop.xlane.xlu1 %1920 }
 0xd12   : > { %v1924_v36 = vmul.f32 1.442695, %v1922_v34  ;;  %v1923_v37 = vsub.f32 %v1913_v29, %v1921_v35 }
 0xd14   : > { %7948 = vpow2.f32 %v1924_v36  ;;  %v1926_v38 = vmul.f32 1.442695, %v1923_v37 }
 0xd16   : > { %7950 = vpow2.f32 %v1926_v38 }
 0xd1e   : > { %v7949_v25 = vpop.eup %7948 }
 0xd1f   : > { %v1928_v39 = vsel %vm890_vm3, %v7949_v25, 0.0 }
 0xd20   : > { %v7951_v40 = vpop.eup %7950  ;;  %1929 = vadd.xlane.f32.xlu0 %v1928_v39 }
 0xd21   : > { %v1931_v27 = vsel %vm890_vm3, %v7951_v40, 0.0 }
 0xd22   : > { %1932 = vadd.xlane.f32.xlu1 %v1931_v27 }
 0xdad   : > { %v1930_v48 = vpop.xlane.xlu0 %1929 }
 0xdae   : > { %7952 = vrcp.f32 %v1930_v48 }
 0xdaf   : > { %v1933_v49 = vpop.xlane.xlu1 %1932 }
 0xdb0   : > { %7954 = vrcp.f32 %v1933_v49 }
 0xdb8   : > { %v7953_v50 = vpop.eup %7952 }
 0xdb9   : > { %v1936_v52 = vmul.f32 %v7953_v50, %v7949_v25  ;;  %v7858_v50 = vld [vmem:[%s9459_s9 + $0x10] sm:$0xff]  }
 0xdba   : > { %v7955_v51 = vpop.eup %7954 }
 0xdbb   : > { %v1937_v53 = vmul.f32 %v7955_v51, %v7951_v40 }
 0xdbd   : > { %v1938_v54 = vpack.c.bf16 %v1937_v53, %v1936_v52  ;;  %v7859_v52 = vld [vmem:[%s9459_s9 + $0x18] sm:$0xff]  }
 0xdbf   : > { %7266 = vmatmul.mubr.msk.bf16.vlgmr.msra.gmra.mrb[44].mxu0 %vm890_vm3, %v1938_v54 }
 0xdc0   : > { %7279 = vmatprep.mubr.msk.bf16.mxu0 %vm8117_vm0, %v8116_v1  ;;  %7276 = vmatpush3.bf16.msra.mxu0 %v7854_v55 }
 0xdc1   : > { %7277 = vmatprep.subr.bf16.mxu0 %v8116_v1 }
 0xdc4   : > { %7278 = vmatpush3.bf16.msra.mxu0 %v7855_v56 }
 0xdc5   : > { %7291 = vmatprep.subr.bf16.mxu0 %v8116_v1 }
 0xdc7   : > { %7280 = vmatmul.mubr.msk.bf16.vlgmr.msra.gmra.mrb[48].mxu0 %vm681_vm1, %v8313_v11 }
 0xdc8   : > { %7295 = vmatprep.mubr.msk.bf16.mxu0 %vm8117_vm0, %v8116_v1 }
 0xe92   : > { %v1977_v57 = vpop.f32.mrb[44].mxu0 }
 0xe93   : > { %v7267_v58 = vpop.f32.mrb[45].mxu0 }
 0xe94   : > { %v1980_v59 = vpop.f32.mrb[46].mxu0 }
 0xe95   : > { %v1984_v61 = vpack.c.bf16 %v1980_v59, %v1977_v57  ;;  %v7268_v62 = vpop.f32.mrb[47].mxu0 }
 0xe97   : > { %7272 = vmatmul.mubr.msk.bf16.vlgmr.msra.gmra.mrb[44].mxu1 %vm842_vm2, %v1984_v61 }
 0xe98   : > { %7284 = vmatpush3.bf16.msra.mxu1 %v7852_v60  ;;  %7287 = vmatprep.mubr.msk.bf16.mxu1 %vm8117_vm0, %v8116_v1 }
 0xe99   : > { %7285 = vmatprep.subr.bf16.mxu1 %v8116_v1 }
 0xe9a   : > { %v2095_v0 = vpop.f32.mrb[48].mxu0 }
 0xe9b   : > { %v7281_v2 = vpop.f32.mrb[49].mxu0 }
 0xe9c   : > { %7286 = vmatpush3.bf16.msra.mxu1 %v7853_v63  ;;  %v2098_v3 = vpop.f32.mrb[50].mxu0 }
 0xe9d   : > { %7299 = vmatprep.subr.bf16.mxu1 %v8116_v1  ;;  %v2216_v4 = vpack.c.bf16 %v2098_v3, %v2095_v0  ;;  %v7282_v5 = vpop.f32.mrb[51].mxu0 }
 0xe9f   : > { %7288 = vmatmul.mubr.msk.bf16.vlgmr.msra.gmra.mrb[48].mxu1 %vm681_vm1, %v8313_v11 }
 0xea0   : > { %7301 = vmatprep.mubr.msk.bf16.mxu1 %vm8117_vm0, %v8116_v1 }
 0xf6a   : > { %v2027_v6 = vpop.f32.mrb[44].mxu1 }
 0xf6b   : > { %v8589_v7 = vadd.f32 %v2027_v6, %v8524_v9  ;;  %v7273_v8 = vpop.f32.mrb[45].mxu1  ;;  %v7856_v9 = vld [vmem:[%s9460_s10] sm:$0xff]   ;;  %v7862_v6 = vld [vmem:[%s9460_s10 + $0x10] sm:$0xff]  }
 0xf6c   : > { %v2030_v12 = vpop.f32.mrb[46].mxu1  ;;  %7292 = vmatpush3.bf16.msra.mxu0 %v7856_v9  ;;  %v7863_v8 = vld [vmem:[%s9460_s10 + $0x18] sm:$0xff]  }
 0xf6d   : > { %v8592_v13 = vadd.f32 %v2030_v12, %v8527_v15  ;;  %v7274_v16 = vpop.f32.mrb[47].mxu1  ;;  %v7857_v15 = vld [vmem:[%s9460_s10 + $0x8] sm:$0xff]   ;;  %7293 = vmatprep.subr.bf16.mxu0 %v8116_v1 }
 0xf70   : > { %7294 = vmatpush3.bf16.msra.mxu0 %v7857_v15 }
 0xf71   : > { %7305 = vmatprep.subr.bf16.mxu0 %v8116_v1 }
 0xf72   : > { %v2152_v17 = vpop.f32.mrb[48].mxu1 }
 0xf73   : > { %v7289_v18 = vpop.f32.mrb[49].mxu1  ;;  %7296 = vmatmul.mubr.msk.bf16.vlgmr.msra.gmra.mrb[52].mxu0 %vm681_vm1, %v8313_v11 }
 0xf74   : > { %v2155_v19 = vpop.f32.mrb[50].mxu1  ;;  %7307 = vmatprep.mubr.msk.bf16.mxu0 %vm8117_vm0, %v8116_v1 }
 0xf75   : > { %v2217_v20 = vpack.c.bf16 %v2155_v19, %v2152_v17  ;;  %v7290_v21 = vpop.f32.mrb[51].mxu1 }
 0xf77   : > { %v2222_v22 = vsel %vm842_vm2, %v2217_v20, 0 }
 0xf78   : > { %7300 = vmatpush3.bf16.xpose.msra.mxu1 %v2222_v22 }
 0xf79   : > { %7311 = vmatprep.subr.bf16.mxu1 %v8116_v1 }
 0xf7f   : > { %7302 = vmatmul.mubr.msk.bf16.vlgmr.msra.gmra.mrb[52].mxu1 %vm842_vm2, %v2216_v4 }
 0xf80   : > { %7315 = vmatprep.mubr.msk.bf16.mxu1 %vm8117_vm0, %v8116_v1  ;;  %7312 = vmatpush3.bf16.msra.mxu1 %v7860_v42 }
 0xf81   : > { %7313 = vmatprep.subr.bf16.mxu1 %v8116_v1 }
 0xf84   : > { %7314 = vmatpush3.bf16.msra.mxu1 %v7861_v43  ;;  %v7864_v43 = vld [vmem:[%s9459_s9 + $0x20] sm:$0xff]  }
 0xf85   : > { %7327 = vmatprep.subr.bf16.mxu1 %v8116_v1 }
 0xf87   : > { %7316 = vmatmul.mubr.msk.bf16.vlgmr.msra.gmra.mrb[56].mxu1 %vm681_vm1, %v8313_v11 }
 0xf88   : > { %7331 = vmatprep.mubr.msk.bf16.mxu1 %vm8117_vm0, %v8116_v1  ;;  %7328 = vmatpush3.bf16.msra.mxu1 %v7862_v6 }
 0xf89   : > { %7329 = vmatprep.subr.bf16.mxu1 %v8116_v1 }
 0xf8c   : > { %7330 = vmatpush3.bf16.msra.mxu1 %v7863_v8 }
 0xf8d   : > { %7341 = vmatprep.subr.bf16.mxu1 %v8116_v1 }
 0xf8f   : > { %7332 = vmatmul.mubr.msk.bf16.vlgmr.msra.gmra.mrb[60].mxu1 %vm681_vm1, %v8313_v11 }
 0xf90   : > { %7343 = vmatprep.mubr.msk.bf16.mxu1 %vm8117_vm0, %v8116_v1 }
0x1046   : > { %v2209_v25 = vpop.f32.mrb[52].mxu0 }
0x1047   : > { %v7297_v39 = vpop.f32.mrb[53].mxu0 }
0x1048   : > { %v2212_v40 = vpop.f32.mrb[54].mxu0  ;;  %v2334_v39 = vld [vmem:[%s9461_s11] sm:$0x3] }
0x1049   : > { %v7298_v27 = vpop.f32.mrb[55].mxu0  ;;  %v2288_v41 = vpack.c.bf16 %v2212_v40, %v2209_v25  ;;  %v2680_v42 = vsel %vm1258_vm4, %v2334_v39, 0 }
0x104b   : > { %7306 = vmatpush3.bf16.msra.mxu0 %v2288_v41 }
0x104c   : > { %7319 = vmatprep.subr.bf16.mxu0 %v8116_v1 }
0x1052   : > { %v2258_v10 = vpop.f32.mrb[52].mxu1 }
0x1053   : > { %v7303_v14 = vpop.f32.mrb[53].mxu1  ;;  %v2265_v23 = vsel %vm890_vm3, %v2258_v10, -inf }
0x1054   : > { %2266 = vmax.xlane.f32.xlu0 %v2265_v23  ;;  %v2261_v24 = vpop.f32.mrb[54].mxu1 }
0x1055   : > { %v7304_v26 = vpop.f32.mrb[55].mxu1  ;;  %v2268_v28 = vsel %vm890_vm3, %v2261_v24, -inf }
0x1056   : > { %2269 = vmax.xlane.f32.xlu1 %v2268_v28 }
0x105a   : > { %v2386_v53 = vpop.f32.mrb[56].mxu1 }
0x105b   : > { %v7317_v54 = vpop.f32.mrb[57].mxu1 }
0x105c   : > { %v2389_v55 = vpop.f32.mrb[58].mxu1 }
0x105d   : > { %v2509_v56 = vpack.c.bf16 %v2389_v55, %v2386_v53  ;;  %v7318_v57 = vpop.f32.mrb[59].mxu1 }
0x10e1   : > { %v2267_v29 = vpop.xlane.xlu0 %2266 }
0x10e2   : > { %v2271_v30 = vsub.f32 %v2258_v10, %v2267_v29  ;;  %v2502_v29 = vpop.f32.mrb[60].mxu1 }
0x10e3   : > { %v2270_v31 = vpop.xlane.xlu1 %2269 }
0x10e4   : > { %v2273_v32 = vmul.f32 1.442695, %v2271_v30  ;;  %v2272_v33 = vsub.f32 %v2261_v24, %v2270_v31  ;;  %v7333_v30 = vpop.f32.mrb[61].mxu1 }
0x10e5   : > { %v2505_v31 = vpop.f32.mrb[62].mxu1 }
0x10e6   : > { %7956 = vpow2.f32 %v2273_v32  ;;  %v2275_v34 = vmul.f32 1.442695, %v2272_v33  ;;  %v7334_v32 = vpop.f32.mrb[63].mxu1  ;;  %v2581_v33 = vpack.c.bf16 %v2505_v31, %v2502_v29 }
0x10e8   : > { %7958 = vpow2.f32 %v2275_v34  ;;  %7342 = vmatpush3.bf16.msra.mxu1 %v2581_v33  ;;  %v6573_v34 = vld [vmem:[%s9461_s11 + $0x2] sm:$0x3] }
0x10e9   : > { %7353 = vmatprep.subr.bf16.mxu1 %v8116_v1 }
0x10f0   : > { %v7957_v35 = vpop.eup %7956 }
0x10f1   : > { %v2277_v36 = vsel %vm890_vm3, %v7957_v35, 0.0 }
0x10f2   : > { %v7959_v37 = vpop.eup %7958  ;;  %2278 = vadd.xlane.f32.xlu0 %v2277_v36 }
0x10f3   : > { %v2280_v38 = vsel %vm890_vm3, %v7959_v37, 0.0 }
0x10f4   : > { %2281 = vadd.xlane.f32.xlu1 %v2280_v38 }
0x117f   : > { %v2279_v44 = vpop.xlane.xlu0 %2278 }
0x1180   : > { %7960 = vrcp.f32 %v2279_v44  ;;  %v7865_v44 = vld [vmem:[%s9459_s9 + $0x28] sm:$0xff]  }
0x1181   : > { %v2282_v45 = vpop.xlane.xlu1 %2281 }
0x1182   : > { %7962 = vrcp.f32 %v2282_v45 }
0x118a   : > { %v7961_v46 = vpop.eup %7960 }
0x118b   : > { %v2285_v48 = vmul.f32 %v7961_v46, %v7957_v35  ;;  %v2633_v35 = vsel %vm1258_vm4, %v6573_v34, 0 }
0x118c   : > { %v7963_v47 = vpop.eup %7962 }
0x118d   : > { %v2286_v49 = vmul.f32 %v7963_v47, %v7959_v37 }
0x118f   : > { %v2287_v51 = vpack.c.bf16 %v2286_v49, %v2285_v48  ;;  %v7866_v48 = vld [vmem:[%s9458_s8 + $0x20] sm:$0xff]  }
0x1191   : > { %7308 = vmatmul.mubr.msk.bf16.vlgmr.msra.gmra.mrb[56].mxu0 %vm890_vm3, %v2287_v51  ;;  %v7867_v51 = vld [vmem:[%s9458_s8 + $0x28] sm:$0xff]  }
0x1192   : > { %7320 = vmatpush3.bf16.msra.mxu0 %v7858_v50  ;;  %7323 = vmatprep.mubr.msk.bf16.mxu0 %vm8117_vm0, %v8116_v1 }
0x1193   : > { %7321 = vmatprep.subr.bf16.mxu0 %v8116_v1 }
0x1196   : > { %7322 = vmatpush3.bf16.msra.mxu0 %v7859_v52 }
0x1197   : > { %7335 = vmatprep.subr.bf16.mxu0 %v8116_v1 }
0x1199   : > { %7324 = vmatmul.mubr.msk.bf16.vlgmr.msra.gmra.mrb[60].mxu0 %vm681_vm1, %v8313_v11 }
0x119a   : > { %7337 = vmatprep.mubr.msk.bf16.mxu0 %vm8117_vm0, %v8116_v1 }
0x1264   : > { %v8643_v58 = vpop.f32.mrb[56].mxu0 }
0x1265   : > { %v7309_v59 = vpop.f32.mrb[57].mxu0 }
0x1266   : > { %v8645_v60 = vpop.f32.mrb[58].mxu0 }
0x1267   : > { %v2333_v61 = vpack.c.bf16 %v8645_v60, %v8643_v58  ;;  %v7310_v62 = vpop.f32.mrb[59].mxu0 }
0x126c   : > { %v2444_v63 = vpop.f32.mrb[60].mxu0 }
0x126d   : > { %v7325_v0 = vpop.f32.mrb[61].mxu0 }
0x126e   : > { %v2447_v2 = vpop.f32.mrb[62].mxu0 }
0x126f   : > { %v2510_v3 = vpack.c.bf16 %v2447_v2, %v2444_v63  ;;  %v7326_v4 = vpop.f32.mrb[63].mxu0 }
0x1271   : > { %v2515_v5 = vsel %vm842_vm2, %v2510_v3, 0 }
0x1272   : > { %7336 = vmatpush3.bf16.xpose.msra.mxu0 %v2515_v5 }
0x1273   : > { %7347 = vmatprep.subr.bf16.mxu0 %v8116_v1 }
0x1279   : > { %7338 = vmatmul.mubr.msk.bf16.vlgmr.msra.gmra.mrb[64].mxu0 %vm842_vm2, %v2509_v56 }
0x127a   : > { %7349 = vmatprep.mubr.msk.bf16.mxu0 %vm8117_vm0, %v8116_v1  ;;  %7348 = vmatpush3.bf16.msra.mxu0 %v2633_v35 }
0x127b   : > { %7359 = vmatprep.subr.bf16.mxu0 %v8116_v1 }
0x134c   : > { %v2551_v12 = vpop.f32.mrb[64].mxu0 }
0x134d   : > { %v7339_v16 = vpop.f32.mrb[65].mxu0  ;;  %v2558_v17 = vsel %vm890_vm3, %v2551_v12, -inf }
0x134e   : > { %2559 = vmax.xlane.f32.xlu0 %v2558_v17  ;;  %v2554_v18 = vpop.f32.mrb[66].mxu0  ;;  %v7868_v17 = vld [vmem:[%s9460_s10 + $0x20] sm:$0xff]  }
0x134f   : > { %v7340_v19 = vpop.f32.mrb[67].mxu0  ;;  %v2561_v20 = vsel %vm890_vm3, %v2554_v18, -inf }
0x1350   : > { %2562 = vmax.xlane.f32.xlu1 %v2561_v20 }
0x13db   : > { %v2560_v21 = vpop.xlane.xlu0 %2559 }
0x13dc   : > { %v2564_v22 = vsub.f32 %v2551_v12, %v2560_v21 }
0x13dd   : > { %v2563_v9 = vpop.xlane.xlu1 %2562 }
0x13de   : > { %v2566_v15 = vmul.f32 1.442695, %v2564_v22  ;;  %v2565_v10 = vsub.f32 %v2554_v18, %v2563_v9  ;;  %v7869_v18 = vld [vmem:[%s9460_s10 + $0x28] sm:$0xff]  }
0x13e0   : > { %7964 = vpow2.f32 %v2566_v15  ;;  %v2568_v14 = vmul.f32 1.442695, %v2565_v10 }
0x13e2   : > { %7966 = vpow2.f32 %v2568_v14 }
0x13ea   : > { %v7965_v23 = vpop.eup %7964 }
0x13eb   : > { %v2570_v24 = vsel %vm890_vm3, %v7965_v23, 0.0 }
0x13ec   : > { %v7967_v26 = vpop.eup %7966  ;;  %2571 = vadd.xlane.f32.xlu0 %v2570_v24 }
0x13ed   : > { %v2573_v28 = vsel %vm890_vm3, %v7967_v26, 0.0 }
0x13ee   : > { %2574 = vadd.xlane.f32.xlu1 %v2573_v28 }
0x1479   : > { %v2572_v36 = vpop.xlane.xlu0 %2571 }
0x147a   : > { %7968 = vrcp.f32 %v2572_v36 }
0x147b   : > { %v2575_v37 = vpop.xlane.xlu1 %2574 }
0x147c   : > { %7970 = vrcp.f32 %v2575_v37 }
0x1484   : > { %v7969_v38 = vpop.eup %7968 }
0x1485   : > { %v2578_v40 = vmul.f32 %v7969_v38, %v7965_v23  ;;  %v6599_v38 = vld [vmem:[%s9461_s11 + $0x4] sm:$0x3] }
0x1486   : > { %v7971_v25 = vpop.eup %7970 }
0x1487   : > { %v2579_v27 = vmul.f32 %v7971_v25, %v7967_v26  ;;  %v3021_v25 = vsel %vm1258_vm4, %v6599_v38, 0 }
0x1489   : > { %v2580_v41 = vpack.c.bf16 %v2579_v27, %v2578_v40 }
0x148b   : > { %7344 = vmatmul.mubr.msk.bf16.vlgmr.msra.gmra.mrb[64].mxu1 %vm890_vm3, %v2580_v41 }
0x148c   : > { %7354 = vmatpush3.bf16.msra.mxu1 %v2680_v42  ;;  %7355 = vmatprep.mubr.msk.bf16.mxu1 %vm8117_vm0, %v8116_v1 }
0x148d   : > { %7367 = vmatprep.subr.bf16.mxu1 %v8116_v1 }
0x1493   : > { %7356 = vmatmul.mubr.msk.bf16.vlgmr.msra.gmra.mrb[68].mxu1 %vm842_vm2, %v2333_v61 }
0x1494   : > { %7368 = vmatpush3.bf16.msra.mxu1 %v7864_v43  ;;  %7371 = vmatprep.mubr.msk.bf16.mxu1 %vm8117_vm0, %v8116_v1 }
0x1495   : > { %7369 = vmatprep.subr.bf16.mxu1 %v8116_v1 }
0x1498   : > { %7370 = vmatpush3.bf16.msra.mxu1 %v7865_v44 }
0x1499   : > { %7383 = vmatprep.subr.bf16.mxu1 %v8116_v1 }
0x149b   : > { %7372 = vmatmul.mubr.msk.bf16.vlgmr.msra.gmra.mrb[72].mxu1 %vm681_vm1, %v8313_v11 }
0x149c   : > { %7385 = vmatprep.mubr.msk.bf16.mxu1 %vm8117_vm0, %v8116_v1 }
0x155e   : > { %v2619_v45 = vpop.f32.mrb[64].mxu1 }
0x155f   : > { %v7345_v46 = vpop.f32.mrb[65].mxu1 }
0x1560   : > { %v2622_v47 = vpop.f32.mrb[66].mxu1  ;;  %v7873_v46 = vld [vmem:[%s9458_s8 + $0x38] sm:$0xff]  }
0x1561   : > { %v2626_v49 = vpack.c.bf16 %v2622_v47, %v2619_v45  ;;  %v7346_v50 = vpop.f32.mrb[67].mxu1  ;;  %v7872_v45 = vld [vmem:[%s9458_s8 + $0x30] sm:$0xff]  }
0x1562   : > { %v7870_v50 = vld [vmem:[%s9459_s9 + $0x30] sm:$0xff]  }
0x1563   : > { %7350 = vmatmul.mubr.msk.bf16.vlgmr.msra.gmra.mrb[68].mxu0 %vm842_vm2, %v2626_v49 }
0x1564   : > { %7360 = vmatpush3.bf16.msra.mxu0 %v7866_v48  ;;  %7363 = vmatprep.mubr.msk.bf16.mxu0 %vm8117_vm0, %v8116_v1 }
0x1565   : > { %7361 = vmatprep.subr.bf16.mxu0 %v8116_v1 }
0x1566   : > { %v2716_v52 = vpop.f32.mrb[68].mxu1 }
0x1567   : > { %v7357_v53 = vpop.f32.mrb[69].mxu1 }
0x1568   : > { %v2719_v54 = vpop.f32.mrb[70].mxu1  ;;  %7362 = vmatpush3.bf16.msra.mxu0 %v7867_v51  ;;  %v7871_v53 = vld [vmem:[%s9459_s9 + $0x38] sm:$0xff]  }
0x1569   : > { %v7358_v55 = vpop.f32.mrb[71].mxu1  ;;  %7375 = vmatprep.subr.bf16.mxu0 %v8116_v1 }
0x156b   : > { %7364 = vmatmul.mubr.msk.bf16.vlgmr.msra.gmra.mrb[72].mxu0 %vm681_vm1, %v8313_v11 }
0x156c   : > { %7379 = vmatprep.mubr.msk.bf16.mxu0 %vm8117_vm0, %v8116_v1  ;;  %7376 = vmatpush3.bf16.msra.mxu0 %v7868_v17 }
0x156d   : > { %7377 = vmatprep.subr.bf16.mxu0 %v8116_v1 }
0x156e   : > { %v2832_v56 = vpop.f32.mrb[72].mxu1 }
0x156f   : > { %v7373_v57 = vpop.f32.mrb[73].mxu1 }
0x1570   : > { %v2835_v58 = vpop.f32.mrb[74].mxu1  ;;  %7378 = vmatpush3.bf16.msra.mxu0 %v7869_v18 }
0x1571   : > { %v2898_v59 = vpack.c.bf16 %v2835_v58, %v2832_v56  ;;  %v7374_v60 = vpop.f32.mrb[75].mxu1  ;;  %7389 = vmatprep.subr.bf16.mxu0 %v8116_v1 }
0x1573   : > { %v2903_v61 = vsel %vm842_vm2, %v2898_v59, 0  ;;  %7380 = vmatmul.mubr.msk.bf16.vlgmr.msra.gmra.mrb[76].mxu0 %vm681_vm1, %v8313_v11 }
0x1574   : > { %7384 = vmatpush3.bf16.xpose.msra.mxu1 %v2903_v61  ;;  %7391 = vmatprep.mubr.msk.bf16.mxu0 %vm8117_vm0, %v8116_v1 }
0x1575   : > { %7395 = vmatprep.subr.bf16.mxu1 %v8116_v1 }
0x1636   : > { %v2669_v62 = vpop.f32.mrb[68].mxu0 }
0x1637   : > { %v8719_v63 = vadd.f32 %v2716_v52, %v2669_v62  ;;  %v7351_v0 = vpop.f32.mrb[69].mxu0 }
0x1638   : > { %v2672_v2 = vpop.f32.mrb[70].mxu0 }
0x1639   : > { %v8721_v3 = vadd.f32 %v2719_v54, %v2672_v2  ;;  %v7352_v4 = vpop.f32.mrb[71].mxu0 }
0x163e   : > { %v2774_v5 = vpop.f32.mrb[72].mxu0 }
0x163f   : > { %v7365_v6 = vpop.f32.mrb[73].mxu0 }
0x1640   : > { %v2777_v8 = vpop.f32.mrb[74].mxu0 }
0x1641   : > { %v2897_v12 = vpack.c.bf16 %v2777_v8, %v2774_v5  ;;  %v7366_v16 = vpop.f32.mrb[75].mxu0 }
0x1643   : > { %7386 = vmatmul.mubr.msk.bf16.vlgmr.msra.gmra.mrb[76].mxu1 %vm842_vm2, %v2897_v12 }
0x1644   : > { %7397 = vmatprep.mubr.msk.bf16.mxu1 %vm8117_vm0, %v8116_v1  ;;  %7396 = vmatpush3.bf16.msra.mxu1 %v3021_v25 }
0x1645   : > { %7409 = vmatprep.subr.bf16.mxu1 %v8116_v1 }
0x1646   : > { %v2890_v33 = vpop.f32.mrb[76].mxu0 }
0x1647   : > { %v7381_v34 = vpop.f32.mrb[77].mxu0 }
0x1648   : > { %v2893_v35 = vpop.f32.mrb[78].mxu0 }
0x1649   : > { %v7382_v36 = vpop.f32.mrb[79].mxu0  ;;  %v2969_v37 = vpack.c.bf16 %v2893_v35, %v2890_v33  ;;  %v6624_v35 = vld [vmem:[%s9461_s11 + $0x6] sm:$0x3] }
0x164a   : > { %v3364_v36 = vsel %vm1258_vm4, %v6624_v35, 0  ;;  %v7882_v35 = vld [vmem:[%s9463_s13 + $0x10] sm:$0xff]  }
0x164b   : > { %7390 = vmatpush3.bf16.msra.mxu0 %v2969_v37 }
0x164c   : > { %7401 = vmatprep.subr.bf16.mxu0 %v8116_v1 }
0x1716   : > { %v2939_v19 = vpop.f32.mrb[76].mxu1 }
0x1717   : > { %v7387_v20 = vpop.f32.mrb[77].mxu1  ;;  %v2946_v21 = vsel %vm890_vm3, %v2939_v19, -inf }
0x1718   : > { %2947 = vmax.xlane.f32.xlu0 %v2946_v21  ;;  %v2942_v22 = vpop.f32.mrb[78].mxu1 }
0x1719   : > { %v7388_v9 = vpop.f32.mrb[79].mxu1  ;;  %v2949_v15 = vsel %vm890_vm3, %v2942_v22, -inf }
0x171a   : > { %2950 = vmax.xlane.f32.xlu1 %v2949_v15 }
0x17a5   : > { %v2948_v10 = vpop.xlane.xlu0 %2947 }
0x17a6   : > { %v2952_v14 = vsub.f32 %v2939_v19, %v2948_v10 }
0x17a7   : > { %v2951_v23 = vpop.xlane.xlu1 %2950 }
0x17a8   : > { %v2954_v24 = vmul.f32 1.442695, %v2952_v14  ;;  %v2953_v26 = vsub.f32 %v2942_v22, %v2951_v23 }
0x17aa   : > { %7972 = vpow2.f32 %v2954_v24  ;;  %v2956_v28 = vmul.f32 1.442695, %v2953_v26 }
0x17ac   : > { %7974 = vpow2.f32 %v2956_v28 }
0x17b4   : > { %v7973_v29 = vpop.eup %7972 }
0x17b5   : > { %v2958_v30 = vsel %vm890_vm3, %v7973_v29, 0.0 }
0x17b6   : > { %v7975_v31 = vpop.eup %7974  ;;  %2959 = vadd.xlane.f32.xlu0 %v2958_v30 }
0x17b7   : > { %v2961_v32 = vsel %vm890_vm3, %v7975_v31, 0.0 }
0x17b8   : > { %2962 = vadd.xlane.f32.xlu1 %v2961_v32 }
0x1843   : > { %v2960_v39 = vpop.xlane.xlu0 %2959 }
0x1844   : > { %7976 = vrcp.f32 %v2960_v39 }
0x1845   : > { %v2963_v40 = vpop.xlane.xlu1 %2962 }
0x1846   : > { %7978 = vrcp.f32 %v2963_v40 }
0x184e   : > { %v7977_v27 = vpop.eup %7976 }
0x184f   : > { %v2966_v42 = vmul.f32 %v7977_v27, %v7973_v29 }
0x1850   : > { %v7979_v41 = vpop.eup %7978 }
0x1851   : > { %v2967_v43 = vmul.f32 %v7979_v41, %v7975_v31 }
0x1853   : > { %v2968_v44 = vpack.c.bf16 %v2967_v43, %v2966_v42 }
0x1855   : > { %7392 = vmatmul.mubr.msk.bf16.vlgmr.msra.gmra.mrb[80].mxu0 %vm890_vm3, %v2968_v44 }
0x1856   : > { %7405 = vmatprep.mubr.msk.bf16.mxu0 %vm8117_vm0, %v8116_v1  ;;  %7402 = vmatpush3.bf16.msra.mxu0 %v7872_v45 }
0x1857   : > { %7403 = vmatprep.subr.bf16.mxu0 %v8116_v1 }
0x185a   : > { %7404 = vmatpush3.bf16.msra.mxu0 %v7873_v46 }
0x185b   : > { %7417 = vmatprep.subr.bf16.mxu0 %v8116_v1 }
0x185d   : > { %7406 = vmatmul.mubr.msk.bf16.vlgmr.msra.gmra.mrb[84].mxu0 %vm681_vm1, %v8313_v11 }
0x185e   : > { %7421 = vmatprep.mubr.msk.bf16.mxu0 %vm8117_vm0, %v8116_v1 }
0x1928   : > { %v3007_v47 = vpop.f32.mrb[80].mxu0 }
0x1929   : > { %v7393_v48 = vpop.f32.mrb[81].mxu0 }
0x192a   : > { %v3010_v49 = vpop.f32.mrb[82].mxu0  ;;  %v7877_v48 = vld [vmem:[%s9465_s15] sm:$0xff]  }
0x192b   : > { %v3014_v51 = vpack.c.bf16 %v3010_v49, %v3007_v47  ;;  %v7394_v52 = vpop.f32.mrb[83].mxu0  ;;  %v7876_v47 = vld [vmem:[%s9463_s13] sm:$0xff]   ;;  %v7878_v49 = vld [vmem:[%s9463_s13 + $0x8] sm:$0xff]  }
0x192d   : > { %7398 = vmatmul.mubr.msk.bf16.vlgmr.msra.gmra.mrb[80].mxu1 %vm842_vm2, %v3014_v51 }
0x192e   : > { %7410 = vmatpush3.bf16.msra.mxu1 %v7870_v50  ;;  %7413 = vmatprep.mubr.msk.bf16.mxu1 %vm8117_vm0, %v8116_v1  ;;  %v7879_v50 = vld [vmem:[%s9465_s15 + $0x8] sm:$0xff]  }
0x192f   : > { %7411 = vmatprep.subr.bf16.mxu1 %v8116_v1 }
0x1930   : > { %v3117_v54 = vpop.f32.mrb[84].mxu0 }
0x1931   : > { %v7407_v55 = vpop.f32.mrb[85].mxu0 }
0x1932   : > { %7412 = vmatpush3.bf16.msra.mxu1 %v7871_v53  ;;  %v3120_v56 = vpop.f32.mrb[86].mxu0 }
0x1933   : > { %7425 = vmatprep.subr.bf16.mxu1 %v8116_v1  ;;  %v3240_v57 = vpack.c.bf16 %v3120_v56, %v3117_v54  ;;  %v7408_v58 = vpop.f32.mrb[87].mxu0  ;;  %v6626_v54 = vld [vmem:[%s9462_s12] ss:$0 sm:$0xff] }
0x1935   : > { %7414 = vmatmul.mubr.msk.bf16.vlgmr.msra.gmra.mrb[84].mxu1 %vm681_vm1, %v8313_v11 }
0x1936   : > { %7427 = vmatprep.mubr.msk.bf16.mxu1 %vm8117_vm0, %v8116_v1 }
0x1a00   : > { %v3057_v59 = vpop.f32.mrb[80].mxu1 }
0x1a01   : > { %v8779_v60 = vadd.f32 %v3057_v59, %v8719_v63  ;;  %v7399_v61 = vpop.f32.mrb[81].mxu1  ;;  %v7874_v63 = vld [vmem:[%s9460_s10 + $0x30] sm:$0xff]  }
0x1a02   : > { %v3060_v62 = vpop.f32.mrb[82].mxu1  ;;  %7418 = vmatpush3.bf16.msra.mxu0 %v7874_v63 }
0x1a03   : > { %v8782_v0 = vadd.f32 %v3060_v62, %v8721_v3  ;;  %v7400_v2 = vpop.f32.mrb[83].mxu1  ;;  %v7875_v3 = vld [vmem:[%s9460_s10 + $0x38] sm:$0xff]   ;;  %7419 = vmatprep.subr.bf16.mxu0 %v8116_v1  ;;  %v6538_v62 = vld [vmem:[%s9457_s7] ss:$0 sm:$0xff] }
0x1a06   : > { %7420 = vmatpush3.bf16.msra.mxu0 %v7875_v3  ;;  %v6631_v3 = vld [vmem:[%s9466_s16] ss:$0 sm:$0xff] }
0x1a07   : > { %7431 = vmatprep.subr.bf16.mxu0 %v8116_v1 }
0x1a08   : > { %v3175_v4 = vpop.f32.mrb[84].mxu1 }
0x1a09   : > { %v7415_v5 = vpop.f32.mrb[85].mxu1  ;;  %7422 = vmatmul.mubr.msk.bf16.vlgmr.msra.gmra.mrb[88].mxu0 %vm681_vm1, %v8313_v11 }
0x1a0a   : > { %v3178_v6 = vpop.f32.mrb[86].mxu1  ;;  %7433 = vmatprep.mubr.msk.bf16.mxu0 %vm8117_vm0, %v8116_v1 }
0x1a0b   : > { %v3241_v8 = vpack.c.bf16 %v3178_v6, %v3175_v4  ;;  %v7416_v12 = vpop.f32.mrb[87].mxu1  ;;  %v2044_v4 = vadd.f32 %v6538_v62, %v8592_v13  ;;  %v6627_v13 = vld [vmem:[%s9464_s14] ss:$0 sm:$0xff] }
0x1a0c   : > { %v7880_v12 = vld [vmem:[%s9467_s17] sm:$0xff]  }
0x1a0d   : > { %v3246_v16 = vsel %vm842_vm2, %v3241_v8, 0 }
0x1a0e   : > { %7426 = vmatpush3.bf16.xpose.msra.mxu1 %v3246_v16 }
0x1a0f   : > { %7437 = vmatprep.subr.bf16.mxu1 %v8116_v1 }
0x1a15   : > { %7428 = vmatmul.mubr.msk.bf16.vlgmr.msra.gmra.mrb[88].mxu1 %vm842_vm2, %v3240_v57 }
0x1a16   : > { %7439 = vmatprep.mubr.msk.bf16.mxu1 %vm8117_vm0, %v8116_v1  ;;  %7438 = vmatpush3.bf16.msra.mxu1 %v3364_v36 }
0x1a17   : > { %7451 = vmatprep.subr.bf16.mxu1 %v8116_v1 }
0x1adc   : > { %v3233_v30 = vpop.f32.mrb[88].mxu0 }
0x1add   : > { %v7423_v31 = vpop.f32.mrb[89].mxu0 }
0x1ade   : > { %v3236_v32 = vpop.f32.mrb[90].mxu0 }
0x1adf   : > { %v7424_v33 = vpop.f32.mrb[91].mxu0  ;;  %v3312_v34 = vpack.c.bf16 %v3236_v32, %v3233_v30 }
0x1ae1   : > { %7432 = vmatpush3.bf16.msra.mxu0 %v3312_v34 }
0x1ae2   : > { %7443 = vmatprep.subr.bf16.mxu0 %v8116_v1 }
0x1ae8   : > { %v3282_v17 = vpop.f32.mrb[88].mxu1 }
0x1ae9   : > { %v7429_v18 = vpop.f32.mrb[89].mxu1  ;;  %v3289_v19 = vsel %vm890_vm3, %v3282_v17, -inf }
0x1aea   : > { %3290 = vmax.xlane.f32.xlu0 %v3289_v19  ;;  %v3285_v20 = vpop.f32.mrb[90].mxu1 }
0x1aeb   : > { %v7430_v21 = vpop.f32.mrb[91].mxu1  ;;  %v3292_v22 = vsel %vm890_vm3, %v3285_v20, -inf }
0x1aec   : > { %3293 = vmax.xlane.f32.xlu1 %v3292_v22 }
0x1b77   : > { %v3291_v9 = vpop.xlane.xlu0 %3290 }
0x1b78   : > { %v3295_v15 = vsub.f32 %v3282_v17, %v3291_v9 }
0x1b79   : > { %v3294_v10 = vpop.xlane.xlu1 %3293 }
0x1b7a   : > { %v3297_v14 = vmul.f32 1.442695, %v3295_v15  ;;  %v3296_v23 = vsub.f32 %v3285_v20, %v3294_v10 }
0x1b7c   : > { %7980 = vpow2.f32 %v3297_v14  ;;  %v3299_v11 = vmul.f32 1.442695, %v3296_v23 }
0x1b7e   : > { %7982 = vpow2.f32 %v3299_v11 }
0x1b86   : > { %v7981_v24 = vpop.eup %7980 }
0x1b87   : > { %v3301_v26 = vsel %vm890_vm3, %v7981_v24, 0.0 }
0x1b88   : > { %v7983_v28 = vpop.eup %7982  ;;  %3302 = vadd.xlane.f32.xlu0 %v3301_v26 }
0x1b89   : > { %v3304_v29 = vsel %vm890_vm3, %v7983_v28, 0.0 }
0x1b8a   : > { %3305 = vadd.xlane.f32.xlu1 %v3304_v29 }
0x1c15   : > { %v3303_v37 = vpop.xlane.xlu0 %3302 }
0x1c16   : > { %7984 = vrcp.f32 %v3303_v37  ;;  %v7883_v37 = vld [vmem:[%s9463_s13 + $0x18] sm:$0xff]  }
0x1c17   : > { %v3306_v38 = vpop.xlane.xlu1 %3305 }
0x1c18   : > { %7986 = vrcp.f32 %v3306_v38  ;;  %v7884_v38 = vld [vmem:[%s9467_s17 + $0x10] sm:$0xff]  }
0x1c20   : > { %v7985_v25 = vpop.eup %7984 }
0x1c21   : > { %v3309_v40 = vmul.f32 %v7985_v25, %v7981_v24  ;;  %v7885_v25 = vld [vmem:[%s9467_s17 + $0x18] sm:$0xff]  }
0x1c22   : > { %v7987_v39 = vpop.eup %7986 }
0x1c23   : > { %v3310_v27 = vmul.f32 %v7987_v39, %v7983_v28  ;;  %v6635_v28 = vld [vmem:[%s9468_s18] ss:$0 sm:$0xff] }
0x1c25   : > { %v3311_v41 = vpack.c.bf16 %v3310_v27, %v3309_v40 }
0x1c27   : > { %7434 = vmatmul.mubr.msk.bf16.vlgmr.msra.gmra.mrb[92].mxu0 %vm890_vm3, %v3311_v41 }
0x1c28   : > { %7447 = vmatprep.mubr.msk.bf16.mxu0 %vm8117_vm0, %v8116_v1  ;;  %7444 = vmatpush3.bf16.msra.mxu0 %v7876_v47 }
0x1c29   : > { %7445 = vmatprep.subr.bf16.mxu0 %v8116_v1 }
0x1c2c   : > { %7446 = vmatpush3.bf16.msra.mxu0 %v7878_v49 }
0x1c2d   : > { %7459 = vmatprep.subr.bf16.mxu0 %v8116_v1 }
0x1cfa   : > { %v3350_v42 = vpop.f32.mrb[92].mxu0 }
0x1cfb   : > { %v7435_v43 = vpop.f32.mrb[93].mxu0 }
0x1cfc   : > { %v3353_v44 = vpop.f32.mrb[94].mxu0 }
0x1cfd   : > { %v3357_v45 = vpack.c.bf16 %v3353_v44, %v3350_v42  ;;  %v7436_v46 = vpop.f32.mrb[95].mxu0  ;;  %v6654_v44 = vld [vmem:[%s9464_s14 + $0x1] ss:$0 sm:$0xff] }
0x1cff   : > { %7440 = vmatmul.mubr.msk.bf16.vlgmr.msra.gmra.mrb[92].mxu1 %vm842_vm2, %v3357_v45 }
0x1d00   : > { %7455 = vmatprep.mubr.msk.bf16.mxu1 %vm8117_vm0, %v8116_v1  ;;  %7452 = vmatpush3.bf16.msra.mxu1 %v7877_v48 }
0x1d01   : > { %7453 = vmatprep.subr.bf16.mxu1 %v8116_v1 }
0x1d04   : > { %7454 = vmatpush3.bf16.msra.mxu1 %v7879_v50 }
0x1d05   : > { %7467 = vmatprep.subr.bf16.mxu1 %v8116_v1 }
0x1dd2   : > { %v3400_v51 = vpop.f32.mrb[92].mxu1 }
0x1dd3   : > { %v3407_v52 = vadd.f32 %v3400_v51, %v8779_v60  ;;  %v7441_v53 = vpop.f32.mrb[93].mxu1  ;;  %v2043_v60 = vadd.f32 %v6538_v62, %v8589_v7  ;;  %v7881_v7 = vld [vmem:[%s9467_s17 + $0x8] sm:$0xff]  }
0x1dd4   : > { %v3403_v55 = vpop.f32.mrb[94].mxu1 }
0x1dd5   : > { %v3408_v56 = vadd.f32 %v3403_v55, %v8782_v0  ;;  %v7442_v57 = vpop.f32.mrb[95].mxu1  ;;  %v3416_v58 = vadd.f32 %v6626_v54, %v3407_v52  ;;  %v6664_v52 = vld [vmem:[%s9468_s18 + $0x1] ss:$0 sm:$0xff] }
0x1dd7   : > { %v3417_v59 = vadd.f32 %v6626_v54, %v3408_v56 }
0x1dd9   : > { %v7823_v61 = vpack.i.bf16 %v3417_v59, %v3416_v58 }
0x1ddb   : > { %7824 = vrot.lane.b32.xlu0 %v7823_v61, %s8118_s4  ;;  %s649_s4 = scalar_lea.vmem [#allocation2], %s6448_s23 }
0x1ddc   : > { %s6382_s21 = sshll.u32 %s649_s4, 4  ;;  %s9405_s21 = int_to_ptr.vmem [resolvable:$true] %s6382_s21 }
0x1ddd   : > { %s8052_s23 = scalar_lea.vmem %s9405_s21, 256  ;;  %p8059_p0 = scmp.lt.s32.totalorder %s9405_s21, %s8057_s1 }
0x1dde   : > { %p8053_p11 = scmp.ne.s32.totalorder %s9405_s21, %s8052_s23  ;;  %p8060_p1 = scmp.lt.s32.totalorder %s8058_s26, %s8052_s23 }
0x1de0   : > { %p8054_p12 = pnand %p8053_p11, %p8270_p5  ;;  %p8061_p2 = por %p8060_p1, %p8059_p0 }
0x1de2   : > { %p8055_p13 = pneg %p8054_p12 }
0x1de4   : > { %p8062_p3 = pnand %p8061_p2, %p8055_p13 }
0x1e4d   : > { %v7825_v2 = vpop.permute.xlu0 %7824 }
0x1e4e   : > { %v7827_v5 = vunpack.i.h.bf16 %v7825_v2  ;;  %v7826_v6 = vunpack.i.l.bf16 %v7825_v2 }
0x1e50   : > { %v3427_v8 = vsel %vm890_vm3, %v2044_v4, %v7827_v5  ;;  %v3426_v0 = vsel %vm890_vm3, %v2043_v60, %v7826_v6 }
0x1e51   : > { %v8848_v16 = vpack.c.bf16 %v3427_v8, %v3426_v0 }
0x1e53   : > { %7448 = vmatmul.mubr.msk.bf16.vlgmr.msra.gmra.mrb[96].mxu0 %vm681_vm1, %v8848_v16  ;;  %7456 = vmatmul.mubr.msk.bf16.vlgmr.msra.gmra.mrb[96].mxu1 %vm681_vm1, %v8848_v16 }
0x1e54   : > { %7460 = vmatpush3.bf16.msra.mxu0 %v7880_v12  ;;  %7463 = vmatprep.mubr.msk.bf16.mxu0 %vm8117_vm0, %v8116_v1 }
0x1e55   : > { %7461 = vmatprep.subr.bf16.mxu0 %v8116_v1  ;;  %7469 = vmatprep.mubr.msk.bf16.mxu1 %vm8117_vm0, %v8116_v1 }
0x1e58   : > { %7462 = vmatpush3.bf16.msra.mxu0 %v7881_v7 }
0x1e59   : > { %7473 = vmatprep.subr.bf16.mxu0 %v8116_v1 }
0x1e5b   : > { %7464 = vmatmul.mubr.msk.bf16.vlgmr.msra.gmra.mrb[100].mxu0 %vm681_vm1, %v8848_v16 }
0x1e5c   : > { %7475 = vmatprep.mubr.msk.bf16.mxu0 %vm8117_vm0, %v8116_v1 }
0x1f26   : > { %v3497_v63 = vpop.f32.mrb[96].mxu0  ;;  %v3557_v17 = vpop.f32.mrb[96].mxu1 }
0x1f27   : > { %v7449_v18 = vpop.f32.mrb[97].mxu0  ;;  %v7457_v19 = vpop.f32.mrb[97].mxu1  ;;  %v3498_v22 = vadd.f32 %v6627_v13, %v3497_v63  ;;  %v3558_v9 = vadd.f32 %v6631_v3, %v3557_v17 }
0x1f28   : > { %v3500_v20 = vpop.f32.mrb[98].mxu0  ;;  %v3560_v21 = vpop.f32.mrb[98].mxu1  ;;  %v7886_v19 = vld [vmem:[%s9465_s15 + $0x10] sm:$0xff]  }
0x1f29   : > { %v3501_v15 = vadd.f32 %v6627_v13, %v3500_v20  ;;  %v3561_v10 = vadd.f32 %v6631_v3, %v3560_v21  ;;  %v7450_v14 = vpop.f32.mrb[99].mxu0  ;;  %v7458_v23 = vpop.f32.mrb[99].mxu1  ;;  %v7887_v21 = vld [vmem:[%s9465_s15 + $0x18] sm:$0xff]  }
0x1f2a   : > { %v6659_v23 = vld [vmem:[%s9466_s16 + $0x1] ss:$0 sm:$0xff] }
0x1f2b   : > { %v3624_v11 = vpack.c.bf16 %v3501_v15, %v3498_v22  ;;  %v3625_v24 = vpack.c.bf16 %v3561_v10, %v3558_v9 }
0x1f2d   : > { %v3630_v26 = vsel %vm842_vm2, %v3625_v24, 0 }
0x1f2e   : > { %v3617_v29 = vpop.f32.mrb[100].mxu0  ;;  %7468 = vmatpush3.bf16.xpose.msra.mxu1 %v3630_v26 }
0x1f2f   : > { %v7465_v30 = vpop.f32.mrb[101].mxu0  ;;  %7479 = vmatprep.subr.bf16.mxu1 %v8116_v1  ;;  %v3618_v32 = vadd.f32 %v6635_v28, %v3617_v29 }
0x1f30   : > { %v3620_v31 = vpop.f32.mrb[102].mxu0 }
0x1f31   : > { %v3621_v33 = vadd.f32 %v6635_v28, %v3620_v31  ;;  %v7466_v34 = vpop.f32.mrb[103].mxu0 }
0x1f33   : > { %v3696_v36 = vpack.c.bf16 %v3621_v33, %v3618_v32 }
0x1f35   : > { %7470 = vmatmul.mubr.msk.bf16.vlgmr.msra.gmra.mrb[100].mxu1 %vm842_vm2, %v3624_v11  ;;  %7474 = vmatpush3.bf16.msra.mxu0 %v3696_v36 }
0x1f36   : > { %7480 = vmatpush3.bf16.msra.mxu1 %v7882_v35  ;;  %7483 = vmatprep.mubr.msk.bf16.mxu1 %vm8117_vm0, %v8116_v1 }
0x1f37   : > { %7481 = vmatprep.subr.bf16.mxu1 %v8116_v1  ;;  %7487 = vmatprep.subr.bf16.mxu0 %v8116_v1 }
0x1f3a   : > { %7482 = vmatpush3.bf16.msra.mxu1 %v7883_v37 }
0x1f3b   : > { %7495 = vmatprep.subr.bf16.mxu1 %v8116_v1 }
0x1f3d   : > { %7484 = vmatmul.mubr.msk.bf16.vlgmr.msra.gmra.mrb[104].mxu1 %vm681_vm1, %v8848_v16 }
0x1f3e   : > { %7496 = vmatpush3.bf16.msra.mxu1 %v7884_v38  ;;  %7499 = vmatprep.mubr.msk.bf16.mxu1 %vm8117_vm0, %v8116_v1 }
0x1f3f   : > { %7497 = vmatprep.subr.bf16.mxu1 %v8116_v1 }
0x1f42   : > { %7498 = vmatpush3.bf16.msra.mxu1 %v7885_v25 }
0x1f43   : > { %7509 = vmatprep.subr.bf16.mxu1 %v8116_v1 }
0x1f45   : > { %7500 = vmatmul.mubr.msk.bf16.vlgmr.msra.gmra.mrb[108].mxu1 %vm681_vm1, %v8848_v16 }
0x1f46   : > { %7511 = vmatprep.mubr.msk.bf16.mxu1 %vm8117_vm0, %v8116_v1 }
0x2008   : > { %v3666_v39 = vpop.f32.mrb[100].mxu1 }
0x2009   : > { %v7471_v40 = vpop.f32.mrb[101].mxu1  ;;  %v3673_v27 = vsel %vm890_vm3, %v3666_v39, -inf }
0x200a   : > { %3674 = vmax.xlane.f32.xlu1 %v3673_v27  ;;  %v3669_v41 = vpop.f32.mrb[102].mxu1 }
0x200b   : > { %v7472_v42 = vpop.f32.mrb[103].mxu1  ;;  %v3676_v43 = vsel %vm890_vm3, %v3669_v41, -inf }
0x200e   : > { %3677 = vmax.xlane.f32.xlu1 %v3676_v43 }
0x2010   : > { %v3812_v45 = vpop.f32.mrb[104].mxu1 }
0x2011   : > { %v7485_v46 = vpop.f32.mrb[105].mxu1  ;;  %v8911_v48 = vadd.f32 %v6654_v44, %v3812_v45 }
0x2012   : > { %v3815_v47 = vpop.f32.mrb[106].mxu1 }
0x2013   : > { %v8913_v49 = vadd.f32 %v6654_v44, %v3815_v47  ;;  %v7486_v50 = vpop.f32.mrb[107].mxu1  ;;  %v6670_v47 = vld [vmem:[%s9469_s19 + $0x2] sm:$0x3] }
0x2015   : > { %v3941_v51 = vpack.c.bf16 %v8913_v49, %v8911_v48  ;;  %v4065_v48 = vsel %vm1258_vm4, %v6670_v47, 0 }
0x2018   : > { %v3934_v53 = vpop.f32.mrb[108].mxu1 }
0x2019   : > { %v7501_v54 = vpop.f32.mrb[109].mxu1  ;;  %v3935_v56 = vadd.f32 %v6664_v52, %v3934_v53  ;;  %v3742_v53 = vld [vmem:[%s9469_s19] sm:$0x3] }
0x201a   : > { %v3937_v55 = vpop.f32.mrb[110].mxu1 }
0x201b   : > { %v3938_v57 = vadd.f32 %v6664_v52, %v3937_v55  ;;  %v7502_v58 = vpop.f32.mrb[111].mxu1 }
0x201c   : > { %v7888_v58 = vld [vmem:[%s9465_s15 + $0x20] sm:$0xff]  }
0x201d   : > { %v4013_v59 = vpack.c.bf16 %v3938_v57, %v3935_v56  ;;  %v4112_v57 = vsel %vm1258_vm4, %v3742_v53, 0 }
0x201f   : > { %7510 = vmatpush3.bf16.msra.mxu1 %v4013_v59  ;;  %v7889_v59 = vld [vmem:[%s9465_s15 + $0x28] sm:$0xff]  }
0x2020   : > { %7521 = vmatprep.subr.bf16.mxu1 %v8116_v1 }
0x2097   : > { %v3675_v61 = vpop.xlane.xlu1 %3674 }
0x2098   : > { %v3679_v62 = vsub.f32 %v3666_v39, %v3675_v61 }
0x209a   : > { %v3681_v2 = vmul.f32 1.442695, %v3679_v62 }
0x209b   : > { %v3678_v60 = vpop.xlane.xlu1 %3677 }
0x209c   : > { %7988 = vpow2.f32 %v3681_v2  ;;  %v3680_v4 = vsub.f32 %v3669_v41, %v3678_v60  ;;  %v7890_v60 = vld [vmem:[%s9463_s13 + $0x20] sm:$0xff]  }
0x209e   : > { %v3683_v5 = vmul.f32 1.442695, %v3680_v4 }
0x20a0   : > { %7990 = vpow2.f32 %v3683_v5 }
0x20a6   : > { %v7989_v6 = vpop.eup %7988 }
0x20a7   : > { %v3685_v8 = vsel %vm890_vm3, %v7989_v6, 0.0 }
0x20a8   : > { %3686 = vadd.xlane.f32.xlu1 %v3685_v8 }
0x20aa   : > { %v7991_v0 = vpop.eup %7990 }
0x20ab   : > { %v3688_v12 = vsel %vm890_vm3, %v7991_v0, 0.0 }
0x20ac   : > { %3689 = vadd.xlane.f32.xlu1 %v3688_v12 }
0x2135   : > { %v3687_v7 = vpop.xlane.xlu1 %3686 }
0x2136   : > { %7992 = vrcp.f32 %v3687_v7  ;;  %v7892_v7 = vld [vmem:[%s9467_s17 + $0x20] sm:$0xff]  }
0x2139   : > { %v3690_v13 = vpop.xlane.xlu1 %3689 }
0x213a   : > { %7994 = vrcp.f32 %v3690_v13 }
0x2140   : > { %v7993_v63 = vpop.eup %7992 }
0x2141   : > { %v3693_v17 = vmul.f32 %v7993_v63, %v7989_v6  ;;  %v7891_v6 = vld [vmem:[%s9463_s13 + $0x28] sm:$0xff]  }
0x2142   : > { %v7893_v63 = vld [vmem:[%s9467_s17 + $0x28] sm:$0xff]  }
0x2144   : > { %v7995_v3 = vpop.eup %7994 }
0x2145   : > { %v3694_v18 = vmul.f32 %v7995_v3, %v7991_v0  ;;  %v6691_v3 = vld [vmem:[%s9466_s16 + $0x2] ss:$0 sm:$0xff] }
0x2147   : > { %v3695_v20 = vpack.c.bf16 %v3694_v18, %v3693_v17 }
0x2149   : > { %7476 = vmatmul.mubr.msk.bf16.vlgmr.msra.gmra.mrb[104].mxu0 %vm890_vm3, %v3695_v20 }
0x214a   : > { %7488 = vmatpush3.bf16.msra.mxu0 %v7886_v19  ;;  %7491 = vmatprep.mubr.msk.bf16.mxu0 %vm8117_vm0, %v8116_v1 }
0x214b   : > { %7489 = vmatprep.subr.bf16.mxu0 %v8116_v1 }
0x214e   : > { %7490 = vmatpush3.bf16.msra.mxu0 %v7887_v21 }
0x214f   : > { %7503 = vmatprep.subr.bf16.mxu0 %v8116_v1 }
0x2151   : > { %7492 = vmatmul.mubr.msk.bf16.vlgmr.msra.gmra.mrb[108].mxu0 %vm681_vm1, %v8848_v16 }
0x2152   : > { %7505 = vmatprep.mubr.msk.bf16.mxu0 %vm8117_vm0, %v8116_v1 }
0x221c   : > { %v3734_v22 = vpop.f32.mrb[104].mxu0 }
0x221d   : > { %v7477_v9 = vpop.f32.mrb[105].mxu0 }
0x221e   : > { %v3737_v15 = vpop.f32.mrb[106].mxu0 }
0x221f   : > { %v3741_v10 = vpack.c.bf16 %v3737_v15, %v3734_v22  ;;  %v7478_v14 = vpop.f32.mrb[107].mxu0 }
0x2224   : > { %v3873_v11 = vpop.f32.mrb[108].mxu0 }
0x2225   : > { %v7493_v24 = vpop.f32.mrb[109].mxu0  ;;  %v3874_v28 = vadd.f32 %v6659_v23, %v3873_v11 }
0x2226   : > { %v3876_v26 = vpop.f32.mrb[110].mxu0 }
0x2227   : > { %v3877_v29 = vadd.f32 %v6659_v23, %v3876_v26  ;;  %v7494_v30 = vpop.f32.mrb[111].mxu0 }
0x2229   : > { %v3942_v31 = vpack.c.bf16 %v3877_v29, %v3874_v28  ;;  %v6686_v28 = vld [vmem:[%s9464_s14 + $0x2] ss:$0 sm:$0xff] }
0x222b   : > { %v3947_v32 = vsel %vm842_vm2, %v3942_v31, 0 }
0x222c   : > { %7504 = vmatpush3.bf16.xpose.msra.mxu0 %v3947_v32 }
0x222d   : > { %7515 = vmatprep.subr.bf16.mxu0 %v8116_v1 }
0x2233   : > { %7506 = vmatmul.mubr.msk.bf16.vlgmr.msra.gmra.mrb[112].mxu0 %vm842_vm2, %v3941_v51 }
0x2234   : > { %7517 = vmatprep.mubr.msk.bf16.mxu0 %vm8117_vm0, %v8116_v1  ;;  %7516 = vmatpush3.bf16.msra.mxu0 %v4065_v48 }
0x2235   : > { %7527 = vmatprep.subr.bf16.mxu0 %v8116_v1 }
0x2306   : > { %v3983_v33 = vpop.f32.mrb[112].mxu0 }
0x2307   : > { %v7507_v34 = vpop.f32.mrb[113].mxu0  ;;  %v3990_v35 = vsel %vm890_vm3, %v3983_v33, -inf }
0x2308   : > { %3991 = vmax.xlane.f32.xlu1 %v3990_v35  ;;  %v3986_v36 = vpop.f32.mrb[114].mxu0 }
0x2309   : > { %v7508_v37 = vpop.f32.mrb[115].mxu0  ;;  %v3993_v38 = vsel %vm890_vm3, %v3986_v36, -inf }
0x230c   : > { %3994 = vmax.xlane.f32.xlu1 %v3993_v38 }
0x2395   : > { %v3992_v25 = vpop.xlane.xlu1 %3991 }
0x2396   : > { %v3996_v39 = vsub.f32 %v3983_v33, %v3992_v25 }
0x2398   : > { %v3998_v40 = vmul.f32 1.442695, %v3996_v39 }
0x2399   : > { %v3995_v27 = vpop.xlane.xlu1 %3994 }
0x239a   : > { %7996 = vpow2.f32 %v3998_v40  ;;  %v3997_v41 = vsub.f32 %v3986_v36, %v3995_v27  ;;  %v6696_v36 = vld [vmem:[%s9468_s18 + $0x2] ss:$0 sm:$0xff] }
0x239c   : > { %v4000_v42 = vmul.f32 1.442695, %v3997_v41 }
0x239e   : > { %7998 = vpow2.f32 %v4000_v42 }
0x23a4   : > { %v7997_v43 = vpop.eup %7996 }
0x23a5   : > { %v4002_v44 = vsel %vm890_vm3, %v7997_v43, 0.0 }
0x23a6   : > { %4003 = vadd.xlane.f32.xlu0 %v4002_v44 }
0x23a8   : > { %v7999_v45 = vpop.eup %7998 }
0x23a9   : > { %v4005_v46 = vsel %vm890_vm3, %v7999_v45, 0.0 }
0x23aa   : > { %4006 = vadd.xlane.f32.xlu1 %v4005_v46 }
0x2433   : > { %v4004_v49 = vpop.xlane.xlu0 %4003 }
0x2434   : > { %8000 = vrcp.f32 %v4004_v49 }
0x2437   : > { %v4007_v50 = vpop.xlane.xlu1 %4006 }
0x2438   : > { %8002 = vrcp.f32 %v4007_v50 }
0x243e   : > { %v8001_v51 = vpop.eup %8000 }
0x243f   : > { %v4010_v54 = vmul.f32 %v8001_v51, %v7997_v43 }
0x2442   : > { %v8003_v52 = vpop.eup %8002 }
0x2443   : > { %v4011_v55 = vmul.f32 %v8003_v52, %v7999_v45 }
0x2445   : > { %v4012_v56 = vpack.c.bf16 %v4011_v55, %v4010_v54 }
0x2447   : > { %7512 = vmatmul.mubr.msk.bf16.vlgmr.msra.gmra.mrb[112].mxu1 %vm890_vm3, %v4012_v56 }
0x2448   : > { %7522 = vmatpush3.bf16.msra.mxu1 %v4112_v57  ;;  %7523 = vmatprep.mubr.msk.bf16.mxu1 %vm8117_vm0, %v8116_v1 }
0x2449   : > { %7535 = vmatprep.subr.bf16.mxu1 %v8116_v1 }
0x244f   : > { %7524 = vmatmul.mubr.msk.bf16.vlgmr.msra.gmra.mrb[116].mxu1 %vm842_vm2, %v3741_v10 }
0x2450   : > { %7536 = vmatpush3.bf16.msra.mxu1 %v7888_v58  ;;  %7539 = vmatprep.mubr.msk.bf16.mxu1 %vm8117_vm0, %v8116_v1  ;;  %v6702_v58 = vld [vmem:[%s9469_s19 + $0x4] sm:$0x3] }
0x2451   : > { %7537 = vmatprep.subr.bf16.mxu1 %v8116_v1 }
0x2454   : > { %7538 = vmatpush3.bf16.msra.mxu1 %v7889_v59  ;;  %v4477_v59 = vsel %vm1258_vm4, %v6702_v58, 0 }
0x2455   : > { %7551 = vmatprep.subr.bf16.mxu1 %v8116_v1 }
0x2457   : > { %7540 = vmatmul.mubr.msk.bf16.vlgmr.msra.gmra.mrb[120].mxu1 %vm681_vm1, %v8848_v16 }
0x2458   : > { %7553 = vmatprep.mubr.msk.bf16.mxu1 %vm8117_vm0, %v8116_v1 }
0x251a   : > { %v4051_v61 = vpop.f32.mrb[112].mxu1 }
0x251b   : > { %v7513_v62 = vpop.f32.mrb[113].mxu1 }
0x251c   : > { %v4054_v2 = vpop.f32.mrb[114].mxu1 }
0x251d   : > { %v4058_v4 = vpack.c.bf16 %v4054_v2, %v4051_v61  ;;  %v7514_v5 = vpop.f32.mrb[115].mxu1 }
0x251f   : > { %7518 = vmatmul.mubr.msk.bf16.vlgmr.msra.gmra.mrb[116].mxu0 %vm842_vm2, %v4058_v4 }
0x2520   : > { %7528 = vmatpush3.bf16.msra.mxu0 %v7890_v60  ;;  %7531 = vmatprep.mubr.msk.bf16.mxu0 %vm8117_vm0, %v8116_v1 }
0x2521   : > { %7529 = vmatprep.subr.bf16.mxu0 %v8116_v1 }
0x2522   : > { %v4148_v8 = vpop.f32.mrb[116].mxu1 }
0x2523   : > { %v7525_v0 = vpop.f32.mrb[117].mxu1 }
0x2524   : > { %v4151_v12 = vpop.f32.mrb[118].mxu1  ;;  %7530 = vmatpush3.bf16.msra.mxu0 %v7891_v6  ;;  %v7894_v6 = vld [vmem:[%s9463_s13 + $0x30] sm:$0xff]   ;;  %v7895_v0 = vld [vmem:[%s9463_s13 + $0x38] sm:$0xff]  }
0x2525   : > { %v7526_v13 = vpop.f32.mrb[119].mxu1  ;;  %7543 = vmatprep.subr.bf16.mxu0 %v8116_v1 }
0x2527   : > { %7532 = vmatmul.mubr.msk.bf16.vlgmr.msra.gmra.mrb[120].mxu0 %vm681_vm1, %v8848_v16 }
0x2528   : > { %7544 = vmatpush3.bf16.msra.mxu0 %v7892_v7  ;;  %7547 = vmatprep.mubr.msk.bf16.mxu0 %vm8117_vm0, %v8116_v1  ;;  %v7897_v7 = vld [vmem:[%s9467_s17 + $0x38] sm:$0xff]  }
0x2529   : > { %7545 = vmatprep.subr.bf16.mxu0 %v8116_v1 }
0x252a   : > { %v4285_v17 = vpop.f32.mrb[120].mxu1 }
0x252b   : > { %v7541_v18 = vpop.f32.mrb[121].mxu1  ;;  %v4286_v20 = vadd.f32 %v6691_v3, %v4285_v17  ;;  %v7898_v17 = vld [vmem:[%s9465_s15 + $0x30] sm:$0xff]  }
0x252c   : > { %v4288_v19 = vpop.f32.mrb[122].mxu1  ;;  %7546 = vmatpush3.bf16.msra.mxu0 %v7893_v63 }
0x252d   : > { %v4289_v21 = vadd.f32 %v6691_v3, %v4288_v19  ;;  %v7542_v22 = vpop.f32.mrb[123].mxu1  ;;  %7557 = vmatprep.subr.bf16.mxu0 %v8116_v1 }
0x252f   : > { %v4354_v9 = vpack.c.bf16 %v4289_v21, %v4286_v20  ;;  %7548 = vmatmul.mubr.msk.bf16.vlgmr.msra.gmra.mrb[124].mxu0 %vm681_vm1, %v8848_v16  ;;  %v7899_v20 = vld [vmem:[%s9465_s15 + $0x38] sm:$0xff]   ;;  %v6717_v21 = vld [vmem:[%s9464_s14 + $0x3] ss:$0 sm:$0xff] }
0x2530   : > { %7559 = vmatprep.mubr.msk.bf16.mxu0 %vm8117_vm0, %v8116_v1 }
0x2531   : > { %v4359_v15 = vsel %vm842_vm2, %v4354_v9, 0 }
0x2532   : > { %7552 = vmatpush3.bf16.xpose.msra.mxu1 %v4359_v15 }
0x2533   : > { %7563 = vmatprep.subr.bf16.mxu1 %v8116_v1 }
0x25f2   : > { %v4101_v10 = vpop.f32.mrb[116].mxu0 }
0x25f3   : > { %v9010_v14 = vadd.f32 %v4148_v8, %v4101_v10  ;;  %v7519_v23 = vpop.f32.mrb[117].mxu0 }
0x25f4   : > { %v4104_v11 = vpop.f32.mrb[118].mxu0 }
0x25f5   : > { %v9012_v24 = vadd.f32 %v4151_v12, %v4104_v11  ;;  %v7520_v26 = vpop.f32.mrb[119].mxu0  ;;  %v7896_v12 = vld [vmem:[%s9467_s17 + $0x30] sm:$0xff]  }
0x25fa   : > { %v4224_v29 = vpop.f32.mrb[120].mxu0 }
0x25fb   : > { %v7533_v30 = vpop.f32.mrb[121].mxu0  ;;  %v4225_v32 = vadd.f32 %v6686_v28, %v4224_v29 }
0x25fc   : > { %v4227_v31 = vpop.f32.mrb[122].mxu0 }
0x25fd   : > { %v4228_v33 = vadd.f32 %v6686_v28, %v4227_v31  ;;  %v7534_v34 = vpop.f32.mrb[123].mxu0  ;;  %v6727_v28 = vld [vmem:[%s9468_s18 + $0x3] ss:$0 sm:$0xff] }
0x25ff   : > { %v4353_v35 = vpack.c.bf16 %v4228_v33, %v4225_v32 }
0x2601   : > { %7554 = vmatmul.mubr.msk.bf16.vlgmr.msra.gmra.mrb[124].mxu1 %vm842_vm2, %v4353_v35 }
0x2602   : > { %v4346_v37 = vpop.f32.mrb[124].mxu0  ;;  %7565 = vmatprep.mubr.msk.bf16.mxu1 %vm8117_vm0, %v8116_v1  ;;  %7564 = vmatpush3.bf16.msra.mxu1 %v4477_v59 }
0x2603   : > { %v7549_v38 = vpop.f32.mrb[125].mxu0  ;;  %v4347_v39 = vadd.f32 %v6696_v36, %v4346_v37  ;;  %7577 = vmatprep.subr.bf16.mxu1 %v8116_v1 }
0x2604   : > { %v4349_v25 = vpop.f32.mrb[126].mxu0 }
0x2605   : > { %v4350_v40 = vadd.f32 %v6696_v36, %v4349_v25  ;;  %v7550_v27 = vpop.f32.mrb[127].mxu0 }
0x2606   : > { %v6722_v27 = vld [vmem:[%s9466_s16 + $0x3] ss:$0 sm:$0xff] }
0x2607   : > { %v4425_v41 = vpack.c.bf16 %v4350_v40, %v4347_v39 }
0x2609   : > { %7558 = vmatpush3.bf16.msra.mxu0 %v4425_v41 }
0x260a   : > { %7569 = vmatprep.subr.bf16.mxu0 %v8116_v1 }
0x26d4   : > { %v4395_v42 = vpop.f32.mrb[124].mxu1 }
0x26d5   : > { %v7555_v43 = vpop.f32.mrb[125].mxu1  ;;  %v4402_v44 = vsel %vm890_vm3, %v4395_v42, -inf }
0x26d6   : > { %4403 = vmax.xlane.f32.xlu1 %v4402_v44  ;;  %v4398_v45 = vpop.f32.mrb[126].mxu1 }
0x26d7   : > { %v7556_v46 = vpop.f32.mrb[127].mxu1  ;;  %v4405_v47 = vsel %vm890_vm3, %v4398_v45, -inf }
0x26da   : > { %4406 = vmax.xlane.f32.xlu1 %v4405_v47 }
0x2763   : > { %v4404_v48 = vpop.xlane.xlu1 %4403 }
0x2764   : > { %v4408_v49 = vsub.f32 %v4395_v42, %v4404_v48 }
0x2766   : > { %v4410_v50 = vmul.f32 1.442695, %v4408_v49 }
0x2767   : > { %v4407_v51 = vpop.xlane.xlu1 %4406 }
0x2768   : > { %8004 = vpow2.f32 %v4410_v50  ;;  %v4409_v52 = vsub.f32 %v4398_v45, %v4407_v51 }
0x276a   : > { %v4412_v53 = vmul.f32 1.442695, %v4409_v52 }
0x276c   : > { %8006 = vpow2.f32 %v4412_v53 }
0x2772   : > { %v8005_v54 = vpop.eup %8004 }
0x2773   : > { %v4414_v55 = vsel %vm890_vm3, %v8005_v54, 0.0 }
0x2774   : > { %4415 = vadd.xlane.f32.xlu1 %v4414_v55 }
0x2776   : > { %v8007_v56 = vpop.eup %8006 }
0x2777   : > { %v4417_v57 = vsel %vm890_vm3, %v8007_v56, 0.0 }
0x2778   : > { %4418 = vadd.xlane.f32.xlu1 %v4417_v57 }
0x2801   : > { %v4416_v61 = vpop.xlane.xlu1 %4415 }
0x2802   : > { %8008 = vrcp.f32 %v4416_v61 }
0x2805   : > { %v4419_v62 = vpop.xlane.xlu1 %4418 }
0x2806   : > { %8010 = vrcp.f32 %v4419_v62 }
0x280c   : > { %v8009_v2 = vpop.eup %8008 }
0x280d   : > { %v4422_v4 = vmul.f32 %v8009_v2, %v8005_v54 }
0x2810   : > { %v8011_v60 = vpop.eup %8010 }
0x2811   : > { %v4423_v5 = vmul.f32 %v8011_v60, %v8007_v56  ;;  %v6733_v60 = vld [vmem:[%s9469_s19 + $0x6] sm:$0x3] }
0x2813   : > { %v4424_v8 = vpack.c.bf16 %v4423_v5, %v4422_v4  ;;  %v4844_v4 = vsel %vm1258_vm4, %v6733_v60, 0 }
0x2815   : > { %7560 = vmatmul.mubr.msk.bf16.vlgmr.msra.gmra.mrb[128].mxu0 %vm890_vm3, %v4424_v8 }
0x2816   : > { %7570 = vmatpush3.bf16.msra.mxu0 %v7894_v6  ;;  %7573 = vmatprep.mubr.msk.bf16.mxu0 %vm8117_vm0, %v8116_v1 }
0x2817   : > { %7571 = vmatprep.subr.bf16.mxu0 %v8116_v1 }
0x281a   : > { %7572 = vmatpush3.bf16.msra.mxu0 %v7895_v0 }
0x281b   : > { %7585 = vmatprep.subr.bf16.mxu0 %v8116_v1 }
0x281d   : > { %7574 = vmatmul.mubr.msk.bf16.vlgmr.msra.gmra.mrb[132].mxu0 %vm681_vm1, %v8848_v16 }
0x281e   : > { %7586 = vmatpush3.bf16.msra.mxu0 %v7896_v12  ;;  %7589 = vmatprep.mubr.msk.bf16.mxu0 %vm8117_vm0, %v8116_v1 }
0x281f   : > { %7587 = vmatprep.subr.bf16.mxu0 %v8116_v1 }
0x2822   : > { %7588 = vmatpush3.bf16.msra.mxu0 %v7897_v7 }
0x2823   : > { %7599 = vmatprep.subr.bf16.mxu0 %v8116_v1 }
0x2825   : > { %7590 = vmatmul.mubr.msk.bf16.vlgmr.msra.gmra.mrb[136].mxu0 %vm681_vm1, %v8848_v16 }
0x2826   : > { %7601 = vmatprep.mubr.msk.bf16.mxu0 %vm8117_vm0, %v8116_v1 }
0x28e8   : > { %v4463_v13 = vpop.f32.mrb[128].mxu0 }
0x28e9   : > { %v7561_v63 = vpop.f32.mrb[129].mxu0 }
0x28ea   : > { %v4466_v3 = vpop.f32.mrb[130].mxu0 }
0x28eb   : > { %v4470_v18 = vpack.c.bf16 %v4466_v3, %v4463_v13  ;;  %v7562_v19 = vpop.f32.mrb[131].mxu0  ;;  %v7900_v13 = vld [vmem:[%s9463_s13 + $0x40] sm:$0xff]   ;;  %v7901_v3 = vld [vmem:[%s9463_s13 + $0x48] sm:$0xff]  }
0x28ed   : > { %7566 = vmatmul.mubr.msk.bf16.vlgmr.msra.gmra.mrb[128].mxu1 %vm842_vm2, %v4470_v18  ;;  %v7903_v18 = vld [vmem:[%s9467_s17 + $0x48] sm:$0xff]  }
0x28ee   : > { %7578 = vmatpush3.bf16.msra.mxu1 %v7898_v17  ;;  %7581 = vmatprep.mubr.msk.bf16.mxu1 %vm8117_vm0, %v8116_v1  ;;  %v7902_v17 = vld [vmem:[%s9467_s17 + $0x40] sm:$0xff]  }
0x28ef   : > { %7579 = vmatprep.subr.bf16.mxu1 %v8116_v1 }
0x28f0   : > { %v4591_v22 = vpop.f32.mrb[132].mxu0 }
0x28f1   : > { %v7575_v9 = vpop.f32.mrb[133].mxu0  ;;  %v4592_v10 = vadd.f32 %v6717_v21, %v4591_v22  ;;  %v7904_v22 = vld [vmem:[%s9465_s15 + $0x40] sm:$0xff]  }
0x28f2   : > { %v4594_v15 = vpop.f32.mrb[134].mxu0  ;;  %7580 = vmatpush3.bf16.msra.mxu1 %v7899_v20 }
0x28f3   : > { %v4595_v23 = vadd.f32 %v6717_v21, %v4594_v15  ;;  %v7576_v11 = vpop.f32.mrb[135].mxu0  ;;  %7593 = vmatprep.subr.bf16.mxu1 %v8116_v1 }
0x28f5   : > { %v4720_v26 = vpack.c.bf16 %v4595_v23, %v4592_v10  ;;  %7582 = vmatmul.mubr.msk.bf16.vlgmr.msra.gmra.mrb[132].mxu1 %vm681_vm1, %v8848_v16  ;;  %v7905_v10 = vld [vmem:[%s9465_s15 + $0x48] sm:$0xff]   ;;  %v6748_v23 = vld [vmem:[%s9464_s14 + $0x4] ss:$0 sm:$0xff] }
0x28f6   : > { %7595 = vmatprep.mubr.msk.bf16.mxu1 %vm8117_vm0, %v8116_v1 }
0x28f8   : > { %v4713_v29 = vpop.f32.mrb[136].mxu0 }
0x28f9   : > { %v7591_v30 = vpop.f32.mrb[137].mxu0  ;;  %v4714_v32 = vadd.f32 %v6727_v28, %v4713_v29 }
0x28fa   : > { %v4716_v31 = vpop.f32.mrb[138].mxu0 }
0x28fb   : > { %v4717_v33 = vadd.f32 %v6727_v28, %v4716_v31  ;;  %v7592_v34 = vpop.f32.mrb[139].mxu0 }
0x28fd   : > { %v4792_v35 = vpack.c.bf16 %v4717_v33, %v4714_v32  ;;  %v6758_v33 = vld [vmem:[%s9468_s18 + $0x4] ss:$0 sm:$0xff] }
0x28ff   : > { %7600 = vmatpush3.bf16.msra.mxu0 %v4792_v35 }
0x2900   : > { %7611 = vmatprep.subr.bf16.mxu0 %v8116_v1 }
0x29c0   : > { %v4513_v36 = vpop.f32.mrb[128].mxu1 }
0x29c1   : > { %v9083_v37 = vadd.f32 %v4513_v36, %v9010_v14  ;;  %v7567_v38 = vpop.f32.mrb[129].mxu1 }
0x29c2   : > { %v4516_v25 = vpop.f32.mrb[130].mxu1 }
0x29c3   : > { %v9086_v39 = vadd.f32 %v4516_v25, %v9012_v24  ;;  %v7568_v40 = vpop.f32.mrb[131].mxu1 }
0x29c8   : > { %v4652_v41 = vpop.f32.mrb[132].mxu1 }
0x29c9   : > { %v7583_v42 = vpop.f32.mrb[133].mxu1  ;;  %v4653_v44 = vadd.f32 %v6722_v27, %v4652_v41 }
0x29ca   : > { %v4655_v43 = vpop.f32.mrb[134].mxu1 }
0x29cb   : > { %v4656_v45 = vadd.f32 %v6722_v27, %v4655_v43  ;;  %v7584_v46 = vpop.f32.mrb[135].mxu1 }
0x29cd   : > { %v4721_v47 = vpack.c.bf16 %v4656_v45, %v4653_v44 }
0x29cf   : > { %v4726_v14 = vsel %vm842_vm2, %v4721_v47, 0  ;;  %v6753_v47 = vld [vmem:[%s9466_s16 + $0x4] ss:$0 sm:$0xff] }
0x29d0   : > { %7594 = vmatpush3.bf16.xpose.msra.mxu1 %v4726_v14 }
0x29d1   : > { %7605 = vmatprep.subr.bf16.mxu1 %v8116_v1 }
0x29d7   : > { %7596 = vmatmul.mubr.msk.bf16.vlgmr.msra.gmra.mrb[136].mxu1 %vm842_vm2, %v4720_v26 }
0x29d8   : > { %7607 = vmatprep.mubr.msk.bf16.mxu1 %vm8117_vm0, %v8116_v1  ;;  %7606 = vmatpush3.bf16.msra.mxu1 %v4844_v4 }
0x29d9   : > { %7619 = vmatprep.subr.bf16.mxu1 %v8116_v1 }
0x2aaa   : > { %v4762_v24 = vpop.f32.mrb[136].mxu1 }
0x2aab   : > { %v7597_v48 = vpop.f32.mrb[137].mxu1  ;;  %v4769_v49 = vsel %vm890_vm3, %v4762_v24, -inf }
0x2aac   : > { %4770 = vmax.xlane.f32.xlu1 %v4769_v49  ;;  %v4765_v50 = vpop.f32.mrb[138].mxu1 }
0x2aad   : > { %v7598_v51 = vpop.f32.mrb[139].mxu1  ;;  %v4772_v52 = vsel %vm890_vm3, %v4765_v50, -inf }
0x2ab0   : > { %4773 = vmax.xlane.f32.xlu1 %v4772_v52 }
0x2b39   : > { %v4771_v53 = vpop.xlane.xlu1 %4770 }
0x2b3a   : > { %v4775_v54 = vsub.f32 %v4762_v24, %v4771_v53 }
0x2b3c   : > { %v4777_v55 = vmul.f32 1.442695, %v4775_v54 }
0x2b3d   : > { %v4774_v56 = vpop.xlane.xlu1 %4773 }
0x2b3e   : > { %8012 = vpow2.f32 %v4777_v55  ;;  %v4776_v57 = vsub.f32 %v4765_v50, %v4774_v56 }
0x2b40   : > { %v4779_v58 = vmul.f32 1.442695, %v4776_v57 }
0x2b42   : > { %8014 = vpow2.f32 %v4779_v58 }
0x2b48   : > { %v8013_v59 = vpop.eup %8012 }
0x2b49   : > { %v4781_v61 = vsel %vm890_vm3, %v8013_v59, 0.0 }
0x2b4a   : > { %4782 = vadd.xlane.f32.xlu1 %v4781_v61 }
0x2b4c   : > { %v8015_v62 = vpop.eup %8014 }
0x2b4d   : > { %v4784_v2 = vsel %vm890_vm3, %v8015_v62, 0.0 }
0x2b4e   : > { %4785 = vadd.xlane.f32.xlu0 %v4784_v2 }
0x2bd7   : > { %v4783_v5 = vpop.xlane.xlu1 %4782 }
0x2bd8   : > { %8016 = vrcp.f32 %v4783_v5 }
0x2bdb   : > { %v4786_v6 = vpop.xlane.xlu0 %4785 }
0x2bdc   : > { %8018 = vrcp.f32 %v4786_v6 }
0x2be2   : > { %v8017_v8 = vpop.eup %8016 }
0x2be3   : > { %v4789_v12 = vmul.f32 %v8017_v8, %v8013_v59 }
0x2be6   : > { %v8019_v0 = vpop.eup %8018 }
0x2be7   : > { %v4790_v7 = vmul.f32 %v8019_v0, %v8015_v62  ;;  %v6764_v0 = vld [vmem:[%s9469_s19 + $0x8] sm:$0x3] }
0x2be9   : > { %v4791_v63 = vpack.c.bf16 %v4790_v7, %v4789_v12  ;;  %v5211_v12 = vsel %vm1258_vm4, %v6764_v0, 0 }
0x2beb   : > { %7602 = vmatmul.mubr.msk.bf16.vlgmr.msra.gmra.mrb[140].mxu0 %vm890_vm3, %v4791_v63 }
0x2bec   : > { %7612 = vmatpush3.bf16.msra.mxu0 %v7900_v13  ;;  %7615 = vmatprep.mubr.msk.bf16.mxu0 %vm8117_vm0, %v8116_v1 }
0x2bed   : > { %7613 = vmatprep.subr.bf16.mxu0 %v8116_v1 }
0x2bf0   : > { %7614 = vmatpush3.bf16.msra.mxu0 %v7901_v3 }
0x2bf1   : > { %7627 = vmatprep.subr.bf16.mxu0 %v8116_v1 }
0x2bf3   : > { %7616 = vmatmul.mubr.msk.bf16.vlgmr.msra.gmra.mrb[144].mxu0 %vm681_vm1, %v8848_v16 }
0x2bf4   : > { %7628 = vmatpush3.bf16.msra.mxu0 %v7902_v17  ;;  %7631 = vmatprep.mubr.msk.bf16.mxu0 %vm8117_vm0, %v8116_v1 }
0x2bf5   : > { %7629 = vmatprep.subr.bf16.mxu0 %v8116_v1 }
0x2bf8   : > { %7630 = vmatpush3.bf16.msra.mxu0 %v7903_v18 }
0x2bf9   : > { %7641 = vmatprep.subr.bf16.mxu0 %v8116_v1 }
0x2bfb   : > { %7632 = vmatmul.mubr.msk.bf16.vlgmr.msra.gmra.mrb[148].mxu0 %vm681_vm1, %v8848_v16 }
0x2bfc   : > { %7643 = vmatprep.mubr.msk.bf16.mxu0 %vm8117_vm0, %v8116_v1 }
0x2cbe   : > { %v4830_v19 = vpop.f32.mrb[140].mxu0 }
0x2cbf   : > { %v7603_v20 = vpop.f32.mrb[141].mxu0 }
0x2cc0   : > { %v4833_v21 = vpop.f32.mrb[142].mxu0 }
0x2cc1   : > { %v4837_v9 = vpack.c.bf16 %v4833_v21, %v4830_v19  ;;  %v7604_v15 = vpop.f32.mrb[143].mxu0  ;;  %v7906_v19 = vld [vmem:[%s9463_s13 + $0x50] sm:$0xff]   ;;  %v7907_v21 = vld [vmem:[%s9463_s13 + $0x58] sm:$0xff]  }
0x2cc3   : > { %7608 = vmatmul.mubr.msk.bf16.vlgmr.msra.gmra.mrb[140].mxu1 %vm842_vm2, %v4837_v9  ;;  %v7909_v9 = vld [vmem:[%s9467_s17 + $0x58] sm:$0xff]  }
0x2cc4   : > { %7620 = vmatpush3.bf16.msra.mxu1 %v7904_v22  ;;  %7623 = vmatprep.mubr.msk.bf16.mxu1 %vm8117_vm0, %v8116_v1  ;;  %v7908_v22 = vld [vmem:[%s9467_s17 + $0x50] sm:$0xff]  }
0x2cc5   : > { %7621 = vmatprep.subr.bf16.mxu1 %v8116_v1 }
0x2cc6   : > { %v4958_v11 = vpop.f32.mrb[144].mxu0 }
0x2cc7   : > { %v7617_v26 = vpop.f32.mrb[145].mxu0  ;;  %v4959_v29 = vadd.f32 %v6748_v23, %v4958_v11  ;;  %v7910_v11 = vld [vmem:[%s9465_s15 + $0x50] sm:$0xff]  }
0x2cc8   : > { %v4961_v28 = vpop.f32.mrb[146].mxu0  ;;  %7622 = vmatpush3.bf16.msra.mxu1 %v7905_v10 }
0x2cc9   : > { %v4962_v30 = vadd.f32 %v6748_v23, %v4961_v28  ;;  %v7618_v31 = vpop.f32.mrb[147].mxu0  ;;  %7635 = vmatprep.subr.bf16.mxu1 %v8116_v1 }
0x2ccb   : > { %v5087_v32 = vpack.c.bf16 %v4962_v30, %v4959_v29  ;;  %7624 = vmatmul.mubr.msk.bf16.vlgmr.msra.gmra.mrb[144].mxu1 %vm681_vm1, %v8848_v16  ;;  %v7911_v29 = vld [vmem:[%s9465_s15 + $0x58] sm:$0xff]   ;;  %v6779_v30 = vld [vmem:[%s9464_s14 + $0x5] ss:$0 sm:$0xff] }
0x2ccc   : > { %7637 = vmatprep.mubr.msk.bf16.mxu1 %vm8117_vm0, %v8116_v1 }
0x2cce   : > { %v5080_v34 = vpop.f32.mrb[148].mxu0 }
0x2ccf   : > { %v7633_v35 = vpop.f32.mrb[149].mxu0  ;;  %v5081_v38 = vadd.f32 %v6758_v33, %v5080_v34 }
0x2cd0   : > { %v5083_v36 = vpop.f32.mrb[150].mxu0 }
0x2cd1   : > { %v5084_v25 = vadd.f32 %v6758_v33, %v5083_v36  ;;  %v7634_v40 = vpop.f32.mrb[151].mxu0 }
0x2cd3   : > { %v5159_v27 = vpack.c.bf16 %v5084_v25, %v5081_v38  ;;  %v6789_v25 = vld [vmem:[%s9468_s18 + $0x5] ss:$0 sm:$0xff] }
0x2cd5   : > { %7642 = vmatpush3.bf16.msra.mxu0 %v5159_v27 }
0x2cd6   : > { %7653 = vmatprep.subr.bf16.mxu0 %v8116_v1 }
0x2d96   : > { %v4880_v41 = vpop.f32.mrb[140].mxu1 }
0x2d97   : > { %v9155_v42 = vadd.f32 %v4880_v41, %v9083_v37  ;;  %v7609_v43 = vpop.f32.mrb[141].mxu1 }
0x2d98   : > { %v4883_v44 = vpop.f32.mrb[142].mxu1 }
0x2d99   : > { %v9158_v45 = vadd.f32 %v4883_v44, %v9086_v39  ;;  %v7610_v46 = vpop.f32.mrb[143].mxu1 }
0x2d9e   : > { %v5019_v14 = vpop.f32.mrb[144].mxu1 }
0x2d9f   : > { %v7625_v24 = vpop.f32.mrb[145].mxu1  ;;  %v5020_v49 = vadd.f32 %v6753_v47, %v5019_v14 }
0x2da0   : > { %v5022_v48 = vpop.f32.mrb[146].mxu1 }
0x2da1   : > { %v5023_v50 = vadd.f32 %v6753_v47, %v5022_v48  ;;  %v7626_v51 = vpop.f32.mrb[147].mxu1 }
0x2da3   : > { %v5088_v52 = vpack.c.bf16 %v5023_v50, %v5020_v49 }
0x2da5   : > { %v5093_v37 = vsel %vm842_vm2, %v5088_v52, 0  ;;  %v6784_v52 = vld [vmem:[%s9466_s16 + $0x5] ss:$0 sm:$0xff] }
0x2da6   : > { %7636 = vmatpush3.bf16.xpose.msra.mxu1 %v5093_v37 }
0x2da7   : > { %7647 = vmatprep.subr.bf16.mxu1 %v8116_v1 }
0x2dad   : > { %7638 = vmatmul.mubr.msk.bf16.vlgmr.msra.gmra.mrb[148].mxu1 %vm842_vm2, %v5087_v32 }
0x2dae   : > { %7649 = vmatprep.mubr.msk.bf16.mxu1 %vm8117_vm0, %v8116_v1  ;;  %7648 = vmatpush3.bf16.msra.mxu1 %v5211_v12 }
0x2daf   : > { %7661 = vmatprep.subr.bf16.mxu1 %v8116_v1 }
0x2e80   : > { %v5129_v39 = vpop.f32.mrb[148].mxu1 }
0x2e81   : > { %v7639_v53 = vpop.f32.mrb[149].mxu1  ;;  %v5136_v54 = vsel %vm890_vm3, %v5129_v39, -inf }
0x2e82   : > { %5137 = vmax.xlane.f32.xlu1 %v5136_v54  ;;  %v5132_v55 = vpop.f32.mrb[150].mxu1 }
0x2e83   : > { %v7640_v56 = vpop.f32.mrb[151].mxu1  ;;  %v5139_v57 = vsel %vm890_vm3, %v5132_v55, -inf }
0x2e84   : > { %5140 = vmax.xlane.f32.xlu0 %v5139_v57 }
0x2f0f   : > { %v5138_v58 = vpop.xlane.xlu1 %5137 }
0x2f10   : > { %v5142_v59 = vsub.f32 %v5129_v39, %v5138_v58 }
0x2f11   : > { %v5141_v61 = vpop.xlane.xlu0 %5140 }
0x2f12   : > { %v5144_v62 = vmul.f32 1.442695, %v5142_v59  ;;  %v5143_v2 = vsub.f32 %v5132_v55, %v5141_v61 }
0x2f14   : > { %8020 = vpow2.f32 %v5144_v62  ;;  %v5146_v60 = vmul.f32 1.442695, %v5143_v2 }
0x2f16   : > { %8022 = vpow2.f32 %v5146_v60 }
0x2f1e   : > { %v8021_v4 = vpop.eup %8020 }
0x2f1f   : > { %v5148_v5 = vsel %vm890_vm3, %v8021_v4, 0.0 }
0x2f20   : > { %v8023_v6 = vpop.eup %8022  ;;  %5149 = vadd.xlane.f32.xlu1 %v5148_v5 }
0x2f21   : > { %v5151_v8 = vsel %vm890_vm3, %v8023_v6, 0.0 }
0x2f22   : > { %5152 = vadd.xlane.f32.xlu0 %v5151_v8 }
0x2fad   : > { %v5150_v7 = vpop.xlane.xlu1 %5149 }
0x2fae   : > { %8024 = vrcp.f32 %v5150_v7 }
0x2faf   : > { %v5153_v13 = vpop.xlane.xlu0 %5152 }
0x2fb0   : > { %8026 = vrcp.f32 %v5153_v13 }
0x2fb8   : > { %v8025_v63 = vpop.eup %8024 }
0x2fb9   : > { %v5156_v17 = vmul.f32 %v8025_v63, %v8021_v4 }
0x2fba   : > { %v8027_v3 = vpop.eup %8026 }
0x2fbb   : > { %v5157_v18 = vmul.f32 %v8027_v3, %v8023_v6  ;;  %v6795_v3 = vld [vmem:[%s9469_s19 + $0xa] sm:$0x3] }
0x2fbd   : > { %v5158_v20 = vpack.c.bf16 %v5157_v18, %v5156_v17  ;;  %v5578_v17 = vsel %vm1258_vm4, %v6795_v3, 0 }
0x2fbf   : > { %7644 = vmatmul.mubr.msk.bf16.vlgmr.msra.gmra.mrb[152].mxu0 %vm890_vm3, %v5158_v20 }
0x2fc0   : > { %7654 = vmatpush3.bf16.msra.mxu0 %v7906_v19  ;;  %7657 = vmatprep.mubr.msk.bf16.mxu0 %vm8117_vm0, %v8116_v1 }
0x2fc1   : > { %7655 = vmatprep.subr.bf16.mxu0 %v8116_v1 }
0x2fc4   : > { %7656 = vmatpush3.bf16.msra.mxu0 %v7907_v21 }
0x2fc5   : > { %7669 = vmatprep.subr.bf16.mxu0 %v8116_v1 }
0x2fc7   : > { %7658 = vmatmul.mubr.msk.bf16.vlgmr.msra.gmra.mrb[156].mxu0 %vm681_vm1, %v8848_v16 }
0x2fc8   : > { %7670 = vmatpush3.bf16.msra.mxu0 %v7908_v22  ;;  %7673 = vmatprep.mubr.msk.bf16.mxu0 %vm8117_vm0, %v8116_v1 }
0x2fc9   : > { %7671 = vmatprep.subr.bf16.mxu0 %v8116_v1 }
0x2fcc   : > { %7672 = vmatpush3.bf16.msra.mxu0 %v7909_v9 }
0x2fcd   : > { %7683 = vmatprep.subr.bf16.mxu0 %v8116_v1 }
0x2fcf   : > { %7674 = vmatmul.mubr.msk.bf16.vlgmr.msra.gmra.mrb[160].mxu0 %vm681_vm1, %v8848_v16 }
0x2fd0   : > { %7685 = vmatprep.mubr.msk.bf16.mxu0 %vm8117_vm0, %v8116_v1 }
0x3092   : > { %v5197_v15 = vpop.f32.mrb[152].mxu0 }
0x3093   : > { %v7645_v10 = vpop.f32.mrb[153].mxu0 }
0x3094   : > { %v5200_v23 = vpop.f32.mrb[154].mxu0 }
0x3095   : > { %v5204_v26 = vpack.c.bf16 %v5200_v23, %v5197_v15  ;;  %v7646_v28 = vpop.f32.mrb[155].mxu0  ;;  %v7912_v15 = vld [vmem:[%s9463_s13 + $0x60] sm:$0xff]   ;;  %v7913_v23 = vld [vmem:[%s9463_s13 + $0x68] sm:$0xff]  }
0x3097   : > { %7650 = vmatmul.mubr.msk.bf16.vlgmr.msra.gmra.mrb[152].mxu1 %vm842_vm2, %v5204_v26  ;;  %v7915_v26 = vld [vmem:[%s9467_s17 + $0x68] sm:$0xff]  }
0x3098   : > { %7662 = vmatpush3.bf16.msra.mxu1 %v7910_v11  ;;  %7665 = vmatprep.mubr.msk.bf16.mxu1 %vm8117_vm0, %v8116_v1  ;;  %v7914_v11 = vld [vmem:[%s9467_s17 + $0x60] sm:$0xff]  }
0x3099   : > { %7663 = vmatprep.subr.bf16.mxu1 %v8116_v1 }
0x309a   : > { %v5325_v31 = vpop.f32.mrb[156].mxu0 }
0x309b   : > { %v7659_v32 = vpop.f32.mrb[157].mxu0  ;;  %v5326_v34 = vadd.f32 %v6779_v30, %v5325_v31  ;;  %v7916_v31 = vld [vmem:[%s9465_s15 + $0x60] sm:$0xff]  }
0x309c   : > { %v5328_v33 = vpop.f32.mrb[158].mxu0  ;;  %7664 = vmatpush3.bf16.msra.mxu1 %v7911_v29 }
0x309d   : > { %v5329_v35 = vadd.f32 %v6779_v30, %v5328_v33  ;;  %v7660_v36 = vpop.f32.mrb[159].mxu0  ;;  %7677 = vmatprep.subr.bf16.mxu1 %v8116_v1 }
0x309f   : > { %v5454_v38 = vpack.c.bf16 %v5329_v35, %v5326_v34  ;;  %7666 = vmatmul.mubr.msk.bf16.vlgmr.msra.gmra.mrb[156].mxu1 %vm681_vm1, %v8848_v16  ;;  %v7917_v34 = vld [vmem:[%s9465_s15 + $0x68] sm:$0xff]   ;;  %v6810_v35 = vld [vmem:[%s9464_s14 + $0x6] ss:$0 sm:$0xff] }
0x30a0   : > { %7679 = vmatprep.mubr.msk.bf16.mxu1 %vm8117_vm0, %v8116_v1 }
0x30a2   : > { %v5447_v40 = vpop.f32.mrb[160].mxu0 }
0x30a3   : > { %v7675_v27 = vpop.f32.mrb[161].mxu0  ;;  %v5448_v43 = vadd.f32 %v6789_v25, %v5447_v40 }
0x30a4   : > { %v5450_v41 = vpop.f32.mrb[162].mxu0 }
0x30a5   : > { %v5451_v44 = vadd.f32 %v6789_v25, %v5450_v41  ;;  %v7676_v46 = vpop.f32.mrb[163].mxu0 }
0x30a7   : > { %v5526_v47 = vpack.c.bf16 %v5451_v44, %v5448_v43  ;;  %v6820_v44 = vld [vmem:[%s9468_s18 + $0x6] ss:$0 sm:$0xff] }
0x30a9   : > { %7684 = vmatpush3.bf16.msra.mxu0 %v5526_v47 }
0x30aa   : > { %7695 = vmatprep.subr.bf16.mxu0 %v8116_v1 }
0x316a   : > { %v5247_v14 = vpop.f32.mrb[152].mxu1 }
0x316b   : > { %v9227_v24 = vadd.f32 %v5247_v14, %v9155_v42  ;;  %v7651_v48 = vpop.f32.mrb[153].mxu1 }
0x316c   : > { %v5250_v49 = vpop.f32.mrb[154].mxu1 }
0x316d   : > { %v9230_v50 = vadd.f32 %v5250_v49, %v9158_v45  ;;  %v7652_v51 = vpop.f32.mrb[155].mxu1 }
0x3172   : > { %v5386_v37 = vpop.f32.mrb[156].mxu1 }
0x3173   : > { %v7667_v39 = vpop.f32.mrb[157].mxu1  ;;  %v5387_v54 = vadd.f32 %v6784_v52, %v5386_v37 }
0x3174   : > { %v5389_v53 = vpop.f32.mrb[158].mxu1 }
0x3175   : > { %v5390_v55 = vadd.f32 %v6784_v52, %v5389_v53  ;;  %v7668_v56 = vpop.f32.mrb[159].mxu1 }
0x3177   : > { %v5455_v57 = vpack.c.bf16 %v5390_v55, %v5387_v54 }
0x3179   : > { %v5460_v42 = vsel %vm842_vm2, %v5455_v57, 0  ;;  %v6815_v57 = vld [vmem:[%s9466_s16 + $0x6] ss:$0 sm:$0xff] }
0x317a   : > { %7678 = vmatpush3.bf16.xpose.msra.mxu1 %v5460_v42 }
0x317b   : > { %7689 = vmatprep.subr.bf16.mxu1 %v8116_v1 }
0x3181   : > { %7680 = vmatmul.mubr.msk.bf16.vlgmr.msra.gmra.mrb[160].mxu1 %vm842_vm2, %v5454_v38 }
0x3182   : > { %7691 = vmatprep.mubr.msk.bf16.mxu1 %vm8117_vm0, %v8116_v1  ;;  %7690 = vmatpush3.bf16.msra.mxu1 %v5578_v17 }
0x3183   : > { %7703 = vmatprep.subr.bf16.mxu1 %v8116_v1 }
0x3254   : > { %v5496_v45 = vpop.f32.mrb[160].mxu1 }
0x3255   : > { %v7681_v58 = vpop.f32.mrb[161].mxu1  ;;  %v5503_v59 = vsel %vm890_vm3, %v5496_v45, -inf }
0x3256   : > { %5504 = vmax.xlane.f32.xlu1 %v5503_v59  ;;  %v5499_v61 = vpop.f32.mrb[162].mxu1 }
0x3257   : > { %v7682_v62 = vpop.f32.mrb[163].mxu1  ;;  %v5506_v2 = vsel %vm890_vm3, %v5499_v61, -inf }
0x3258   : > { %5507 = vmax.xlane.f32.xlu0 %v5506_v2 }
0x32e3   : > { %v5505_v60 = vpop.xlane.xlu1 %5504 }
0x32e4   : > { %v5509_v4 = vsub.f32 %v5496_v45, %v5505_v60 }
0x32e5   : > { %v5508_v5 = vpop.xlane.xlu0 %5507 }
0x32e6   : > { %v5511_v6 = vmul.f32 1.442695, %v5509_v4  ;;  %v5510_v8 = vsub.f32 %v5499_v61, %v5508_v5 }
0x32e8   : > { %8028 = vpow2.f32 %v5511_v6  ;;  %v5513_v0 = vmul.f32 1.442695, %v5510_v8 }
0x32ea   : > { %8030 = vpow2.f32 %v5513_v0 }
0x32f2   : > { %v8029_v12 = vpop.eup %8028 }
0x32f3   : > { %v5515_v7 = vsel %vm890_vm3, %v8029_v12, 0.0 }
0x32f4   : > { %v8031_v13 = vpop.eup %8030  ;;  %5516 = vadd.xlane.f32.xlu1 %v5515_v7 }
0x32f5   : > { %v5518_v63 = vsel %vm890_vm3, %v8031_v13, 0.0 }
0x32f6   : > { %5519 = vadd.xlane.f32.xlu0 %v5518_v63 }
0x3381   : > { %v5517_v18 = vpop.xlane.xlu1 %5516 }
0x3382   : > { %8032 = vrcp.f32 %v5517_v18 }
0x3383   : > { %v5520_v19 = vpop.xlane.xlu0 %5519 }
0x3384   : > { %8034 = vrcp.f32 %v5520_v19 }
0x338c   : > { %v8033_v20 = vpop.eup %8032 }
0x338d   : > { %v5523_v22 = vmul.f32 %v8033_v20, %v8029_v12 }
0x338e   : > { %v8035_v21 = vpop.eup %8034 }
0x338f   : > { %v5524_v9 = vmul.f32 %v8035_v21, %v8031_v13  ;;  %v6826_v21 = vld [vmem:[%s9469_s19 + $0xc] sm:$0x3] }
0x3391   : > { %v5525_v10 = vpack.c.bf16 %v5524_v9, %v5523_v22  ;;  %v5945_v22 = vsel %vm1258_vm4, %v6826_v21, 0 }
0x3393   : > { %7686 = vmatmul.mubr.msk.bf16.vlgmr.msra.gmra.mrb[164].mxu0 %vm890_vm3, %v5525_v10 }
0x3394   : > { %7696 = vmatpush3.bf16.msra.mxu0 %v7912_v15  ;;  %7699 = vmatprep.mubr.msk.bf16.mxu0 %vm8117_vm0, %v8116_v1 }
0x3395   : > { %7697 = vmatprep.subr.bf16.mxu0 %v8116_v1 }
0x3398   : > { %7698 = vmatpush3.bf16.msra.mxu0 %v7913_v23 }
0x3399   : > { %7711 = vmatprep.subr.bf16.mxu0 %v8116_v1 }
0x339b   : > { %7700 = vmatmul.mubr.msk.bf16.vlgmr.msra.gmra.mrb[168].mxu0 %vm681_vm1, %v8848_v16 }
0x339c   : > { %7712 = vmatpush3.bf16.msra.mxu0 %v7914_v11  ;;  %7715 = vmatprep.mubr.msk.bf16.mxu0 %vm8117_vm0, %v8116_v1 }
0x339d   : > { %7713 = vmatprep.subr.bf16.mxu0 %v8116_v1 }
0x33a0   : > { %7714 = vmatpush3.bf16.msra.mxu0 %v7915_v26 }
0x33a1   : > { %7725 = vmatprep.subr.bf16.mxu0 %v8116_v1 }
0x33a3   : > { %7716 = vmatmul.mubr.msk.bf16.vlgmr.msra.gmra.mrb[172].mxu0 %vm681_vm1, %v8848_v16 }
0x33a4   : > { %7727 = vmatprep.mubr.msk.bf16.mxu0 %vm8117_vm0, %v8116_v1 }
0x3466   : > { %v5564_v28 = vpop.f32.mrb[164].mxu0 }
0x3467   : > { %v7687_v29 = vpop.f32.mrb[165].mxu0 }
0x3468   : > { %v5567_v30 = vpop.f32.mrb[166].mxu0 }
0x3469   : > { %v5571_v32 = vpack.c.bf16 %v5567_v30, %v5564_v28  ;;  %v7688_v33 = vpop.f32.mrb[167].mxu0  ;;  %v7918_v28 = vld [vmem:[%s9463_s13 + $0x70] sm:$0xff]   ;;  %v7919_v30 = vld [vmem:[%s9463_s13 + $0x78] sm:$0xff]  }
0x346b   : > { %7692 = vmatmul.mubr.msk.bf16.vlgmr.msra.gmra.mrb[164].mxu1 %vm842_vm2, %v5571_v32  ;;  %v7921_v32 = vld [vmem:[%s9467_s17 + $0x78] sm:$0xff]  }
0x346c   : > { %7704 = vmatpush3.bf16.msra.mxu1 %v7916_v31  ;;  %7707 = vmatprep.mubr.msk.bf16.mxu1 %vm8117_vm0, %v8116_v1  ;;  %v7920_v31 = vld [vmem:[%s9467_s17 + $0x70] sm:$0xff]  }
0x346d   : > { %7705 = vmatprep.subr.bf16.mxu1 %v8116_v1 }
0x346e   : > { %v5692_v36 = vpop.f32.mrb[168].mxu0 }
0x346f   : > { %v7701_v38 = vpop.f32.mrb[169].mxu0  ;;  %v5693_v40 = vadd.f32 %v6810_v35, %v5692_v36  ;;  %v7922_v36 = vld [vmem:[%s9465_s15 + $0x70] sm:$0xff]  }
0x3470   : > { %v5695_v25 = vpop.f32.mrb[170].mxu0  ;;  %7706 = vmatpush3.bf16.msra.mxu1 %v7917_v34 }
0x3471   : > { %v5696_v27 = vadd.f32 %v6810_v35, %v5695_v25  ;;  %v7702_v41 = vpop.f32.mrb[171].mxu0  ;;  %7719 = vmatprep.subr.bf16.mxu1 %v8116_v1 }
0x3473   : > { %v5821_v43 = vpack.c.bf16 %v5696_v27, %v5693_v40  ;;  %7708 = vmatmul.mubr.msk.bf16.vlgmr.msra.gmra.mrb[168].mxu1 %vm681_vm1, %v8848_v16  ;;  %v7923_v40 = vld [vmem:[%s9465_s15 + $0x78] sm:$0xff]   ;;  %v6841_v27 = vld [vmem:[%s9464_s14 + $0x7] ss:$0 sm:$0xff] }
0x3474   : > { %7721 = vmatprep.mubr.msk.bf16.mxu1 %vm8117_vm0, %v8116_v1 }
0x3476   : > { %v5814_v46 = vpop.f32.mrb[172].mxu0 }
0x3477   : > { %v7717_v47 = vpop.f32.mrb[173].mxu0  ;;  %v5815_v48 = vadd.f32 %v6820_v44, %v5814_v46 }
0x3478   : > { %v5817_v14 = vpop.f32.mrb[174].mxu0 }
0x3479   : > { %v5818_v49 = vadd.f32 %v6820_v44, %v5817_v14  ;;  %v7718_v51 = vpop.f32.mrb[175].mxu0 }
0x347b   : > { %v5893_v52 = vpack.c.bf16 %v5818_v49, %v5815_v48  ;;  %v6851_v49 = vld [vmem:[%s9468_s18 + $0x7] ss:$0 sm:$0xff] }
0x347d   : > { %7726 = vmatpush3.bf16.msra.mxu0 %v5893_v52 }
0x347e   : > { %7737 = vmatprep.subr.bf16.mxu0 %v8116_v1 }
0x353e   : > { %v5614_v37 = vpop.f32.mrb[164].mxu1 }
0x353f   : > { %v9299_v39 = vadd.f32 %v5614_v37, %v9227_v24  ;;  %v7693_v53 = vpop.f32.mrb[165].mxu1 }
0x3540   : > { %v5617_v54 = vpop.f32.mrb[166].mxu1 }
0x3541   : > { %v9302_v55 = vadd.f32 %v5617_v54, %v9230_v50  ;;  %v7694_v56 = vpop.f32.mrb[167].mxu1 }
0x3546   : > { %v5753_v42 = vpop.f32.mrb[168].mxu1 }
0x3547   : > { %v7709_v45 = vpop.f32.mrb[169].mxu1  ;;  %v5754_v59 = vadd.f32 %v6815_v57, %v5753_v42 }
0x3548   : > { %v5756_v58 = vpop.f32.mrb[170].mxu1 }
0x3549   : > { %v5757_v61 = vadd.f32 %v6815_v57, %v5756_v58  ;;  %v7710_v62 = vpop.f32.mrb[171].mxu1 }
0x354a   : > { %v6846_v62 = vld [vmem:[%s9466_s16 + $0x7] ss:$0 sm:$0xff] }
0x354b   : > { %v5822_v2 = vpack.c.bf16 %v5757_v61, %v5754_v59 }
0x354d   : > { %v5827_v24 = vsel %vm842_vm2, %v5822_v2, 0 }
0x354e   : > { %7720 = vmatpush3.bf16.xpose.msra.mxu1 %v5827_v24 }
0x354f   : > { %7731 = vmatprep.subr.bf16.mxu1 %v8116_v1 }
0x3555   : > { %7722 = vmatmul.mubr.msk.bf16.vlgmr.msra.gmra.mrb[172].mxu1 %vm842_vm2, %v5821_v43 }
0x3556   : > { %7733 = vmatprep.mubr.msk.bf16.mxu1 %vm8117_vm0, %v8116_v1  ;;  %7732 = vmatpush3.bf16.msra.mxu1 %v5945_v22 }
0x3557   : > { %7745 = vmatprep.subr.bf16.mxu1 %v8116_v1 }
0x3628   : > { %v5863_v50 = vpop.f32.mrb[172].mxu1 }
0x3629   : > { %v7723_v60 = vpop.f32.mrb[173].mxu1  ;;  %v5870_v4 = vsel %vm890_vm3, %v5863_v50, -inf }
0x362a   : > { %5871 = vmax.xlane.f32.xlu1 %v5870_v4  ;;  %v5866_v5 = vpop.f32.mrb[174].mxu1 }
0x362b   : > { %v7724_v6 = vpop.f32.mrb[175].mxu1  ;;  %v5873_v8 = vsel %vm890_vm3, %v5866_v5, -inf }
0x362c   : > { %5874 = vmax.xlane.f32.xlu0 %v5873_v8 }
0x36b7   : > { %v5872_v0 = vpop.xlane.xlu1 %5871 }
0x36b8   : > { %v5876_v12 = vsub.f32 %v5863_v50, %v5872_v0 }
0x36b9   : > { %v5875_v7 = vpop.xlane.xlu0 %5874 }
0x36ba   : > { %v5878_v13 = vmul.f32 1.442695, %v5876_v12  ;;  %v5877_v63 = vsub.f32 %v5866_v5, %v5875_v7 }
0x36bc   : > { %8036 = vpow2.f32 %v5878_v13  ;;  %v5880_v3 = vmul.f32 1.442695, %v5877_v63 }
0x36be   : > { %8038 = vpow2.f32 %v5880_v3 }
0x36c6   : > { %v8037_v17 = vpop.eup %8036 }
0x36c7   : > { %v5882_v18 = vsel %vm890_vm3, %v8037_v17, 0.0 }
0x36c8   : > { %v8039_v19 = vpop.eup %8038  ;;  %5883 = vadd.xlane.f32.xlu1 %v5882_v18 }
0x36c9   : > { %v5885_v20 = vsel %vm890_vm3, %v8039_v19, 0.0 }
0x36ca   : > { %5886 = vadd.xlane.f32.xlu0 %v5885_v20 }
0x3755   : > { %v5884_v9 = vpop.xlane.xlu1 %5883 }
0x3756   : > { %8040 = vrcp.f32 %v5884_v9 }
0x3757   : > { %v5887_v15 = vpop.xlane.xlu0 %5886 }
0x3758   : > { %8042 = vrcp.f32 %v5887_v15  ;;  %v6857_v15 = vld [vmem:[%s9469_s19 + $0xe] sm:$0x3] }
0x3760   : > { %v8041_v10 = vpop.eup %8040 }
0x3761   : > { %v5890_v11 = vmul.f32 %v8041_v10, %v8037_v17  ;;  %v6312_v10 = vsel %vm1258_vm4, %v6857_v15, 0 }
0x3762   : > { %v8043_v23 = vpop.eup %8042 }
0x3763   : > { %v5891_v26 = vmul.f32 %v8043_v23, %v8039_v19 }
0x3765   : > { %v5892_v29 = vpack.c.bf16 %v5891_v26, %v5890_v11 }
0x3767   : > { %7728 = vmatmul.mubr.msk.bf16.vlgmr.msra.gmra.mrb[176].mxu0 %vm890_vm3, %v5892_v29 }
0x3768   : > { %7738 = vmatpush3.bf16.msra.mxu0 %v7918_v28  ;;  %7741 = vmatprep.mubr.msk.bf16.mxu0 %vm8117_vm0, %v8116_v1 }
0x3769   : > { %7739 = vmatprep.subr.bf16.mxu0 %v8116_v1 }
0x376c   : > { %7740 = vmatpush3.bf16.msra.mxu0 %v7919_v30 }
0x376d   : > { %7753 = vmatprep.subr.bf16.mxu0 %v8116_v1 }
0x376f   : > { %7742 = vmatmul.mubr.msk.bf16.vlgmr.msra.gmra.mrb[180].mxu0 %vm681_vm1, %v8848_v16 }
0x3770   : > { %7754 = vmatpush3.bf16.msra.mxu0 %v7920_v31  ;;  %7757 = vmatprep.mubr.msk.bf16.mxu0 %vm8117_vm0, %v8116_v1 }
0x3771   : > { %7755 = vmatprep.subr.bf16.mxu0 %v8116_v1 }
0x3774   : > { %7756 = vmatpush3.bf16.msra.mxu0 %v7921_v32 }
0x3775   : > { %7767 = vmatprep.subr.bf16.mxu0 %v8116_v1 }
0x3777   : > { %7758 = vmatmul.mubr.msk.bf16.vlgmr.msra.gmra.mrb[184].mxu0 %vm681_vm1, %v8848_v16 }
0x3778   : > { %7769 = vmatprep.mubr.msk.bf16.mxu0 %vm8117_vm0, %v8116_v1 }
0x383a   : > { %v5931_v33 = vpop.f32.mrb[176].mxu0 }
0x383b   : > { %v7729_v34 = vpop.f32.mrb[177].mxu0 }
0x383c   : > { %v5934_v35 = vpop.f32.mrb[178].mxu0 }
0x383d   : > { %v5938_v38 = vpack.c.bf16 %v5934_v35, %v5931_v33  ;;  %v7730_v25 = vpop.f32.mrb[179].mxu0 }
0x383e   : > { %v6859_v25 = vld [vmem:[%s9515_s30] ss:$0 sm:$0xff] }
0x383f   : > { %7734 = vmatmul.mubr.msk.bf16.vlgmr.msra.gmra.mrb[176].mxu1 %vm842_vm2, %v5938_v38 }
0x3840   : > { %7746 = vmatpush3.bf16.msra.mxu1 %v7922_v36  ;;  %7749 = vmatprep.mubr.msk.bf16.mxu1 %vm8117_vm0, %v8116_v1 }
0x3841   : > { %7747 = vmatprep.subr.bf16.mxu1 %v8116_v1 }
0x3842   : > { %v6059_v41 = vpop.f32.mrb[180].mxu0 }
0x3843   : > { %v7743_v43 = vpop.f32.mrb[181].mxu0  ;;  %v6060_v46 = vadd.f32 %v6841_v27, %v6059_v41 }
0x3844   : > { %v6062_v44 = vpop.f32.mrb[182].mxu0  ;;  %7748 = vmatpush3.bf16.msra.mxu1 %v7923_v40 }
0x3845   : > { %v6063_v47 = vadd.f32 %v6841_v27, %v6062_v44  ;;  %v7744_v14 = vpop.f32.mrb[183].mxu0  ;;  %7761 = vmatprep.subr.bf16.mxu1 %v8116_v1 }
0x3847   : > { %v6188_v48 = vpack.c.bf16 %v6063_v47, %v6060_v46  ;;  %7750 = vmatmul.mubr.msk.bf16.vlgmr.msra.gmra.mrb[180].mxu1 %vm681_vm1, %v8848_v16 }
0x3848   : > { %7763 = vmatprep.mubr.msk.bf16.mxu1 %vm8117_vm0, %v8116_v1 }
0x384a   : > { %v6181_v51 = vpop.f32.mrb[184].mxu0 }
0x384b   : > { %v7759_v52 = vpop.f32.mrb[185].mxu0  ;;  %v6182_v53 = vadd.f32 %v6851_v49, %v6181_v51 }
0x384c   : > { %v6184_v37 = vpop.f32.mrb[186].mxu0 }
0x384d   : > { %v6185_v54 = vadd.f32 %v6851_v49, %v6184_v37  ;;  %v7760_v56 = vpop.f32.mrb[187].mxu0 }
0x384f   : > { %v6260_v57 = vpack.c.bf16 %v6185_v54, %v6182_v53 }
0x3851   : > { %7768 = vmatpush3.bf16.msra.mxu0 %v6260_v57 }
0x3912   : > { %v5981_v42 = vpop.f32.mrb[176].mxu1 }
0x3913   : > { %v9370_v45 = vadd.f32 %v5981_v42, %v9299_v39  ;;  %v7735_v16 = vpop.f32.mrb[177].mxu1 }
0x3914   : > { %v5984_v58 = vpop.f32.mrb[178].mxu1 }
0x3915   : > { %v9373_v59 = vadd.f32 %v5984_v58, %v9302_v55  ;;  %v7736_v61 = vpop.f32.mrb[179].mxu1 }
0x391a   : > { %v6120_v2 = vpop.f32.mrb[180].mxu1 }
0x391b   : > { %v7751_v24 = vpop.f32.mrb[181].mxu1  ;;  %v6121_v60 = vadd.f32 %v6846_v62, %v6120_v2 }
0x391c   : > { %v6123_v50 = vpop.f32.mrb[182].mxu1 }
0x391d   : > { %v6124_v4 = vadd.f32 %v6846_v62, %v6123_v50  ;;  %v7752_v5 = vpop.f32.mrb[183].mxu1 }
0x391f   : > { %v6189_v6 = vpack.c.bf16 %v6124_v4, %v6121_v60 }
0x3921   : > { %v6194_v39 = vsel %vm842_vm2, %v6189_v6, 0 }
0x3922   : > { %7762 = vmatpush3.bf16.xpose.msra.mxu1 %v6194_v39 }
0x3923   : > { %7773 = vmatprep.subr.bf16.mxu1 %v8116_v1 }
0x3929   : > { %7764 = vmatmul.mubr.msk.bf16.vlgmr.msra.gmra.mrb[184].mxu1 %vm842_vm2, %v6188_v48 }
0x392a   : > { %7775 = vmatprep.mubr.msk.bf16.mxu1 %vm8117_vm0, %v8116_v1  ;;  %7774 = vmatpush3.bf16.msra.mxu1 %v6312_v10 }
0x39fc   : > { %v6230_v55 = vpop.f32.mrb[184].mxu1 }
0x39fd   : > { %v7765_v8 = vpop.f32.mrb[185].mxu1  ;;  %v6237_v0 = vsel %vm890_vm3, %v6230_v55, -inf }
0x39fe   : > { %6238 = vmax.xlane.f32.xlu1 %v6237_v0  ;;  %v6233_v12 = vpop.f32.mrb[186].mxu1 }
0x39ff   : > { %v7766_v7 = vpop.f32.mrb[187].mxu1  ;;  %v6240_v13 = vsel %vm890_vm3, %v6233_v12, -inf }
0x3a00   : > { %6241 = vmax.xlane.f32.xlu0 %v6240_v13 }
0x3a8b   : > { %v6239_v63 = vpop.xlane.xlu1 %6238 }
0x3a8c   : > { %v6243_v3 = vsub.f32 %v6230_v55, %v6239_v63 }
0x3a8d   : > { %v6242_v17 = vpop.xlane.xlu0 %6241 }
0x3a8e   : > { %v6245_v18 = vmul.f32 1.442695, %v6243_v3  ;;  %v6244_v19 = vsub.f32 %v6233_v12, %v6242_v17 }
0x3a90   : > { %8044 = vpow2.f32 %v6245_v18  ;;  %v6247_v20 = vmul.f32 1.442695, %v6244_v19 }
0x3a92   : > { %8046 = vpow2.f32 %v6247_v20 }
0x3a9a   : > { %v8045_v21 = vpop.eup %8044 }
0x3a9b   : > { %v6249_v1 = vsel %vm890_vm3, %v8045_v21, 0.0 }
0x3a9c   : > { %v8047_v22 = vpop.eup %8046  ;;  %6250 = vadd.xlane.f32.xlu1 %v6249_v1 }
0x3a9d   : > { %v6252_v9 = vsel %vm890_vm3, %v8047_v22, 0.0 }
0x3a9e   : > { %6253 = vadd.xlane.f32.xlu0 %v6252_v9 }
0x3b29   : > { %v6251_v23 = vpop.xlane.xlu1 %6250 }
0x3b2a   : > { %8048 = vrcp.f32 %v6251_v23 }
0x3b2b   : > { %v6254_v11 = vpop.xlane.xlu0 %6253 }
0x3b2c   : > { %8050 = vrcp.f32 %v6254_v11 }
0x3b34   : > { %v8049_v26 = vpop.eup %8048 }
0x3b35   : > { %v6257_v29 = vmul.f32 %v8049_v26, %v8045_v21 }
0x3b36   : > { %v8051_v28 = vpop.eup %8050 }
0x3b37   : > { %v6258_v30 = vmul.f32 %v8051_v28, %v8047_v22 }
0x3b39   : > { %v6259_v31 = vpack.c.bf16 %v6258_v30, %v6257_v29 }
0x3b3b   : > { %7770 = vmatmul.mubr.msk.bf16.vlgmr.msra.gmra.mrb[188].mxu0 %vm890_vm3, %v6259_v31 }
0x3c0e   : > { %v6298_v32 = vpop.f32.mrb[188].mxu0 }
0x3c0f   : > { %v7771_v33 = vpop.f32.mrb[189].mxu0 }
0x3c10   : > { %v6301_v34 = vpop.f32.mrb[190].mxu0 }
0x3c11   : > { %v6305_v35 = vpack.c.bf16 %v6301_v34, %v6298_v32  ;;  %v7772_v36 = vpop.f32.mrb[191].mxu0 }
0x3c13   : > { %7776 = vmatmul.mubr.msk.bf16.vlgmr.msra.gmra.mrb[188].mxu1 %vm842_vm2, %v6305_v35 }
0x3ce6   : > { %v6348_v38 = vpop.f32.mrb[188].mxu1 }
0x3ce7   : > { %v6355_v40 = vadd.f32 %v6348_v38, %v9370_v45  ;;  %v7777_v27 = vpop.f32.mrb[189].mxu1 }
0x3ce8   : > { %v6351_v41 = vpop.f32.mrb[190].mxu1 }
0x3ce9   : > { %v6364_v43 = vadd.f32 %v6859_v25, %v6355_v40  ;;  %v6356_v44 = vadd.f32 %v6351_v41, %v9373_v59  ;;  %v7778_v46 = vpop.f32.mrb[191].mxu1 }
0x3ceb   : > { %6366 = vst.msk [vmem:[%s649_s4] sm:$0xff] %vm681_vm1, %v6364_v43  ;;  %v6365_v47 = vadd.f32 %v6859_v25, %v6356_v44 }
0x3ced   : > { %6367 = vst.msk [vmem:[%s649_s4 + $0x8] sm:$0xff] %vm681_vm1, %v6365_v47 }
0x3cee   : > { %8065 = shalt.err (!%p8062_p3)
}
0x3cef   : > { %s8066_s22 = scalar_lea.hbm %s9403_s6, 256  ;;  %s8070_s2 = scalar_lea.hbm %s9517_s5, 512 }
0x3cf0   : > { %p8067_p4 = scmp.ne.s32.totalorder %s9403_s6, %s8066_s22  ;;  %p8071_p9 = scmp.lt.u32.totalorder %s9403_s6, %s9517_s5 }
0x3cf1   : > { %p8072_p10 = scmp.lt.u32.totalorder %s8070_s2, %s8066_s22  ;;  %p8074_p12 = scmp.lt.u32.totalorder %s8066_s22, %s9403_s6 }
0x3cf2   : > { %p8068_p7 = pnand %p8067_p4, %p8270_p5 }
0x3cf3   : > { %p8073_p11 = por %p8072_p10, %p8071_p9 }
0x3cf4   : > { %p8069_p8 = pneg %p8068_p7 }
0x3cf5   : > { %p8075_p13 = por %p8074_p12, %p8073_p11 }
0x3cf7   : > { %p8076_p0 = pnand %p8075_p13, %p8069_p8 }
0x3cf9   : > { %8079 = shalt.err (!%p8076_p0)
}
0x3cfa   : > { %s8120_s23 = smov 128   ;;  %s8121_s1 = smov 8  }
0x3cfb   : > { %7779 = dma.vmem_to_hbm [thread:$0]  (%p8270_p5), %s9405_s21, 256, %s9403_s6, %s9409_s3, %s8120_s23, %s8120_s23, %s8121_s1  }
0x3cfc PF: > { %s9518_s26 = sld [smem:[#allocation7_spill]]  ;;  %s9519_s30 = sld [smem:[#allocation5_spill]] }
0x3d02   : > { %p7785_p1 = scmp.ge.s32.totalorder %s9518_s26, 2  ;;  %s6397_s27 = sand.u32 1, %s9519_s30  }
0x3d03   : > { %s6398_s22 = scalar_lea.sflag [#allocation3], %s6397_s27 }
0x3d04   : > { %p7782_p2 = pnand %p7785_p1, %p8274_p6 }
0x3d06   : > { %8097 = dma.done.wait (!%p7782_p2), %s6398_s22, 256  }
0x3d07   : > { %8099 = vsyncadd (!%p7782_p2), %s6398_s22, 4294967040  ;;  %s9521_s27 = sld [smem:[#allocation8_spill]]  ;;  %s9522_s0 = sld [smem:[#allocation6_spill]] }
0x3d08   : > { %s9523_s26 = sld [smem:[#allocation9_spill]]  ;;  %s9524_s2 = smov %s8106_s25 }
0x3d0d   : > { %p31_p3 = scmp.ge.s32.totalorder %s9521_s27, 4   ;;  %s9525_s25 = smov %s9522_s0 }
0x3d0f   :  { %33 = sbr.rel (!%p31_p3) target bundleno = 13 (0xd), region = 212 }
0x3d16   :  { %6403 = vsyncpa [#allocation3], 1 }
0x3d17   :  { %6405 = vsyncpa [#allocation3 + $0x1], 1 }

</bundles_post_ra>
